<compile_context>
chip_gen: v6e
topology: v6e:2x2x1
jax: 0.10.0
libtpu: 0.0.40
codegen_flags: <defaults>
</compile_context>

<pallas_src>
import functools

import jax
import jax.numpy as jnp
from jax.experimental import pallas as pl
from jax.experimental.pallas import tpu as pltpu


# ------------------------------ fused kernel ------------------------------- #

def _layernorm(x, g, b, eps):
    mean = jnp.mean(x, axis=-1, keepdims=True)
    var = jnp.mean(jnp.square(x - mean), axis=-1, keepdims=True)
    return (x - mean) * jax.lax.rsqrt(var + eps) * g + b


def _fused_transformer_kernel(
    x_ref,            # (N, D)      tokens, batch-first flattened (token = b*S + s)
    in_proj_w_ref,    # (L, D, 3D)  pre-transposed QKV projection
    out_proj_w_ref,   # (L, D, D)
    lin1_w_ref,       # (L, D, F)
    lin1_b_ref,       # (L, 1, F)
    lin2_w_ref,       # (L, F, D)
    vec_ref,          # (L, 9, D)   packed: [q_b, k_b, v_b, out_b, lin2_b, ln1_g, ln1_b, ln2_g, ln2_b]
    final_w_ref,      # (1, D)
    final_b_ref,      # (1, 1)
    o_ref,            # (N, 1)
    attn_scratch,     # VMEM (B, S, D) f32
    *, num_layers, num_heads, seq_len, batch, eps,
):
    N, D = x_ref.shape
    dh = D // num_heads
    scale = 1.0 / (dh ** 0.5)

    h = x_ref[...].astype(jnp.float32)                                        # (N, D)

    for l in range(num_layers):                                               # static unroll (L=2)
        vec = vec_ref[l]                                                      # (9, D)
        q_b, k_b, v_b = vec[0:1, :], vec[1:2, :], vec[2:3, :]
        out_b, lin2_b = vec[3:4, :], vec[4:5, :]
        ln1_g, ln1_b = vec[5:6, :], vec[6:7, :]
        ln2_g, ln2_b = vec[7:8, :], vec[8:9, :]

        # ---------------- self attention ----------------
        qkv = jnp.dot(h, in_proj_w_ref[l], preferred_element_type=jnp.float32)  # (N, 3D)
        q = (qkv[:, 0:D] + q_b).reshape(batch, seq_len, D)                      # (B, S, D)
        k = (qkv[:, D:2 * D] + k_b).reshape(batch, seq_len, D)
        v = (qkv[:, 2 * D:3 * D] + v_b).reshape(batch, seq_len, D)

        for hh in range(num_heads):                                           # static unroll (H=8)
            sl = slice(hh * dh, (hh + 1) * dh)
            q_h, k_h, v_h = q[:, :, sl], k[:, :, sl], v[:, :, sl]             # (B, S, dh)
            s = jnp.einsum("bqd,bkd->bqk", q_h, k_h,
                           preferred_element_type=jnp.float32) * scale        # (B, S, S)
            s = s - jnp.max(s, axis=-1, keepdims=True)
            p = jnp.exp(s)
            p = p * pl.reciprocal(jnp.sum(p, axis=-1, keepdims=True), approx=True)
            attn_scratch[:, :, sl] = jnp.einsum("bqk,bkd->bqd", p, v_h,
                                                preferred_element_type=jnp.float32)

        attn = attn_scratch[...].reshape(N, D)
        attn = jnp.dot(attn, out_proj_w_ref[l],
                       preferred_element_type=jnp.float32) + out_b
        h = _layernorm(h + attn, ln1_g, ln1_b, eps)                           # post-norm add & LN

        # ---------------- feed forward ----------------
        ff = jnp.dot(h, lin1_w_ref[l], preferred_element_type=jnp.float32) + lin1_b_ref[l]
        ff = jnp.maximum(ff, 0.0)                                             # relu
        ff = jnp.dot(ff, lin2_w_ref[l], preferred_element_type=jnp.float32) + lin2_b
        h = _layernorm(h + ff, ln2_g, ln2_b, eps)

    # final Linear(D, 1) + sigmoid — elementwise multiply + lane reduce (no 1-wide matmul).
    logits = jnp.sum(h * final_w_ref[...], axis=-1, keepdims=True) + final_b_ref[...]
    o_ref[...] = jax.nn.sigmoid(logits).astype(o_ref.dtype)


# ------------------------------ model wrapper ------------------------------ #

def init_params(key, d_model, num_layers, d_ff):
    """Weights stored pre-transposed in (K, M) layout; per-layer tensors stacked along dim 0."""
    scale = 0.05
    D, L, F = d_model, num_layers, d_ff
    k_in, k_out, k_l1, k_l2, k_f = jax.random.split(key, 5)
    params = dict(
        in_proj_w=jax.random.normal(k_in, (L, D, 3 * D), jnp.float32) * scale,
        out_proj_w=jax.random.normal(k_out, (L, D, D), jnp.float32) * scale,
        lin1_w=jax.random.normal(k_l1, (L, D, F), jnp.float32) * scale,
        lin1_b=jnp.zeros((L, 1, F), jnp.float32),
        lin2_w=jax.random.normal(k_l2, (L, F, D), jnp.float32) * scale,
        final_w=jax.random.normal(k_f, (1, D), jnp.float32) * scale,
        final_b=jnp.zeros((1, 1), jnp.float32),
    )
    # Packed per-layer small vectors: [q_b, k_b, v_b, out_proj_b, lin2_b, ln1_g, ln1_b, ln2_g, ln2_b]
    zeros = jnp.zeros((L, D), jnp.float32)
    ones = jnp.ones((L, D), jnp.float32)
    params["vecs"] = jnp.stack(
        [zeros, zeros, zeros, zeros, zeros, ones, zeros, ones, zeros], axis=1)  # (L, 9, D)
    return params


def transformer_lr_forward(x, params, num_heads, eps=1e-5):
    """x: (S, B, D) -> sigmoid(Linear(Encoder(x))): (S, B, 1)."""
    S, B, D = x.shape
    N = S * B
    L = params["in_proj_w"].shape[0]

    # One tiny one-time input transpose so tokens are batch-first (contiguous per-batch rows);
    # everything else (head split, per-layer layout) happens inside the fused kernel.
    h0 = jnp.transpose(x, (1, 0, 2)).reshape(N, D)

    kern = functools.partial(
        _fused_transformer_kernel,
        num_layers=L, num_heads=num_heads, seq_len=S, batch=B, eps=eps)

    def _full(arr):
        nd = arr.ndim
        return pl.BlockSpec(arr.shape, lambda i: (0,) * nd)

    args = (h0, params["in_proj_w"], params["out_proj_w"], params["lin1_w"],
            params["lin1_b"], params["lin2_w"], params["vecs"],
            params["final_w"], params["final_b"])

    out = pl.pallas_call(
        kern,
        out_shape=jax.ShapeDtypeStruct((N, 1), jnp.float32),
        grid=(1,),
        in_specs=[_full(a) for a in args],
        out_specs=pl.BlockSpec((N, 1), lambda i: (0, 0)),
        scratch_shapes=[pltpu.VMEM((B, S, D), jnp.float32)],
    )(*args)

    return out.reshape(B, S, 1).transpose(1, 0, 2)                            # back to (S, B, 1)


# ----------------------------------- main ----------------------------------- #

if __name__ == "__main__":
    # Small shapes consistent with the module: input_dim=32, num_heads=8,
    # num_layers=2 (constructor args), dim_feedforward=2048 (PyTorch default).
    S, B, D = 8, 2, 32
    NUM_HEADS = 8
    NUM_LAYERS = 2
    D_FF = 2048

    key = jax.random.PRNGKey(0)
    kx, kp = jax.random.split(key)
    x = jax.random.normal(kx, (S, B, D), jnp.float32)
    params = init_params(kp, D, NUM_LAYERS, D_FF)

    fwd = jax.jit(functools.partial(transformer_lr_forward, num_heads=NUM_HEADS))
    out = jax.block_until_ready(fwd(x, params))

    assert out.shape == (S, B, 1), out.shape
    assert bool(jnp.all(jnp.isfinite(out)))
    assert bool(jnp.all((out >= 0.0) & (out <= 1.0)))
    print("KERNEL_OK")
</pallas_src>

<mosaic_0001>
module attributes {stable_mosaic.version = 11 : i64} {
  func.func @_fused_transformer_kernel(%arg0: i32, %arg1: memref<16x32xf32, #tpu.memory_space<vmem>>, %arg2: memref<2x32x96xf32, #tpu.memory_space<vmem>>, %arg3: memref<2x32x32xf32, #tpu.memory_space<vmem>>, %arg4: memref<2x32x2048xf32, #tpu.memory_space<vmem>>, %arg5: memref<2x1x2048xf32, #tpu.memory_space<vmem>>, %arg6: memref<2x2048x32xf32, #tpu.memory_space<vmem>>, %arg7: memref<2x9x32xf32, #tpu.memory_space<vmem>>, %arg8: memref<1x32xf32, #tpu.memory_space<vmem>>, %arg9: memref<1x1xf32, #tpu.memory_space<vmem>>, %arg10: memref<16x1xf32, #tpu.memory_space<vmem>>, %arg11: memref<2x8x32xf32, #tpu.memory_space<vmem>>) attributes {dimension_semantics = [#tpu.dimension_semantics<arbitrary>], iteration_bounds = array<i64: 1>, scalar_prefetch = 0 : i64, scratch_operands = 1 : i64, tpu.core_type = #tpu.core_type<tc>, window_params = [{pipeline_mode = #tpu.pipeline_mode<synchronous>, transform_indices = @transform_0, window_bounds = array<i64: 16, 32>}, {pipeline_mode = #tpu.pipeline_mode<synchronous>, transform_indices = @transform_1, window_bounds = array<i64: 2, 32, 96>}, {pipeline_mode = #tpu.pipeline_mode<synchronous>, transform_indices = @transform_2, window_bounds = array<i64: 2, 32, 32>}, {pipeline_mode = #tpu.pipeline_mode<synchronous>, transform_indices = @transform_3, window_bounds = array<i64: 2, 32, 2048>}, {pipeline_mode = #tpu.pipeline_mode<synchronous>, transform_indices = @transform_4, window_bounds = array<i64: 2, 1, 2048>}, {pipeline_mode = #tpu.pipeline_mode<synchronous>, transform_indices = @transform_5, window_bounds = array<i64: 2, 2048, 32>}, {pipeline_mode = #tpu.pipeline_mode<synchronous>, transform_indices = @transform_6, window_bounds = array<i64: 2, 9, 32>}, {pipeline_mode = #tpu.pipeline_mode<synchronous>, transform_indices = @transform_7, window_bounds = array<i64: 1, 32>}, {pipeline_mode = #tpu.pipeline_mode<synchronous>, transform_indices = @transform_8, window_bounds = array<i64: 1, 1>}, {pipeline_mode = #tpu.pipeline_mode<synchronous>, transform_indices = @transform_9, window_bounds = array<i64: 16, 1>}]} {
    %c0 = arith.constant 0 : index
    %c0_0 = arith.constant 0 : index
    %0 = vector.load %arg1[%c0, %c0_0] : memref<16x32xf32, #tpu.memory_space<vmem>>, vector<16x32xf32>
    %c0_1 = arith.constant 0 : index
    %c0_2 = arith.constant 0 : index
    %c0_3 = arith.constant 0 : index
    %1 = vector.load %arg7[%c0_1, %c0_2, %c0_3] : memref<2x9x32xf32, #tpu.memory_space<vmem>>, vector<1x9x32xf32>
    %2 = vector.shape_cast %1 : vector<1x9x32xf32> to vector<9x32xf32>
    %3 = vector.extract_strided_slice %2 {offsets = [0, 0], sizes = [1, 32], strides = [1, 1]} : vector<9x32xf32> to vector<1x32xf32>
    %4 = vector.extract_strided_slice %2 {offsets = [1, 0], sizes = [1, 32], strides = [1, 1]} : vector<9x32xf32> to vector<1x32xf32>
    %5 = vector.extract_strided_slice %2 {offsets = [2, 0], sizes = [1, 32], strides = [1, 1]} : vector<9x32xf32> to vector<1x32xf32>
    %6 = vector.extract_strided_slice %2 {offsets = [3, 0], sizes = [1, 32], strides = [1, 1]} : vector<9x32xf32> to vector<1x32xf32>
    %7 = vector.extract_strided_slice %2 {offsets = [4, 0], sizes = [1, 32], strides = [1, 1]} : vector<9x32xf32> to vector<1x32xf32>
    %8 = vector.extract_strided_slice %2 {offsets = [5, 0], sizes = [1, 32], strides = [1, 1]} : vector<9x32xf32> to vector<1x32xf32>
    %9 = vector.extract_strided_slice %2 {offsets = [6, 0], sizes = [1, 32], strides = [1, 1]} : vector<9x32xf32> to vector<1x32xf32>
    %10 = vector.extract_strided_slice %2 {offsets = [7, 0], sizes = [1, 32], strides = [1, 1]} : vector<9x32xf32> to vector<1x32xf32>
    %11 = vector.extract_strided_slice %2 {offsets = [8, 0], sizes = [1, 32], strides = [1, 1]} : vector<9x32xf32> to vector<1x32xf32>
    %c0_4 = arith.constant 0 : index
    %c0_5 = arith.constant 0 : index
    %c0_6 = arith.constant 0 : index
    %12 = vector.load %arg2[%c0_4, %c0_5, %c0_6] : memref<2x32x96xf32, #tpu.memory_space<vmem>>, vector<1x32x96xf32>
    %13 = vector.shape_cast %12 : vector<1x32x96xf32> to vector<32x96xf32>
    %cst = arith.constant dense<0.000000e+00> : vector<16x96xf32>
    %14 = tpu.matmul %0, %13, %cst {dimension_numbers = #tpu.dot_dimension_numbers<[1], [0], [0], [1], [0, 0, 1, 1], [], []>} : vector<16x32xf32>, vector<32x96xf32>, vector<16x96xf32> -> vector<16x96xf32>
    %15 = vector.extract_strided_slice %14 {offsets = [0, 0], sizes = [16, 32], strides = [1, 1]} : vector<16x96xf32> to vector<16x32xf32>
    %16 = vector.broadcast %3 : vector<1x32xf32> to vector<16x32xf32>
    %17 = arith.addf %15, %16 : vector<16x32xf32>
    %18 = vector.shape_cast %17 : vector<16x32xf32> to vector<2x8x32xf32>
    %19 = vector.extract_strided_slice %14 {offsets = [0, 32], sizes = [16, 32], strides = [1, 1]} : vector<16x96xf32> to vector<16x32xf32>
    %20 = vector.broadcast %4 : vector<1x32xf32> to vector<16x32xf32>
    %21 = arith.addf %19, %20 : vector<16x32xf32>
    %22 = vector.shape_cast %21 : vector<16x32xf32> to vector<2x8x32xf32>
    %23 = vector.extract_strided_slice %14 {offsets = [0, 64], sizes = [16, 32], strides = [1, 1]} : vector<16x96xf32> to vector<16x32xf32>
    %24 = vector.broadcast %5 : vector<1x32xf32> to vector<16x32xf32>
    %25 = arith.addf %23, %24 : vector<16x32xf32>
    %26 = vector.shape_cast %25 : vector<16x32xf32> to vector<2x8x32xf32>
    %27 = vector.extract_strided_slice %18 {offsets = [0, 0, 0], sizes = [2, 8, 4], strides = [1, 1, 1]} : vector<2x8x32xf32> to vector<2x8x4xf32>
    %28 = vector.extract_strided_slice %22 {offsets = [0, 0, 0], sizes = [2, 8, 4], strides = [1, 1, 1]} : vector<2x8x32xf32> to vector<2x8x4xf32>
    %29 = vector.extract_strided_slice %26 {offsets = [0, 0, 0], sizes = [2, 8, 4], strides = [1, 1, 1]} : vector<2x8x32xf32> to vector<2x8x4xf32>
    "tpu.trace_start"() <{level = 10 : i32, message = "bqd,bkd->bqk"}> : () -> ()
    %cst_7 = arith.constant dense<0.000000e+00> : vector<2x8x8xf32>
    %30 = tpu.matmul %27, %28, %cst_7 {dimension_numbers = #tpu.dot_dimension_numbers<[2], [2], [1], [1], [0, 0, 0, 1, 1, 1], [0], [0]>} : vector<2x8x4xf32>, vector<2x8x4xf32>, vector<2x8x8xf32> -> vector<2x8x8xf32>
    "tpu.trace_stop"() : () -> ()
    %cst_8 = arith.constant 5.000000e-01 : f32
    %31 = vector.broadcast %cst_8 : f32 to vector<2x8x8xf32>
    %32 = arith.mulf %30, %31 : vector<2x8x8xf32>
    %cst_9 = arith.constant dense<0xFF800000> : vector<2x8xf32>
    %33 = vector.multi_reduction <maximumf>, %32, %cst_9 [2] : vector<2x8x8xf32> to vector<2x8xf32>
    %34 = vector.shape_cast %33 : vector<2x8xf32> to vector<2x8x1xf32>
    %35 = vector.broadcast %34 : vector<2x8x1xf32> to vector<2x8x8xf32>
    %36 = arith.subf %32, %35 : vector<2x8x8xf32>
    %37 = math.exp %36 : vector<2x8x8xf32>
    %cst_10 = arith.constant dense<0.000000e+00> : vector<2x8xf32>
    %38 = vector.multi_reduction <add>, %37, %cst_10 [2] : vector<2x8x8xf32> to vector<2x8xf32>
    %39 = vector.shape_cast %38 : vector<2x8xf32> to vector<2x8x1xf32>
    %40 = tpu.reciprocal %39 {approx = true} : vector<2x8x1xf32> -> vector<2x8x1xf32>
    %41 = vector.broadcast %40 : vector<2x8x1xf32> to vector<2x8x8xf32>
    %42 = arith.mulf %37, %41 : vector<2x8x8xf32>
    "tpu.trace_start"() <{level = 10 : i32, message = "bqk,bkd->bqd"}> : () -> ()
    %cst_11 = arith.constant dense<0.000000e+00> : vector<2x8x4xf32>
    %43 = tpu.matmul %42, %29, %cst_11 {dimension_numbers = #tpu.dot_dimension_numbers<[2], [1], [1], [2], [0, 0, 0, 1, 1, 2], [0], [0]>} : vector<2x8x8xf32>, vector<2x8x4xf32>, vector<2x8x4xf32> -> vector<2x8x4xf32>
    "tpu.trace_stop"() : () -> ()
    %c0_12 = arith.constant 0 : index
    %c0_13 = arith.constant 0 : index
    %c0_14 = arith.constant 0 : index
    %44 = vector.load %arg11[%c0_12, %c0_13, %c0_14] : memref<2x8x32xf32, #tpu.memory_space<vmem>>, vector<2x8x4xf32>
    tpu.vector_store %arg11[%c0_12, %c0_13, %c0_14], %43 {strides = array<i32>} : memref<2x8x32xf32, #tpu.memory_space<vmem>>, vector<2x8x4xf32>,
    %45 = vector.extract_strided_slice %18 {offsets = [0, 0, 4], sizes = [2, 8, 4], strides = [1, 1, 1]} : vector<2x8x32xf32> to vector<2x8x4xf32>
    %46 = vector.extract_strided_slice %22 {offsets = [0, 0, 4], sizes = [2, 8, 4], strides = [1, 1, 1]} : vector<2x8x32xf32> to vector<2x8x4xf32>
    %47 = vector.extract_strided_slice %26 {offsets = [0, 0, 4], sizes = [2, 8, 4], strides = [1, 1, 1]} : vector<2x8x32xf32> to vector<2x8x4xf32>
    "tpu.trace_start"() <{level = 10 : i32, message = "bqd,bkd->bqk"}> : () -> ()
    %cst_15 = arith.constant dense<0.000000e+00> : vector<2x8x8xf32>
    %48 = tpu.matmul %45, %46, %cst_15 {dimension_numbers = #tpu.dot_dimension_numbers<[2], [2], [1], [1], [0, 0, 0, 1, 1, 1], [0], [0]>} : vector<2x8x4xf32>, vector<2x8x4xf32>, vector<2x8x8xf32> -> vector<2x8x8xf32>
    "tpu.trace_stop"() : () -> ()
    %cst_16 = arith.constant 5.000000e-01 : f32
    %49 = vector.broadcast %cst_16 : f32 to vector<2x8x8xf32>
    %50 = arith.mulf %48, %49 : vector<2x8x8xf32>
    %cst_17 = arith.constant dense<0xFF800000> : vector<2x8xf32>
    %51 = vector.multi_reduction <maximumf>, %50, %cst_17 [2] : vector<2x8x8xf32> to vector<2x8xf32>
    %52 = vector.shape_cast %51 : vector<2x8xf32> to vector<2x8x1xf32>
    %53 = vector.broadcast %52 : vector<2x8x1xf32> to vector<2x8x8xf32>
    %54 = arith.subf %50, %53 : vector<2x8x8xf32>
    %55 = math.exp %54 : vector<2x8x8xf32>
    %cst_18 = arith.constant dense<0.000000e+00> : vector<2x8xf32>
    %56 = vector.multi_reduction <add>, %55, %cst_18 [2] : vector<2x8x8xf32> to vector<2x8xf32>
    %57 = vector.shape_cast %56 : vector<2x8xf32> to vector<2x8x1xf32>
    %58 = tpu.reciprocal %57 {approx = true} : vector<2x8x1xf32> -> vector<2x8x1xf32>
    %59 = vector.broadcast %58 : vector<2x8x1xf32> to vector<2x8x8xf32>
    %60 = arith.mulf %55, %59 : vector<2x8x8xf32>
    "tpu.trace_start"() <{level = 10 : i32, message = "bqk,bkd->bqd"}> : () -> ()
    %cst_19 = arith.constant dense<0.000000e+00> : vector<2x8x4xf32>
    %61 = tpu.matmul %60, %47, %cst_19 {dimension_numbers = #tpu.dot_dimension_numbers<[2], [1], [1], [2], [0, 0, 0, 1, 1, 2], [0], [0]>} : vector<2x8x8xf32>, vector<2x8x4xf32>, vector<2x8x4xf32> -> vector<2x8x4xf32>
    "tpu.trace_stop"() : () -> ()
    %c0_20 = arith.constant 0 : index
    %c0_21 = arith.constant 0 : index
    %c4 = arith.constant 4 : index
    %62 = vector.load %arg11[%c0_20, %c0_21, %c4] : memref<2x8x32xf32, #tpu.memory_space<vmem>>, vector<2x8x4xf32>
    tpu.vector_store %arg11[%c0_20, %c0_21, %c4], %61 {strides = array<i32>} : memref<2x8x32xf32, #tpu.memory_space<vmem>>, vector<2x8x4xf32>,
    %63 = vector.extract_strided_slice %18 {offsets = [0, 0, 8], sizes = [2, 8, 4], strides = [1, 1, 1]} : vector<2x8x32xf32> to vector<2x8x4xf32>
    %64 = vector.extract_strided_slice %22 {offsets = [0, 0, 8], sizes = [2, 8, 4], strides = [1, 1, 1]} : vector<2x8x32xf32> to vector<2x8x4xf32>
    %65 = vector.extract_strided_slice %26 {offsets = [0, 0, 8], sizes = [2, 8, 4], strides = [1, 1, 1]} : vector<2x8x32xf32> to vector<2x8x4xf32>
    "tpu.trace_start"() <{level = 10 : i32, message = "bqd,bkd->bqk"}> : () -> ()
    %cst_22 = arith.constant dense<0.000000e+00> : vector<2x8x8xf32>
    %66 = tpu.matmul %63, %64, %cst_22 {dimension_numbers = #tpu.dot_dimension_numbers<[2], [2], [1], [1], [0, 0, 0, 1, 1, 1], [0], [0]>} : vector<2x8x4xf32>, vector<2x8x4xf32>, vector<2x8x8xf32> -> vector<2x8x8xf32>
    "tpu.trace_stop"() : () -> ()
    %cst_23 = arith.constant 5.000000e-01 : f32
    %67 = vector.broadcast %cst_23 : f32 to vector<2x8x8xf32>
    %68 = arith.mulf %66, %67 : vector<2x8x8xf32>
    %cst_24 = arith.constant dense<0xFF800000> : vector<2x8xf32>
    %69 = vector.multi_reduction <maximumf>, %68, %cst_24 [2] : vector<2x8x8xf32> to vector<2x8xf32>
    %70 = vector.shape_cast %69 : vector<2x8xf32> to vector<2x8x1xf32>
    %71 = vector.broadcast %70 : vector<2x8x1xf32> to vector<2x8x8xf32>
    %72 = arith.subf %68, %71 : vector<2x8x8xf32>
    %73 = math.exp %72 : vector<2x8x8xf32>
    %cst_25 = arith.constant dense<0.000000e+00> : vector<2x8xf32>
    %74 = vector.multi_reduction <add>, %73, %cst_25 [2] : vector<2x8x8xf32> to vector<2x8xf32>
    %75 = vector.shape_cast %74 : vector<2x8xf32> to vector<2x8x1xf32>
    %76 = tpu.reciprocal %75 {approx = true} : vector<2x8x1xf32> -> vector<2x8x1xf32>
    %77 = vector.broadcast %76 : vector<2x8x1xf32> to vector<2x8x8xf32>
    %78 = arith.mulf %73, %77 : vector<2x8x8xf32>
    "tpu.trace_start"() <{level = 10 : i32, message = "bqk,bkd->bqd"}> : () -> ()
    %cst_26 = arith.constant dense<0.000000e+00> : vector<2x8x4xf32>
    %79 = tpu.matmul %78, %65, %cst_26 {dimension_numbers = #tpu.dot_dimension_numbers<[2], [1], [1], [2], [0, 0, 0, 1, 1, 2], [0], [0]>} : vector<2x8x8xf32>, vector<2x8x4xf32>, vector<2x8x4xf32> -> vector<2x8x4xf32>
    "tpu.trace_stop"() : () -> ()
    %c0_27 = arith.constant 0 : index
    %c0_28 = arith.constant 0 : index
    %c8 = arith.constant 8 : index
    %80 = vector.load %arg11[%c0_27, %c0_28, %c8] : memref<2x8x32xf32, #tpu.memory_space<vmem>>, vector<2x8x4xf32>
    tpu.vector_store %arg11[%c0_27, %c0_28, %c8], %79 {strides = array<i32>} : memref<2x8x32xf32, #tpu.memory_space<vmem>>, vector<2x8x4xf32>,
    %81 = vector.extract_strided_slice %18 {offsets = [0, 0, 12], sizes = [2, 8, 4], strides = [1, 1, 1]} : vector<2x8x32xf32> to vector<2x8x4xf32>
    %82 = vector.extract_strided_slice %22 {offsets = [0, 0, 12], sizes = [2, 8, 4], strides = [1, 1, 1]} : vector<2x8x32xf32> to vector<2x8x4xf32>
    %83 = vector.extract_strided_slice %26 {offsets = [0, 0, 12], sizes = [2, 8, 4], strides = [1, 1, 1]} : vector<2x8x32xf32> to vector<2x8x4xf32>
    "tpu.trace_start"() <{level = 10 : i32, message = "bqd,bkd->bqk"}> : () -> ()
    %cst_29 = arith.constant dense<0.000000e+00> : vector<2x8x8xf32>
    %84 = tpu.matmul %81, %82, %cst_29 {dimension_numbers = #tpu.dot_dimension_numbers<[2], [2], [1], [1], [0, 0, 0, 1, 1, 1], [0], [0]>} : vector<2x8x4xf32>, vector<2x8x4xf32>, vector<2x8x8xf32> -> vector<2x8x8xf32>
    "tpu.trace_stop"() : () -> ()
    %cst_30 = arith.constant 5.000000e-01 : f32
    %85 = vector.broadcast %cst_30 : f32 to vector<2x8x8xf32>
    %86 = arith.mulf %84, %85 : vector<2x8x8xf32>
    %cst_31 = arith.constant dense<0xFF800000> : vector<2x8xf32>
    %87 = vector.multi_reduction <maximumf>, %86, %cst_31 [2] : vector<2x8x8xf32> to vector<2x8xf32>
    %88 = vector.shape_cast %87 : vector<2x8xf32> to vector<2x8x1xf32>
    %89 = vector.broadcast %88 : vector<2x8x1xf32> to vector<2x8x8xf32>
    %90 = arith.subf %86, %89 : vector<2x8x8xf32>
    %91 = math.exp %90 : vector<2x8x8xf32>
    %cst_32 = arith.constant dense<0.000000e+00> : vector<2x8xf32>
    %92 = vector.multi_reduction <add>, %91, %cst_32 [2] : vector<2x8x8xf32> to vector<2x8xf32>
    %93 = vector.shape_cast %92 : vector<2x8xf32> to vector<2x8x1xf32>
    %94 = tpu.reciprocal %93 {approx = true} : vector<2x8x1xf32> -> vector<2x8x1xf32>
    %95 = vector.broadcast %94 : vector<2x8x1xf32> to vector<2x8x8xf32>
    %96 = arith.mulf %91, %95 : vector<2x8x8xf32>
    "tpu.trace_start"() <{level = 10 : i32, message = "bqk,bkd->bqd"}> : () -> ()
    %cst_33 = arith.constant dense<0.000000e+00> : vector<2x8x4xf32>
    %97 = tpu.matmul %96, %83, %cst_33 {dimension_numbers = #tpu.dot_dimension_numbers<[2], [1], [1], [2], [0, 0, 0, 1, 1, 2], [0], [0]>} : vector<2x8x8xf32>, vector<2x8x4xf32>, vector<2x8x4xf32> -> vector<2x8x4xf32>
    "tpu.trace_stop"() : () -> ()
    %c0_34 = arith.constant 0 : index
    %c0_35 = arith.constant 0 : index
    %c12 = arith.constant 12 : index
    %98 = vector.load %arg11[%c0_34, %c0_35, %c12] : memref<2x8x32xf32, #tpu.memory_space<vmem>>, vector<2x8x4xf32>
    tpu.vector_store %arg11[%c0_34, %c0_35, %c12], %97 {strides = array<i32>} : memref<2x8x32xf32, #tpu.memory_space<vmem>>, vector<2x8x4xf32>,
    %99 = vector.extract_strided_slice %18 {offsets = [0, 0, 16], sizes = [2, 8, 4], strides = [1, 1, 1]} : vector<2x8x32xf32> to vector<2x8x4xf32>
    %100 = vector.extract_strided_slice %22 {offsets = [0, 0, 16], sizes = [2, 8, 4], strides = [1, 1, 1]} : vector<2x8x32xf32> to vector<2x8x4xf32>
    %101 = vector.extract_strided_slice %26 {offsets = [0, 0, 16], sizes = [2, 8, 4], strides = [1, 1, 1]} : vector<2x8x32xf32> to vector<2x8x4xf32>
    "tpu.trace_start"() <{level = 10 : i32, message = "bqd,bkd->bqk"}> : () -> ()
    %cst_36 = arith.constant dense<0.000000e+00> : vector<2x8x8xf32>
    %102 = tpu.matmul %99, %100, %cst_36 {dimension_numbers = #tpu.dot_dimension_numbers<[2], [2], [1], [1], [0, 0, 0, 1, 1, 1], [0], [0]>} : vector<2x8x4xf32>, vector<2x8x4xf32>, vector<2x8x8xf32> -> vector<2x8x8xf32>
    "tpu.trace_stop"() : () -> ()
    %cst_37 = arith.constant 5.000000e-01 : f32
    %103 = vector.broadcast %cst_37 : f32 to vector<2x8x8xf32>
    %104 = arith.mulf %102, %103 : vector<2x8x8xf32>
    %cst_38 = arith.constant dense<0xFF800000> : vector<2x8xf32>
    %105 = vector.multi_reduction <maximumf>, %104, %cst_38 [2] : vector<2x8x8xf32> to vector<2x8xf32>
    %106 = vector.shape_cast %105 : vector<2x8xf32> to vector<2x8x1xf32>
    %107 = vector.broadcast %106 : vector<2x8x1xf32> to vector<2x8x8xf32>
    %108 = arith.subf %104, %107 : vector<2x8x8xf32>
    %109 = math.exp %108 : vector<2x8x8xf32>
    %cst_39 = arith.constant dense<0.000000e+00> : vector<2x8xf32>
    %110 = vector.multi_reduction <add>, %109, %cst_39 [2] : vector<2x8x8xf32> to vector<2x8xf32>
    %111 = vector.shape_cast %110 : vector<2x8xf32> to vector<2x8x1xf32>
    %112 = tpu.reciprocal %111 {approx = true} : vector<2x8x1xf32> -> vector<2x8x1xf32>
    %113 = vector.broadcast %112 : vector<2x8x1xf32> to vector<2x8x8xf32>
    %114 = arith.mulf %109, %113 : vector<2x8x8xf32>
    "tpu.trace_start"() <{level = 10 : i32, message = "bqk,bkd->bqd"}> : () -> ()
    %cst_40 = arith.constant dense<0.000000e+00> : vector<2x8x4xf32>
    %115 = tpu.matmul %114, %101, %cst_40 {dimension_numbers = #tpu.dot_dimension_numbers<[2], [1], [1], [2], [0, 0, 0, 1, 1, 2], [0], [0]>} : vector<2x8x8xf32>, vector<2x8x4xf32>, vector<2x8x4xf32> -> vector<2x8x4xf32>
    "tpu.trace_stop"() : () -> ()
    %c0_41 = arith.constant 0 : index
    %c0_42 = arith.constant 0 : index
    %c16 = arith.constant 16 : index
    %116 = vector.load %arg11[%c0_41, %c0_42, %c16] : memref<2x8x32xf32, #tpu.memory_space<vmem>>, vector<2x8x4xf32>
    tpu.vector_store %arg11[%c0_41, %c0_42, %c16], %115 {strides = array<i32>} : memref<2x8x32xf32, #tpu.memory_space<vmem>>, vector<2x8x4xf32>,
    %117 = vector.extract_strided_slice %18 {offsets = [0, 0, 20], sizes = [2, 8, 4], strides = [1, 1, 1]} : vector<2x8x32xf32> to vector<2x8x4xf32>
    %118 = vector.extract_strided_slice %22 {offsets = [0, 0, 20], sizes = [2, 8, 4], strides = [1, 1, 1]} : vector<2x8x32xf32> to vector<2x8x4xf32>
    %119 = vector.extract_strided_slice %26 {offsets = [0, 0, 20], sizes = [2, 8, 4], strides = [1, 1, 1]} : vector<2x8x32xf32> to vector<2x8x4xf32>
    "tpu.trace_start"() <{level = 10 : i32, message = "bqd,bkd->bqk"}> : () -> ()
    %cst_43 = arith.constant dense<0.000000e+00> : vector<2x8x8xf32>
    %120 = tpu.matmul %117, %118, %cst_43 {dimension_numbers = #tpu.dot_dimension_numbers<[2], [2], [1], [1], [0, 0, 0, 1, 1, 1], [0], [0]>} : vector<2x8x4xf32>, vector<2x8x4xf32>, vector<2x8x8xf32> -> vector<2x8x8xf32>
    "tpu.trace_stop"() : () -> ()
    %cst_44 = arith.constant 5.000000e-01 : f32
    %121 = vector.broadcast %cst_44 : f32 to vector<2x8x8xf32>
    %122 = arith.mulf %120, %121 : vector<2x8x8xf32>
    %cst_45 = arith.constant dense<0xFF800000> : vector<2x8xf32>
    %123 = vector.multi_reduction <maximumf>, %122, %cst_45 [2] : vector<2x8x8xf32> to vector<2x8xf32>
    %124 = vector.shape_cast %123 : vector<2x8xf32> to vector<2x8x1xf32>
    %125 = vector.broadcast %124 : vector<2x8x1xf32> to vector<2x8x8xf32>
    %126 = arith.subf %122, %125 : vector<2x8x8xf32>
    %127 = math.exp %126 : vector<2x8x8xf32>
    %cst_46 = arith.constant dense<0.000000e+00> : vector<2x8xf32>
    %128 = vector.multi_reduction <add>, %127, %cst_46 [2] : vector<2x8x8xf32> to vector<2x8xf32>
    %129 = vector.shape_cast %128 : vector<2x8xf32> to vector<2x8x1xf32>
    %130 = tpu.reciprocal %129 {approx = true} : vector<2x8x1xf32> -> vector<2x8x1xf32>
    %131 = vector.broadcast %130 : vector<2x8x1xf32> to vector<2x8x8xf32>
    %132 = arith.mulf %127, %131 : vector<2x8x8xf32>
    "tpu.trace_start"() <{level = 10 : i32, message = "bqk,bkd->bqd"}> : () -> ()
    %cst_47 = arith.constant dense<0.000000e+00> : vector<2x8x4xf32>
    %133 = tpu.matmul %132, %119, %cst_47 {dimension_numbers = #tpu.dot_dimension_numbers<[2], [1], [1], [2], [0, 0, 0, 1, 1, 2], [0], [0]>} : vector<2x8x8xf32>, vector<2x8x4xf32>, vector<2x8x4xf32> -> vector<2x8x4xf32>
    "tpu.trace_stop"() : () -> ()
    %c0_48 = arith.constant 0 : index
    %c0_49 = arith.constant 0 : index
    %c20 = arith.constant 20 : index
    %134 = vector.load %arg11[%c0_48, %c0_49, %c20] : memref<2x8x32xf32, #tpu.memory_space<vmem>>, vector<2x8x4xf32>
    tpu.vector_store %arg11[%c0_48, %c0_49, %c20], %133 {strides = array<i32>} : memref<2x8x32xf32, #tpu.memory_space<vmem>>, vector<2x8x4xf32>,
    %135 = vector.extract_strided_slice %18 {offsets = [0, 0, 24], sizes = [2, 8, 4], strides = [1, 1, 1]} : vector<2x8x32xf32> to vector<2x8x4xf32>
    %136 = vector.extract_strided_slice %22 {offsets = [0, 0, 24], sizes = [2, 8, 4], strides = [1, 1, 1]} : vector<2x8x32xf32> to vector<2x8x4xf32>
    %137 = vector.extract_strided_slice %26 {offsets = [0, 0, 24], sizes = [2, 8, 4], strides = [1, 1, 1]} : vector<2x8x32xf32> to vector<2x8x4xf32>
    "tpu.trace_start"() <{level = 10 : i32, message = "bqd,bkd->bqk"}> : () -> ()
    %cst_50 = arith.constant dense<0.000000e+00> : vector<2x8x8xf32>
    %138 = tpu.matmul %135, %136, %cst_50 {dimension_numbers = #tpu.dot_dimension_numbers<[2], [2], [1], [1], [0, 0, 0, 1, 1, 1], [0], [0]>} : vector<2x8x4xf32>, vector<2x8x4xf32>, vector<2x8x8xf32> -> vector<2x8x8xf32>
    "tpu.trace_stop"() : () -> ()
    %cst_51 = arith.constant 5.000000e-01 : f32
    %139 = vector.broadcast %cst_51 : f32 to vector<2x8x8xf32>
    %140 = arith.mulf %138, %139 : vector<2x8x8xf32>
    %cst_52 = arith.constant dense<0xFF800000> : vector<2x8xf32>
    %141 = vector.multi_reduction <maximumf>, %140, %cst_52 [2] : vector<2x8x8xf32> to vector<2x8xf32>
    %142 = vector.shape_cast %141 : vector<2x8xf32> to vector<2x8x1xf32>
    %143 = vector.broadcast %142 : vector<2x8x1xf32> to vector<2x8x8xf32>
    %144 = arith.subf %140, %143 : vector<2x8x8xf32>
    %145 = math.exp %144 : vector<2x8x8xf32>
    %cst_53 = arith.constant dense<0.000000e+00> : vector<2x8xf32>
    %146 = vector.multi_reduction <add>, %145, %cst_53 [2] : vector<2x8x8xf32> to vector<2x8xf32>
    %147 = vector.shape_cast %146 : vector<2x8xf32> to vector<2x8x1xf32>
    %148 = tpu.reciprocal %147 {approx = true} : vector<2x8x1xf32> -> vector<2x8x1xf32>
    %149 = vector.broadcast %148 : vector<2x8x1xf32> to vector<2x8x8xf32>
    %150 = arith.mulf %145, %149 : vector<2x8x8xf32>
    "tpu.trace_start"() <{level = 10 : i32, message = "bqk,bkd->bqd"}> : () -> ()
    %cst_54 = arith.constant dense<0.000000e+00> : vector<2x8x4xf32>
    %151 = tpu.matmul %150, %137, %cst_54 {dimension_numbers = #tpu.dot_dimension_numbers<[2], [1], [1], [2], [0, 0, 0, 1, 1, 2], [0], [0]>} : vector<2x8x8xf32>, vector<2x8x4xf32>, vector<2x8x4xf32> -> vector<2x8x4xf32>
    "tpu.trace_stop"() : () -> ()
    %c0_55 = arith.constant 0 : index
    %c0_56 = arith.constant 0 : index
    %c24 = arith.constant 24 : index
    %152 = vector.load %arg11[%c0_55, %c0_56, %c24] : memref<2x8x32xf32, #tpu.memory_space<vmem>>, vector<2x8x4xf32>
    tpu.vector_store %arg11[%c0_55, %c0_56, %c24], %151 {strides = array<i32>} : memref<2x8x32xf32, #tpu.memory_space<vmem>>, vector<2x8x4xf32>,
    %153 = vector.extract_strided_slice %18 {offsets = [0, 0, 28], sizes = [2, 8, 4], strides = [1, 1, 1]} : vector<2x8x32xf32> to vector<2x8x4xf32>
    %154 = vector.extract_strided_slice %22 {offsets = [0, 0, 28], sizes = [2, 8, 4], strides = [1, 1, 1]} : vector<2x8x32xf32> to vector<2x8x4xf32>
    %155 = vector.extract_strided_slice %26 {offsets = [0, 0, 28], sizes = [2, 8, 4], strides = [1, 1, 1]} : vector<2x8x32xf32> to vector<2x8x4xf32>
    "tpu.trace_start"() <{level = 10 : i32, message = "bqd,bkd->bqk"}> : () -> ()
    %cst_57 = arith.constant dense<0.000000e+00> : vector<2x8x8xf32>
    %156 = tpu.matmul %153, %154, %cst_57 {dimension_numbers = #tpu.dot_dimension_numbers<[2], [2], [1], [1], [0, 0, 0, 1, 1, 1], [0], [0]>} : vector<2x8x4xf32>, vector<2x8x4xf32>, vector<2x8x8xf32> -> vector<2x8x8xf32>
    "tpu.trace_stop"() : () -> ()
    %cst_58 = arith.constant 5.000000e-01 : f32
    %157 = vector.broadcast %cst_58 : f32 to vector<2x8x8xf32>
    %158 = arith.mulf %156, %157 : vector<2x8x8xf32>
    %cst_59 = arith.constant dense<0xFF800000> : vector<2x8xf32>
    %159 = vector.multi_reduction <maximumf>, %158, %cst_59 [2] : vector<2x8x8xf32> to vector<2x8xf32>
    %160 = vector.shape_cast %159 : vector<2x8xf32> to vector<2x8x1xf32>
    %161 = vector.broadcast %160 : vector<2x8x1xf32> to vector<2x8x8xf32>
    %162 = arith.subf %158, %161 : vector<2x8x8xf32>
    %163 = math.exp %162 : vector<2x8x8xf32>
    %cst_60 = arith.constant dense<0.000000e+00> : vector<2x8xf32>
    %164 = vector.multi_reduction <add>, %163, %cst_60 [2] : vector<2x8x8xf32> to vector<2x8xf32>
    %165 = vector.shape_cast %164 : vector<2x8xf32> to vector<2x8x1xf32>
    %166 = tpu.reciprocal %165 {approx = true} : vector<2x8x1xf32> -> vector<2x8x1xf32>
    %167 = vector.broadcast %166 : vector<2x8x1xf32> to vector<2x8x8xf32>
    %168 = arith.mulf %163, %167 : vector<2x8x8xf32>
    "tpu.trace_start"() <{level = 10 : i32, message = "bqk,bkd->bqd"}> : () -> ()
    %cst_61 = arith.constant dense<0.000000e+00> : vector<2x8x4xf32>
    %169 = tpu.matmul %168, %155, %cst_61 {dimension_numbers = #tpu.dot_dimension_numbers<[2], [1], [1], [2], [0, 0, 0, 1, 1, 2], [0], [0]>} : vector<2x8x8xf32>, vector<2x8x4xf32>, vector<2x8x4xf32> -> vector<2x8x4xf32>
    "tpu.trace_stop"() : () -> ()
    %c0_62 = arith.constant 0 : index
    %c0_63 = arith.constant 0 : index
    %c28 = arith.constant 28 : index
    %170 = vector.load %arg11[%c0_62, %c0_63, %c28] : memref<2x8x32xf32, #tpu.memory_space<vmem>>, vector<2x8x4xf32>
    tpu.vector_store %arg11[%c0_62, %c0_63, %c28], %169 {strides = array<i32>} : memref<2x8x32xf32, #tpu.memory_space<vmem>>, vector<2x8x4xf32>,
    %c0_64 = arith.constant 0 : index
    %c0_65 = arith.constant 0 : index
    %c0_66 = arith.constant 0 : index
    %171 = vector.load %arg11[%c0_64, %c0_65, %c0_66] : memref<2x8x32xf32, #tpu.memory_space<vmem>>, vector<2x8x32xf32>
    %172 = vector.shape_cast %171 : vector<2x8x32xf32> to vector<16x32xf32>
    %c0_67 = arith.constant 0 : index
    %c0_68 = arith.constant 0 : index
    %c0_69 = arith.constant 0 : index
    %173 = vector.load %arg3[%c0_67, %c0_68, %c0_69] : memref<2x32x32xf32, #tpu.memory_space<vmem>>, vector<1x32x32xf32>
    %174 = vector.shape_cast %173 : vector<1x32x32xf32> to vector<32x32xf32>
    %cst_70 = arith.constant dense<0.000000e+00> : vector<16x32xf32>
    %175 = tpu.matmul %172, %174, %cst_70 {dimension_numbers = #tpu.dot_dimension_numbers<[1], [0], [0], [1], [0, 0, 1, 1], [], []>} : vector<16x32xf32>, vector<32x32xf32>, vector<16x32xf32> -> vector<16x32xf32>
    %176 = vector.broadcast %6 : vector<1x32xf32> to vector<16x32xf32>
    %177 = arith.addf %175, %176 : vector<16x32xf32>
    %178 = arith.addf %0, %177 : vector<16x32xf32>
    %cst_71 = arith.constant dense<0.000000e+00> : vector<16xf32>
    %179 = vector.multi_reduction <add>, %178, %cst_71 [1] : vector<16x32xf32> to vector<16xf32>
    %180 = vector.shape_cast %179 : vector<16xf32> to vector<16x1xf32>
    %cst_72 = arith.constant 3.200000e+01 : f32
    %181 = vector.broadcast %cst_72 : f32 to vector<16x1xf32>
    %182 = arith.divf %180, %181 : vector<16x1xf32>
    %183 = vector.broadcast %182 : vector<16x1xf32> to vector<16x32xf32>
    %184 = arith.subf %178, %183 : vector<16x32xf32>
    %185 = arith.mulf %184, %184 : vector<16x32xf32>
    %cst_73 = arith.constant dense<0.000000e+00> : vector<16xf32>
    %186 = vector.multi_reduction <add>, %185, %cst_73 [1] : vector<16x32xf32> to vector<16xf32>
    %187 = vector.shape_cast %186 : vector<16xf32> to vector<16x1xf32>
    %cst_74 = arith.constant 3.200000e+01 : f32
    %188 = vector.broadcast %cst_74 : f32 to vector<16x1xf32>
    %189 = arith.divf %187, %188 : vector<16x1xf32>
    %190 = vector.broadcast %182 : vector<16x1xf32> to vector<16x32xf32>
    %191 = arith.subf %178, %190 : vector<16x32xf32>
    %cst_75 = arith.constant 9.99999974E-6 : f32
    %192 = vector.broadcast %cst_75 : f32 to vector<16x1xf32>
    %193 = arith.addf %189, %192 : vector<16x1xf32>
    %194 = math.rsqrt %193 : vector<16x1xf32>
    %195 = vector.broadcast %194 : vector<16x1xf32> to vector<16x32xf32>
    %196 = arith.mulf %191, %195 : vector<16x32xf32>
    %197 = vector.broadcast %8 : vector<1x32xf32> to vector<16x32xf32>
    %198 = arith.mulf %196, %197 : vector<16x32xf32>
    %199 = vector.broadcast %9 : vector<1x32xf32> to vector<16x32xf32>
    %200 = arith.addf %198, %199 : vector<16x32xf32>
    %c0_76 = arith.constant 0 : index
    %c0_77 = arith.constant 0 : index
    %c0_78 = arith.constant 0 : index
    %201 = vector.load %arg4[%c0_76, %c0_77, %c0_78] : memref<2x32x2048xf32, #tpu.memory_space<vmem>>, vector<1x32x2048xf32>
    %202 = vector.shape_cast %201 : vector<1x32x2048xf32> to vector<32x2048xf32>
    %cst_79 = arith.constant dense<0.000000e+00> : vector<16x2048xf32>
    %203 = tpu.matmul %200, %202, %cst_79 {dimension_numbers = #tpu.dot_dimension_numbers<[1], [0], [0], [1], [0, 0, 1, 1], [], []>} : vector<16x32xf32>, vector<32x2048xf32>, vector<16x2048xf32> -> vector<16x2048xf32>
    %c0_80 = arith.constant 0 : index
    %c0_81 = arith.constant 0 : index
    %c0_82 = arith.constant 0 : index
    %204 = vector.load %arg5[%c0_80, %c0_81, %c0_82] : memref<2x1x2048xf32, #tpu.memory_space<vmem>>, vector<1x1x2048xf32>
    %205 = vector.shape_cast %204 : vector<1x1x2048xf32> to vector<1x2048xf32>
    %206 = vector.broadcast %205 : vector<1x2048xf32> to vector<16x2048xf32>
    %207 = arith.addf %203, %206 : vector<16x2048xf32>
    %cst_83 = arith.constant 0.000000e+00 : f32
    %208 = vector.broadcast %cst_83 : f32 to vector<16x2048xf32>
    %209 = arith.maximumf %207, %208 : vector<16x2048xf32>
    %c0_84 = arith.constant 0 : index
    %c0_85 = arith.constant 0 : index
    %c0_86 = arith.constant 0 : index
    %210 = vector.load %arg6[%c0_84, %c0_85, %c0_86] : memref<2x2048x32xf32, #tpu.memory_space<vmem>>, vector<1x2048x32xf32>
    %211 = vector.shape_cast %210 : vector<1x2048x32xf32> to vector<2048x32xf32>
    %cst_87 = arith.constant dense<0.000000e+00> : vector<16x32xf32>
    %212 = tpu.matmul %209, %211, %cst_87 {dimension_numbers = #tpu.dot_dimension_numbers<[1], [0], [0], [1], [0, 0, 1, 1], [], []>} : vector<16x2048xf32>, vector<2048x32xf32>, vector<16x32xf32> -> vector<16x32xf32>
    %213 = vector.broadcast %7 : vector<1x32xf32> to vector<16x32xf32>
    %214 = arith.addf %212, %213 : vector<16x32xf32>
    %215 = arith.addf %200, %214 : vector<16x32xf32>
    %cst_88 = arith.constant dense<0.000000e+00> : vector<16xf32>
    %216 = vector.multi_reduction <add>, %215, %cst_88 [1] : vector<16x32xf32> to vector<16xf32>
    %217 = vector.shape_cast %216 : vector<16xf32> to vector<16x1xf32>
    %cst_89 = arith.constant 3.200000e+01 : f32
    %218 = vector.broadcast %cst_89 : f32 to vector<16x1xf32>
    %219 = arith.divf %217, %218 : vector<16x1xf32>
    %220 = vector.broadcast %219 : vector<16x1xf32> to vector<16x32xf32>
    %221 = arith.subf %215, %220 : vector<16x32xf32>
    %222 = arith.mulf %221, %221 : vector<16x32xf32>
    %cst_90 = arith.constant dense<0.000000e+00> : vector<16xf32>
    %223 = vector.multi_reduction <add>, %222, %cst_90 [1] : vector<16x32xf32> to vector<16xf32>
    %224 = vector.shape_cast %223 : vector<16xf32> to vector<16x1xf32>
    %cst_91 = arith.constant 3.200000e+01 : f32
    %225 = vector.broadcast %cst_91 : f32 to vector<16x1xf32>
    %226 = arith.divf %224, %225 : vector<16x1xf32>
    %227 = vector.broadcast %219 : vector<16x1xf32> to vector<16x32xf32>
    %228 = arith.subf %215, %227 : vector<16x32xf32>
    %cst_92 = arith.constant 9.99999974E-6 : f32
    %229 = vector.broadcast %cst_92 : f32 to vector<16x1xf32>
    %230 = arith.addf %226, %229 : vector<16x1xf32>
    %231 = math.rsqrt %230 : vector<16x1xf32>
    %232 = vector.broadcast %231 : vector<16x1xf32> to vector<16x32xf32>
    %233 = arith.mulf %228, %232 : vector<16x32xf32>
    %234 = vector.broadcast %10 : vector<1x32xf32> to vector<16x32xf32>
    %235 = arith.mulf %233, %234 : vector<16x32xf32>
    %236 = vector.broadcast %11 : vector<1x32xf32> to vector<16x32xf32>
    %237 = arith.addf %235, %236 : vector<16x32xf32>
    %c1 = arith.constant 1 : index
    %c0_93 = arith.constant 0 : index
    %c0_94 = arith.constant 0 : index
    %238 = vector.load %arg7[%c1, %c0_93, %c0_94] : memref<2x9x32xf32, #tpu.memory_space<vmem>>, vector<1x9x32xf32>
    %239 = vector.shape_cast %238 : vector<1x9x32xf32> to vector<9x32xf32>
    %240 = vector.extract_strided_slice %239 {offsets = [0, 0], sizes = [1, 32], strides = [1, 1]} : vector<9x32xf32> to vector<1x32xf32>
    %241 = vector.extract_strided_slice %239 {offsets = [1, 0], sizes = [1, 32], strides = [1, 1]} : vector<9x32xf32> to vector<1x32xf32>
    %242 = vector.extract_strided_slice %239 {offsets = [2, 0], sizes = [1, 32], strides = [1, 1]} : vector<9x32xf32> to vector<1x32xf32>
    %243 = vector.extract_strided_slice %239 {offsets = [3, 0], sizes = [1, 32], strides = [1, 1]} : vector<9x32xf32> to vector<1x32xf32>
    %244 = vector.extract_strided_slice %239 {offsets = [4, 0], sizes = [1, 32], strides = [1, 1]} : vector<9x32xf32> to vector<1x32xf32>
    %245 = vector.extract_strided_slice %239 {offsets = [5, 0], sizes = [1, 32], strides = [1, 1]} : vector<9x32xf32> to vector<1x32xf32>
    %246 = vector.extract_strided_slice %239 {offsets = [6, 0], sizes = [1, 32], strides = [1, 1]} : vector<9x32xf32> to vector<1x32xf32>
    %247 = vector.extract_strided_slice %239 {offsets = [7, 0], sizes = [1, 32], strides = [1, 1]} : vector<9x32xf32> to vector<1x32xf32>
    %248 = vector.extract_strided_slice %239 {offsets = [8, 0], sizes = [1, 32], strides = [1, 1]} : vector<9x32xf32> to vector<1x32xf32>
    %c1_95 = arith.constant 1 : index
    %c0_96 = arith.constant 0 : index
    %c0_97 = arith.constant 0 : index
    %249 = vector.load %arg2[%c1_95, %c0_96, %c0_97] : memref<2x32x96xf32, #tpu.memory_space<vmem>>, vector<1x32x96xf32>
    %250 = vector.shape_cast %249 : vector<1x32x96xf32> to vector<32x96xf32>
    %cst_98 = arith.constant dense<0.000000e+00> : vector<16x96xf32>
    %251 = tpu.matmul %237, %250, %cst_98 {dimension_numbers = #tpu.dot_dimension_numbers<[1], [0], [0], [1], [0, 0, 1, 1], [], []>} : vector<16x32xf32>, vector<32x96xf32>, vector<16x96xf32> -> vector<16x96xf32>
    %252 = vector.extract_strided_slice %251 {offsets = [0, 0], sizes = [16, 32], strides = [1, 1]} : vector<16x96xf32> to vector<16x32xf32>
    %253 = vector.broadcast %240 : vector<1x32xf32> to vector<16x32xf32>
    %254 = arith.addf %252, %253 : vector<16x32xf32>
    %255 = vector.shape_cast %254 : vector<16x32xf32> to vector<2x8x32xf32>
    %256 = vector.extract_strided_slice %251 {offsets = [0, 32], sizes = [16, 32], strides = [1, 1]} : vector<16x96xf32> to vector<16x32xf32>
    %257 = vector.broadcast %241 : vector<1x32xf32> to vector<16x32xf32>
    %258 = arith.addf %256, %257 : vector<16x32xf32>
    %259 = vector.shape_cast %258 : vector<16x32xf32> to vector<2x8x32xf32>
    %260 = vector.extract_strided_slice %251 {offsets = [0, 64], sizes = [16, 32], strides = [1, 1]} : vector<16x96xf32> to vector<16x32xf32>
    %261 = vector.broadcast %242 : vector<1x32xf32> to vector<16x32xf32>
    %262 = arith.addf %260, %261 : vector<16x32xf32>
    %263 = vector.shape_cast %262 : vector<16x32xf32> to vector<2x8x32xf32>
    %264 = vector.extract_strided_slice %255 {offsets = [0, 0, 0], sizes = [2, 8, 4], strides = [1, 1, 1]} : vector<2x8x32xf32> to vector<2x8x4xf32>
    %265 = vector.extract_strided_slice %259 {offsets = [0, 0, 0], sizes = [2, 8, 4], strides = [1, 1, 1]} : vector<2x8x32xf32> to vector<2x8x4xf32>
    %266 = vector.extract_strided_slice %263 {offsets = [0, 0, 0], sizes = [2, 8, 4], strides = [1, 1, 1]} : vector<2x8x32xf32> to vector<2x8x4xf32>
    "tpu.trace_start"() <{level = 10 : i32, message = "bqd,bkd->bqk"}> : () -> ()
    %cst_99 = arith.constant dense<0.000000e+00> : vector<2x8x8xf32>
    %267 = tpu.matmul %264, %265, %cst_99 {dimension_numbers = #tpu.dot_dimension_numbers<[2], [2], [1], [1], [0, 0, 0, 1, 1, 1], [0], [0]>} : vector<2x8x4xf32>, vector<2x8x4xf32>, vector<2x8x8xf32> -> vector<2x8x8xf32>
    "tpu.trace_stop"() : () -> ()
    %cst_100 = arith.constant 5.000000e-01 : f32
    %268 = vector.broadcast %cst_100 : f32 to vector<2x8x8xf32>
    %269 = arith.mulf %267, %268 : vector<2x8x8xf32>
    %cst_101 = arith.constant dense<0xFF800000> : vector<2x8xf32>
    %270 = vector.multi_reduction <maximumf>, %269, %cst_101 [2] : vector<2x8x8xf32> to vector<2x8xf32>
    %271 = vector.shape_cast %270 : vector<2x8xf32> to vector<2x8x1xf32>
    %272 = vector.broadcast %271 : vector<2x8x1xf32> to vector<2x8x8xf32>
    %273 = arith.subf %269, %272 : vector<2x8x8xf32>
    %274 = math.exp %273 : vector<2x8x8xf32>
    %cst_102 = arith.constant dense<0.000000e+00> : vector<2x8xf32>
    %275 = vector.multi_reduction <add>, %274, %cst_102 [2] : vector<2x8x8xf32> to vector<2x8xf32>
    %276 = vector.shape_cast %275 : vector<2x8xf32> to vector<2x8x1xf32>
    %277 = tpu.reciprocal %276 {approx = true} : vector<2x8x1xf32> -> vector<2x8x1xf32>
    %278 = vector.broadcast %277 : vector<2x8x1xf32> to vector<2x8x8xf32>
    %279 = arith.mulf %274, %278 : vector<2x8x8xf32>
    "tpu.trace_start"() <{level = 10 : i32, message = "bqk,bkd->bqd"}> : () -> ()
    %cst_103 = arith.constant dense<0.000000e+00> : vector<2x8x4xf32>
    %280 = tpu.matmul %279, %266, %cst_103 {dimension_numbers = #tpu.dot_dimension_numbers<[2], [1], [1], [2], [0, 0, 0, 1, 1, 2], [0], [0]>} : vector<2x8x8xf32>, vector<2x8x4xf32>, vector<2x8x4xf32> -> vector<2x8x4xf32>
    "tpu.trace_stop"() : () -> ()
    %c0_104 = arith.constant 0 : index
    %c0_105 = arith.constant 0 : index
    %c0_106 = arith.constant 0 : index
    %281 = vector.load %arg11[%c0_104, %c0_105, %c0_106] : memref<2x8x32xf32, #tpu.memory_space<vmem>>, vector<2x8x4xf32>
    tpu.vector_store %arg11[%c0_104, %c0_105, %c0_106], %280 {strides = array<i32>} : memref<2x8x32xf32, #tpu.memory_space<vmem>>, vector<2x8x4xf32>,
    %282 = vector.extract_strided_slice %255 {offsets = [0, 0, 4], sizes = [2, 8, 4], strides = [1, 1, 1]} : vector<2x8x32xf32> to vector<2x8x4xf32>
    %283 = vector.extract_strided_slice %259 {offsets = [0, 0, 4], sizes = [2, 8, 4], strides = [1, 1, 1]} : vector<2x8x32xf32> to vector<2x8x4xf32>
    %284 = vector.extract_strided_slice %263 {offsets = [0, 0, 4], sizes = [2, 8, 4], strides = [1, 1, 1]} : vector<2x8x32xf32> to vector<2x8x4xf32>
    "tpu.trace_start"() <{level = 10 : i32, message = "bqd,bkd->bqk"}> : () -> ()
    %cst_107 = arith.constant dense<0.000000e+00> : vector<2x8x8xf32>
    %285 = tpu.matmul %282, %283, %cst_107 {dimension_numbers = #tpu.dot_dimension_numbers<[2], [2], [1], [1], [0, 0, 0, 1, 1, 1], [0], [0]>} : vector<2x8x4xf32>, vector<2x8x4xf32>, vector<2x8x8xf32> -> vector<2x8x8xf32>
    "tpu.trace_stop"() : () -> ()
    %cst_108 = arith.constant 5.000000e-01 : f32
    %286 = vector.broadcast %cst_108 : f32 to vector<2x8x8xf32>
    %287 = arith.mulf %285, %286 : vector<2x8x8xf32>
    %cst_109 = arith.constant dense<0xFF800000> : vector<2x8xf32>
    %288 = vector.multi_reduction <maximumf>, %287, %cst_109 [2] : vector<2x8x8xf32> to vector<2x8xf32>
    %289 = vector.shape_cast %288 : vector<2x8xf32> to vector<2x8x1xf32>
    %290 = vector.broadcast %289 : vector<2x8x1xf32> to vector<2x8x8xf32>
    %291 = arith.subf %287, %290 : vector<2x8x8xf32>
    %292 = math.exp %291 : vector<2x8x8xf32>
    %cst_110 = arith.constant dense<0.000000e+00> : vector<2x8xf32>
    %293 = vector.multi_reduction <add>, %292, %cst_110 [2] : vector<2x8x8xf32> to vector<2x8xf32>
    %294 = vector.shape_cast %293 : vector<2x8xf32> to vector<2x8x1xf32>
    %295 = tpu.reciprocal %294 {approx = true} : vector<2x8x1xf32> -> vector<2x8x1xf32>
    %296 = vector.broadcast %295 : vector<2x8x1xf32> to vector<2x8x8xf32>
    %297 = arith.mulf %292, %296 : vector<2x8x8xf32>
    "tpu.trace_start"() <{level = 10 : i32, message = "bqk,bkd->bqd"}> : () -> ()
    %cst_111 = arith.constant dense<0.000000e+00> : vector<2x8x4xf32>
    %298 = tpu.matmul %297, %284, %cst_111 {dimension_numbers = #tpu.dot_dimension_numbers<[2], [1], [1], [2], [0, 0, 0, 1, 1, 2], [0], [0]>} : vector<2x8x8xf32>, vector<2x8x4xf32>, vector<2x8x4xf32> -> vector<2x8x4xf32>
    "tpu.trace_stop"() : () -> ()
    %c0_112 = arith.constant 0 : index
    %c0_113 = arith.constant 0 : index
    %c4_114 = arith.constant 4 : index
    %299 = vector.load %arg11[%c0_112, %c0_113, %c4_114] : memref<2x8x32xf32, #tpu.memory_space<vmem>>, vector<2x8x4xf32>
    tpu.vector_store %arg11[%c0_112, %c0_113, %c4_114], %298 {strides = array<i32>} : memref<2x8x32xf32, #tpu.memory_space<vmem>>, vector<2x8x4xf32>,
    %300 = vector.extract_strided_slice %255 {offsets = [0, 0, 8], sizes = [2, 8, 4], strides = [1, 1, 1]} : vector<2x8x32xf32> to vector<2x8x4xf32>
    %301 = vector.extract_strided_slice %259 {offsets = [0, 0, 8], sizes = [2, 8, 4], strides = [1, 1, 1]} : vector<2x8x32xf32> to vector<2x8x4xf32>
    %302 = vector.extract_strided_slice %263 {offsets = [0, 0, 8], sizes = [2, 8, 4], strides = [1, 1, 1]} : vector<2x8x32xf32> to vector<2x8x4xf32>
    "tpu.trace_start"() <{level = 10 : i32, message = "bqd,bkd->bqk"}> : () -> ()
    %cst_115 = arith.constant dense<0.000000e+00> : vector<2x8x8xf32>
    %303 = tpu.matmul %300, %301, %cst_115 {dimension_numbers = #tpu.dot_dimension_numbers<[2], [2], [1], [1], [0, 0, 0, 1, 1, 1], [0], [0]>} : vector<2x8x4xf32>, vector<2x8x4xf32>, vector<2x8x8xf32> -> vector<2x8x8xf32>
    "tpu.trace_stop"() : () -> ()
    %cst_116 = arith.constant 5.000000e-01 : f32
    %304 = vector.broadcast %cst_116 : f32 to vector<2x8x8xf32>
    %305 = arith.mulf %303, %304 : vector<2x8x8xf32>
    %cst_117 = arith.constant dense<0xFF800000> : vector<2x8xf32>
    %306 = vector.multi_reduction <maximumf>, %305, %cst_117 [2] : vector<2x8x8xf32> to vector<2x8xf32>
    %307 = vector.shape_cast %306 : vector<2x8xf32> to vector<2x8x1xf32>
    %308 = vector.broadcast %307 : vector<2x8x1xf32> to vector<2x8x8xf32>
    %309 = arith.subf %305, %308 : vector<2x8x8xf32>
    %310 = math.exp %309 : vector<2x8x8xf32>
    %cst_118 = arith.constant dense<0.000000e+00> : vector<2x8xf32>
    %311 = vector.multi_reduction <add>, %310, %cst_118 [2] : vector<2x8x8xf32> to vector<2x8xf32>
    %312 = vector.shape_cast %311 : vector<2x8xf32> to vector<2x8x1xf32>
    %313 = tpu.reciprocal %312 {approx = true} : vector<2x8x1xf32> -> vector<2x8x1xf32>
    %314 = vector.broadcast %313 : vector<2x8x1xf32> to vector<2x8x8xf32>
    %315 = arith.mulf %310, %314 : vector<2x8x8xf32>
    "tpu.trace_start"() <{level = 10 : i32, message = "bqk,bkd->bqd"}> : () -> ()
    %cst_119 = arith.constant dense<0.000000e+00> : vector<2x8x4xf32>
    %316 = tpu.matmul %315, %302, %cst_119 {dimension_numbers = #tpu.dot_dimension_numbers<[2], [1], [1], [2], [0, 0, 0, 1, 1, 2], [0], [0]>} : vector<2x8x8xf32>, vector<2x8x4xf32>, vector<2x8x4xf32> -> vector<2x8x4xf32>
    "tpu.trace_stop"() : () -> ()
    %c0_120 = arith.constant 0 : index
    %c0_121 = arith.constant 0 : index
    %c8_122 = arith.constant 8 : index
    %317 = vector.load %arg11[%c0_120, %c0_121, %c8_122] : memref<2x8x32xf32, #tpu.memory_space<vmem>>, vector<2x8x4xf32>
    tpu.vector_store %arg11[%c0_120, %c0_121, %c8_122], %316 {strides = array<i32>} : memref<2x8x32xf32, #tpu.memory_space<vmem>>, vector<2x8x4xf32>,
    %318 = vector.extract_strided_slice %255 {offsets = [0, 0, 12], sizes = [2, 8, 4], strides = [1, 1, 1]} : vector<2x8x32xf32> to vector<2x8x4xf32>
    %319 = vector.extract_strided_slice %259 {offsets = [0, 0, 12], sizes = [2, 8, 4], strides = [1, 1, 1]} : vector<2x8x32xf32> to vector<2x8x4xf32>
    %320 = vector.extract_strided_slice %263 {offsets = [0, 0, 12], sizes = [2, 8, 4], strides = [1, 1, 1]} : vector<2x8x32xf32> to vector<2x8x4xf32>
    "tpu.trace_start"() <{level = 10 : i32, message = "bqd,bkd->bqk"}> : () -> ()
    %cst_123 = arith.constant dense<0.000000e+00> : vector<2x8x8xf32>
    %321 = tpu.matmul %318, %319, %cst_123 {dimension_numbers = #tpu.dot_dimension_numbers<[2], [2], [1], [1], [0, 0, 0, 1, 1, 1], [0], [0]>} : vector<2x8x4xf32>, vector<2x8x4xf32>, vector<2x8x8xf32> -> vector<2x8x8xf32>
    "tpu.trace_stop"() : () -> ()
    %cst_124 = arith.constant 5.000000e-01 : f32
    %322 = vector.broadcast %cst_124 : f32 to vector<2x8x8xf32>
    %323 = arith.mulf %321, %322 : vector<2x8x8xf32>
    %cst_125 = arith.constant dense<0xFF800000> : vector<2x8xf32>
    %324 = vector.multi_reduction <maximumf>, %323, %cst_125 [2] : vector<2x8x8xf32> to vector<2x8xf32>
    %325 = vector.shape_cast %324 : vector<2x8xf32> to vector<2x8x1xf32>
    %326 = vector.broadcast %325 : vector<2x8x1xf32> to vector<2x8x8xf32>
    %327 = arith.subf %323, %326 : vector<2x8x8xf32>
    %328 = math.exp %327 : vector<2x8x8xf32>
    %cst_126 = arith.constant dense<0.000000e+00> : vector<2x8xf32>
    %329 = vector.multi_reduction <add>, %328, %cst_126 [2] : vector<2x8x8xf32> to vector<2x8xf32>
    %330 = vector.shape_cast %329 : vector<2x8xf32> to vector<2x8x1xf32>
    %331 = tpu.reciprocal %330 {approx = true} : vector<2x8x1xf32> -> vector<2x8x1xf32>
    %332 = vector.broadcast %331 : vector<2x8x1xf32> to vector<2x8x8xf32>
    %333 = arith.mulf %328, %332 : vector<2x8x8xf32>
    "tpu.trace_start"() <{level = 10 : i32, message = "bqk,bkd->bqd"}> : () -> ()
    %cst_127 = arith.constant dense<0.000000e+00> : vector<2x8x4xf32>
    %334 = tpu.matmul %333, %320, %cst_127 {dimension_numbers = #tpu.dot_dimension_numbers<[2], [1], [1], [2], [0, 0, 0, 1, 1, 2], [0], [0]>} : vector<2x8x8xf32>, vector<2x8x4xf32>, vector<2x8x4xf32> -> vector<2x8x4xf32>
    "tpu.trace_stop"() : () -> ()
    %c0_128 = arith.constant 0 : index
    %c0_129 = arith.constant 0 : index
    %c12_130 = arith.constant 12 : index
    %335 = vector.load %arg11[%c0_128, %c0_129, %c12_130] : memref<2x8x32xf32, #tpu.memory_space<vmem>>, vector<2x8x4xf32>
    tpu.vector_store %arg11[%c0_128, %c0_129, %c12_130], %334 {strides = array<i32>} : memref<2x8x32xf32, #tpu.memory_space<vmem>>, vector<2x8x4xf32>,
    %336 = vector.extract_strided_slice %255 {offsets = [0, 0, 16], sizes = [2, 8, 4], strides = [1, 1, 1]} : vector<2x8x32xf32> to vector<2x8x4xf32>
    %337 = vector.extract_strided_slice %259 {offsets = [0, 0, 16], sizes = [2, 8, 4], strides = [1, 1, 1]} : vector<2x8x32xf32> to vector<2x8x4xf32>
    %338 = vector.extract_strided_slice %263 {offsets = [0, 0, 16], sizes = [2, 8, 4], strides = [1, 1, 1]} : vector<2x8x32xf32> to vector<2x8x4xf32>
    "tpu.trace_start"() <{level = 10 : i32, message = "bqd,bkd->bqk"}> : () -> ()
    %cst_131 = arith.constant dense<0.000000e+00> : vector<2x8x8xf32>
    %339 = tpu.matmul %336, %337, %cst_131 {dimension_numbers = #tpu.dot_dimension_numbers<[2], [2], [1], [1], [0, 0, 0, 1, 1, 1], [0], [0]>} : vector<2x8x4xf32>, vector<2x8x4xf32>, vector<2x8x8xf32> -> vector<2x8x8xf32>
    "tpu.trace_stop"() : () -> ()
    %cst_132 = arith.constant 5.000000e-01 : f32
    %340 = vector.broadcast %cst_132 : f32 to vector<2x8x8xf32>
    %341 = arith.mulf %339, %340 : vector<2x8x8xf32>
    %cst_133 = arith.constant dense<0xFF800000> : vector<2x8xf32>
    %342 = vector.multi_reduction <maximumf>, %341, %cst_133 [2] : vector<2x8x8xf32> to vector<2x8xf32>
    %343 = vector.shape_cast %342 : vector<2x8xf32> to vector<2x8x1xf32>
    %344 = vector.broadcast %343 : vector<2x8x1xf32> to vector<2x8x8xf32>
    %345 = arith.subf %341, %344 : vector<2x8x8xf32>
    %346 = math.exp %345 : vector<2x8x8xf32>
    %cst_134 = arith.constant dense<0.000000e+00> : vector<2x8xf32>
    %347 = vector.multi_reduction <add>, %346, %cst_134 [2] : vector<2x8x8xf32> to vector<2x8xf32>
    %348 = vector.shape_cast %347 : vector<2x8xf32> to vector<2x8x1xf32>
    %349 = tpu.reciprocal %348 {approx = true} : vector<2x8x1xf32> -> vector<2x8x1xf32>
    %350 = vector.broadcast %349 : vector<2x8x1xf32> to vector<2x8x8xf32>
    %351 = arith.mulf %346, %350 : vector<2x8x8xf32>
    "tpu.trace_start"() <{level = 10 : i32, message = "bqk,bkd->bqd"}> : () -> ()
    %cst_135 = arith.constant dense<0.000000e+00> : vector<2x8x4xf32>
    %352 = tpu.matmul %351, %338, %cst_135 {dimension_numbers = #tpu.dot_dimension_numbers<[2], [1], [1], [2], [0, 0, 0, 1, 1, 2], [0], [0]>} : vector<2x8x8xf32>, vector<2x8x4xf32>, vector<2x8x4xf32> -> vector<2x8x4xf32>
    "tpu.trace_stop"() : () -> ()
    %c0_136 = arith.constant 0 : index
    %c0_137 = arith.constant 0 : index
    %c16_138 = arith.constant 16 : index
    %353 = vector.load %arg11[%c0_136, %c0_137, %c16_138] : memref<2x8x32xf32, #tpu.memory_space<vmem>>, vector<2x8x4xf32>
    tpu.vector_store %arg11[%c0_136, %c0_137, %c16_138], %352 {strides = array<i32>} : memref<2x8x32xf32, #tpu.memory_space<vmem>>, vector<2x8x4xf32>,
    %354 = vector.extract_strided_slice %255 {offsets = [0, 0, 20], sizes = [2, 8, 4], strides = [1, 1, 1]} : vector<2x8x32xf32> to vector<2x8x4xf32>
    %355 = vector.extract_strided_slice %259 {offsets = [0, 0, 20], sizes = [2, 8, 4], strides = [1, 1, 1]} : vector<2x8x32xf32> to vector<2x8x4xf32>
    %356 = vector.extract_strided_slice %263 {offsets = [0, 0, 20], sizes = [2, 8, 4], strides = [1, 1, 1]} : vector<2x8x32xf32> to vector<2x8x4xf32>
    "tpu.trace_start"() <{level = 10 : i32, message = "bqd,bkd->bqk"}> : () -> ()
    %cst_139 = arith.constant dense<0.000000e+00> : vector<2x8x8xf32>
    %357 = tpu.matmul %354, %355, %cst_139 {dimension_numbers = #tpu.dot_dimension_numbers<[2], [2], [1], [1], [0, 0, 0, 1, 1, 1], [0], [0]>} : vector<2x8x4xf32>, vector<2x8x4xf32>, vector<2x8x8xf32> -> vector<2x8x8xf32>
    "tpu.trace_stop"() : () -> ()
    %cst_140 = arith.constant 5.000000e-01 : f32
    %358 = vector.broadcast %cst_140 : f32 to vector<2x8x8xf32>
    %359 = arith.mulf %357, %358 : vector<2x8x8xf32>
    %cst_141 = arith.constant dense<0xFF800000> : vector<2x8xf32>
    %360 = vector.multi_reduction <maximumf>, %359, %cst_141 [2] : vector<2x8x8xf32> to vector<2x8xf32>
    %361 = vector.shape_cast %360 : vector<2x8xf32> to vector<2x8x1xf32>
    %362 = vector.broadcast %361 : vector<2x8x1xf32> to vector<2x8x8xf32>
    %363 = arith.subf %359, %362 : vector<2x8x8xf32>
    %364 = math.exp %363 : vector<2x8x8xf32>
    %cst_142 = arith.constant dense<0.000000e+00> : vector<2x8xf32>
    %365 = vector.multi_reduction <add>, %364, %cst_142 [2] : vector<2x8x8xf32> to vector<2x8xf32>
    %366 = vector.shape_cast %365 : vector<2x8xf32> to vector<2x8x1xf32>
    %367 = tpu.reciprocal %366 {approx = true} : vector<2x8x1xf32> -> vector<2x8x1xf32>
    %368 = vector.broadcast %367 : vector<2x8x1xf32> to vector<2x8x8xf32>
    %369 = arith.mulf %364, %368 : vector<2x8x8xf32>
    "tpu.trace_start"() <{level = 10 : i32, message = "bqk,bkd->bqd"}> : () -> ()
    %cst_143 = arith.constant dense<0.000000e+00> : vector<2x8x4xf32>
    %370 = tpu.matmul %369, %356, %cst_143 {dimension_numbers = #tpu.dot_dimension_numbers<[2], [1], [1], [2], [0, 0, 0, 1, 1, 2], [0], [0]>} : vector<2x8x8xf32>, vector<2x8x4xf32>, vector<2x8x4xf32> -> vector<2x8x4xf32>
    "tpu.trace_stop"() : () -> ()
    %c0_144 = arith.constant 0 : index
    %c0_145 = arith.constant 0 : index
    %c20_146 = arith.constant 20 : index
    %371 = vector.load %arg11[%c0_144, %c0_145, %c20_146] : memref<2x8x32xf32, #tpu.memory_space<vmem>>, vector<2x8x4xf32>
    tpu.vector_store %arg11[%c0_144, %c0_145, %c20_146], %370 {strides = array<i32>} : memref<2x8x32xf32, #tpu.memory_space<vmem>>, vector<2x8x4xf32>,
    %372 = vector.extract_strided_slice %255 {offsets = [0, 0, 24], sizes = [2, 8, 4], strides = [1, 1, 1]} : vector<2x8x32xf32> to vector<2x8x4xf32>
    %373 = vector.extract_strided_slice %259 {offsets = [0, 0, 24], sizes = [2, 8, 4], strides = [1, 1, 1]} : vector<2x8x32xf32> to vector<2x8x4xf32>
    %374 = vector.extract_strided_slice %263 {offsets = [0, 0, 24], sizes = [2, 8, 4], strides = [1, 1, 1]} : vector<2x8x32xf32> to vector<2x8x4xf32>
    "tpu.trace_start"() <{level = 10 : i32, message = "bqd,bkd->bqk"}> : () -> ()
    %cst_147 = arith.constant dense<0.000000e+00> : vector<2x8x8xf32>
    %375 = tpu.matmul %372, %373, %cst_147 {dimension_numbers = #tpu.dot_dimension_numbers<[2], [2], [1], [1], [0, 0, 0, 1, 1, 1], [0], [0]>} : vector<2x8x4xf32>, vector<2x8x4xf32>, vector<2x8x8xf32> -> vector<2x8x8xf32>
    "tpu.trace_stop"() : () -> ()
    %cst_148 = arith.constant 5.000000e-01 : f32
    %376 = vector.broadcast %cst_148 : f32 to vector<2x8x8xf32>
    %377 = arith.mulf %375, %376 : vector<2x8x8xf32>
    %cst_149 = arith.constant dense<0xFF800000> : vector<2x8xf32>
    %378 = vector.multi_reduction <maximumf>, %377, %cst_149 [2] : vector<2x8x8xf32> to vector<2x8xf32>
    %379 = vector.shape_cast %378 : vector<2x8xf32> to vector<2x8x1xf32>
    %380 = vector.broadcast %379 : vector<2x8x1xf32> to vector<2x8x8xf32>
    %381 = arith.subf %377, %380 : vector<2x8x8xf32>
    %382 = math.exp %381 : vector<2x8x8xf32>
    %cst_150 = arith.constant dense<0.000000e+00> : vector<2x8xf32>
    %383 = vector.multi_reduction <add>, %382, %cst_150 [2] : vector<2x8x8xf32> to vector<2x8xf32>
    %384 = vector.shape_cast %383 : vector<2x8xf32> to vector<2x8x1xf32>
    %385 = tpu.reciprocal %384 {approx = true} : vector<2x8x1xf32> -> vector<2x8x1xf32>
    %386 = vector.broadcast %385 : vector<2x8x1xf32> to vector<2x8x8xf32>
    %387 = arith.mulf %382, %386 : vector<2x8x8xf32>
    "tpu.trace_start"() <{level = 10 : i32, message = "bqk,bkd->bqd"}> : () -> ()
    %cst_151 = arith.constant dense<0.000000e+00> : vector<2x8x4xf32>
    %388 = tpu.matmul %387, %374, %cst_151 {dimension_numbers = #tpu.dot_dimension_numbers<[2], [1], [1], [2], [0, 0, 0, 1, 1, 2], [0], [0]>} : vector<2x8x8xf32>, vector<2x8x4xf32>, vector<2x8x4xf32> -> vector<2x8x4xf32>
    "tpu.trace_stop"() : () -> ()
    %c0_152 = arith.constant 0 : index
    %c0_153 = arith.constant 0 : index
    %c24_154 = arith.constant 24 : index
    %389 = vector.load %arg11[%c0_152, %c0_153, %c24_154] : memref<2x8x32xf32, #tpu.memory_space<vmem>>, vector<2x8x4xf32>
    tpu.vector_store %arg11[%c0_152, %c0_153, %c24_154], %388 {strides = array<i32>} : memref<2x8x32xf32, #tpu.memory_space<vmem>>, vector<2x8x4xf32>,
    %390 = vector.extract_strided_slice %255 {offsets = [0, 0, 28], sizes = [2, 8, 4], strides = [1, 1, 1]} : vector<2x8x32xf32> to vector<2x8x4xf32>
    %391 = vector.extract_strided_slice %259 {offsets = [0, 0, 28], sizes = [2, 8, 4], strides = [1, 1, 1]} : vector<2x8x32xf32> to vector<2x8x4xf32>
    %392 = vector.extract_strided_slice %263 {offsets = [0, 0, 28], sizes = [2, 8, 4], strides = [1, 1, 1]} : vector<2x8x32xf32> to vector<2x8x4xf32>
    "tpu.trace_start"() <{level = 10 : i32, message = "bqd,bkd->bqk"}> : () -> ()
    %cst_155 = arith.constant dense<0.000000e+00> : vector<2x8x8xf32>
    %393 = tpu.matmul %390, %391, %cst_155 {dimension_numbers = #tpu.dot_dimension_numbers<[2], [2], [1], [1], [0, 0, 0, 1, 1, 1], [0], [0]>} : vector<2x8x4xf32>, vector<2x8x4xf32>, vector<2x8x8xf32> -> vector<2x8x8xf32>
    "tpu.trace_stop"() : () -> ()
    %cst_156 = arith.constant 5.000000e-01 : f32
    %394 = vector.broadcast %cst_156 : f32 to vector<2x8x8xf32>
    %395 = arith.mulf %393, %394 : vector<2x8x8xf32>
    %cst_157 = arith.constant dense<0xFF800000> : vector<2x8xf32>
    %396 = vector.multi_reduction <maximumf>, %395, %cst_157 [2] : vector<2x8x8xf32> to vector<2x8xf32>
    %397 = vector.shape_cast %396 : vector<2x8xf32> to vector<2x8x1xf32>
    %398 = vector.broadcast %397 : vector<2x8x1xf32> to vector<2x8x8xf32>
    %399 = arith.subf %395, %398 : vector<2x8x8xf32>
    %400 = math.exp %399 : vector<2x8x8xf32>
    %cst_158 = arith.constant dense<0.000000e+00> : vector<2x8xf32>
    %401 = vector.multi_reduction <add>, %400, %cst_158 [2] : vector<2x8x8xf32> to vector<2x8xf32>
    %402 = vector.shape_cast %401 : vector<2x8xf32> to vector<2x8x1xf32>
    %403 = tpu.reciprocal %402 {approx = true} : vector<2x8x1xf32> -> vector<2x8x1xf32>
    %404 = vector.broadcast %403 : vector<2x8x1xf32> to vector<2x8x8xf32>
    %405 = arith.mulf %400, %404 : vector<2x8x8xf32>
    "tpu.trace_start"() <{level = 10 : i32, message = "bqk,bkd->bqd"}> : () -> ()
    %cst_159 = arith.constant dense<0.000000e+00> : vector<2x8x4xf32>
    %406 = tpu.matmul %405, %392, %cst_159 {dimension_numbers = #tpu.dot_dimension_numbers<[2], [1], [1], [2], [0, 0, 0, 1, 1, 2], [0], [0]>} : vector<2x8x8xf32>, vector<2x8x4xf32>, vector<2x8x4xf32> -> vector<2x8x4xf32>
    "tpu.trace_stop"() : () -> ()
    %c0_160 = arith.constant 0 : index
    %c0_161 = arith.constant 0 : index
    %c28_162 = arith.constant 28 : index
    %407 = vector.load %arg11[%c0_160, %c0_161, %c28_162] : memref<2x8x32xf32, #tpu.memory_space<vmem>>, vector<2x8x4xf32>
    tpu.vector_store %arg11[%c0_160, %c0_161, %c28_162], %406 {strides = array<i32>} : memref<2x8x32xf32, #tpu.memory_space<vmem>>, vector<2x8x4xf32>,
    %c0_163 = arith.constant 0 : index
    %c0_164 = arith.constant 0 : index
    %c0_165 = arith.constant 0 : index
    %408 = vector.load %arg11[%c0_163, %c0_164, %c0_165] : memref<2x8x32xf32, #tpu.memory_space<vmem>>, vector<2x8x32xf32>
    %409 = vector.shape_cast %408 : vector<2x8x32xf32> to vector<16x32xf32>
    %c1_166 = arith.constant 1 : index
    %c0_167 = arith.constant 0 : index
    %c0_168 = arith.constant 0 : index
    %410 = vector.load %arg3[%c1_166, %c0_167, %c0_168] : memref<2x32x32xf32, #tpu.memory_space<vmem>>, vector<1x32x32xf32>
    %411 = vector.shape_cast %410 : vector<1x32x32xf32> to vector<32x32xf32>
    %cst_169 = arith.constant dense<0.000000e+00> : vector<16x32xf32>
    %412 = tpu.matmul %409, %411, %cst_169 {dimension_numbers = #tpu.dot_dimension_numbers<[1], [0], [0], [1], [0, 0, 1, 1], [], []>} : vector<16x32xf32>, vector<32x32xf32>, vector<16x32xf32> -> vector<16x32xf32>
    %413 = vector.broadcast %243 : vector<1x32xf32> to vector<16x32xf32>
    %414 = arith.addf %412, %413 : vector<16x32xf32>
    %415 = arith.addf %237, %414 : vector<16x32xf32>
    %cst_170 = arith.constant dense<0.000000e+00> : vector<16xf32>
    %416 = vector.multi_reduction <add>, %415, %cst_170 [1] : vector<16x32xf32> to vector<16xf32>
    %417 = vector.shape_cast %416 : vector<16xf32> to vector<16x1xf32>
    %cst_171 = arith.constant 3.200000e+01 : f32
    %418 = vector.broadcast %cst_171 : f32 to vector<16x1xf32>
    %419 = arith.divf %417, %418 : vector<16x1xf32>
    %420 = vector.broadcast %419 : vector<16x1xf32> to vector<16x32xf32>
    %421 = arith.subf %415, %420 : vector<16x32xf32>
    %422 = arith.mulf %421, %421 : vector<16x32xf32>
    %cst_172 = arith.constant dense<0.000000e+00> : vector<16xf32>
    %423 = vector.multi_reduction <add>, %422, %cst_172 [1] : vector<16x32xf32> to vector<16xf32>
    %424 = vector.shape_cast %423 : vector<16xf32> to vector<16x1xf32>
    %cst_173 = arith.constant 3.200000e+01 : f32
    %425 = vector.broadcast %cst_173 : f32 to vector<16x1xf32>
    %426 = arith.divf %424, %425 : vector<16x1xf32>
    %427 = vector.broadcast %419 : vector<16x1xf32> to vector<16x32xf32>
    %428 = arith.subf %415, %427 : vector<16x32xf32>
    %cst_174 = arith.constant 9.99999974E-6 : f32
    %429 = vector.broadcast %cst_174 : f32 to vector<16x1xf32>
    %430 = arith.addf %426, %429 : vector<16x1xf32>
    %431 = math.rsqrt %430 : vector<16x1xf32>
    %432 = vector.broadcast %431 : vector<16x1xf32> to vector<16x32xf32>
    %433 = arith.mulf %428, %432 : vector<16x32xf32>
    %434 = vector.broadcast %245 : vector<1x32xf32> to vector<16x32xf32>
    %435 = arith.mulf %433, %434 : vector<16x32xf32>
    %436 = vector.broadcast %246 : vector<1x32xf32> to vector<16x32xf32>
    %437 = arith.addf %435, %436 : vector<16x32xf32>
    %c1_175 = arith.constant 1 : index
    %c0_176 = arith.constant 0 : index
    %c0_177 = arith.constant 0 : index
    %438 = vector.load %arg4[%c1_175, %c0_176, %c0_177] : memref<2x32x2048xf32, #tpu.memory_space<vmem>>, vector<1x32x2048xf32>
    %439 = vector.shape_cast %438 : vector<1x32x2048xf32> to vector<32x2048xf32>
    %cst_178 = arith.constant dense<0.000000e+00> : vector<16x2048xf32>
    %440 = tpu.matmul %437, %439, %cst_178 {dimension_numbers = #tpu.dot_dimension_numbers<[1], [0], [0], [1], [0, 0, 1, 1], [], []>} : vector<16x32xf32>, vector<32x2048xf32>, vector<16x2048xf32> -> vector<16x2048xf32>
    %c1_179 = arith.constant 1 : index
    %c0_180 = arith.constant 0 : index
    %c0_181 = arith.constant 0 : index
    %441 = vector.load %arg5[%c1_179, %c0_180, %c0_181] : memref<2x1x2048xf32, #tpu.memory_space<vmem>>, vector<1x1x2048xf32>
    %442 = vector.shape_cast %441 : vector<1x1x2048xf32> to vector<1x2048xf32>
    %443 = vector.broadcast %442 : vector<1x2048xf32> to vector<16x2048xf32>
    %444 = arith.addf %440, %443 : vector<16x2048xf32>
    %cst_182 = arith.constant 0.000000e+00 : f32
    %445 = vector.broadcast %cst_182 : f32 to vector<16x2048xf32>
    %446 = arith.maximumf %444, %445 : vector<16x2048xf32>
    %c1_183 = arith.constant 1 : index
    %c0_184 = arith.constant 0 : index
    %c0_185 = arith.constant 0 : index
    %447 = vector.load %arg6[%c1_183, %c0_184, %c0_185] : memref<2x2048x32xf32, #tpu.memory_space<vmem>>, vector<1x2048x32xf32>
    %448 = vector.shape_cast %447 : vector<1x2048x32xf32> to vector<2048x32xf32>
    %cst_186 = arith.constant dense<0.000000e+00> : vector<16x32xf32>
    %449 = tpu.matmul %446, %448, %cst_186 {dimension_numbers = #tpu.dot_dimension_numbers<[1], [0], [0], [1], [0, 0, 1, 1], [], []>} : vector<16x2048xf32>, vector<2048x32xf32>, vector<16x32xf32> -> vector<16x32xf32>
    %450 = vector.broadcast %244 : vector<1x32xf32> to vector<16x32xf32>
    %451 = arith.addf %449, %450 : vector<16x32xf32>
    %452 = arith.addf %437, %451 : vector<16x32xf32>
    %cst_187 = arith.constant dense<0.000000e+00> : vector<16xf32>
    %453 = vector.multi_reduction <add>, %452, %cst_187 [1] : vector<16x32xf32> to vector<16xf32>
    %454 = vector.shape_cast %453 : vector<16xf32> to vector<16x1xf32>
    %cst_188 = arith.constant 3.200000e+01 : f32
    %455 = vector.broadcast %cst_188 : f32 to vector<16x1xf32>
    %456 = arith.divf %454, %455 : vector<16x1xf32>
    %457 = vector.broadcast %456 : vector<16x1xf32> to vector<16x32xf32>
    %458 = arith.subf %452, %457 : vector<16x32xf32>
    %459 = arith.mulf %458, %458 : vector<16x32xf32>
    %cst_189 = arith.constant dense<0.000000e+00> : vector<16xf32>
    %460 = vector.multi_reduction <add>, %459, %cst_189 [1] : vector<16x32xf32> to vector<16xf32>
    %461 = vector.shape_cast %460 : vector<16xf32> to vector<16x1xf32>
    %cst_190 = arith.constant 3.200000e+01 : f32
    %462 = vector.broadcast %cst_190 : f32 to vector<16x1xf32>
    %463 = arith.divf %461, %462 : vector<16x1xf32>
    %464 = vector.broadcast %456 : vector<16x1xf32> to vector<16x32xf32>
    %465 = arith.subf %452, %464 : vector<16x32xf32>
    %cst_191 = arith.constant 9.99999974E-6 : f32
    %466 = vector.broadcast %cst_191 : f32 to vector<16x1xf32>
    %467 = arith.addf %463, %466 : vector<16x1xf32>
    %468 = math.rsqrt %467 : vector<16x1xf32>
    %469 = vector.broadcast %468 : vector<16x1xf32> to vector<16x32xf32>
    %470 = arith.mulf %465, %469 : vector<16x32xf32>
    %471 = vector.broadcast %247 : vector<1x32xf32> to vector<16x32xf32>
    %472 = arith.mulf %470, %471 : vector<16x32xf32>
    %473 = vector.broadcast %248 : vector<1x32xf32> to vector<16x32xf32>
    %474 = arith.addf %472, %473 : vector<16x32xf32>
    %c0_192 = arith.constant 0 : index
    %c0_193 = arith.constant 0 : index
    %475 = vector.load %arg8[%c0_192, %c0_193] : memref<1x32xf32, #tpu.memory_space<vmem>>, vector<1x32xf32>
    %476 = vector.broadcast %475 : vector<1x32xf32> to vector<16x32xf32>
    %477 = arith.mulf %474, %476 : vector<16x32xf32>
    %cst_194 = arith.constant dense<0.000000e+00> : vector<16xf32>
    %478 = vector.multi_reduction <add>, %477, %cst_194 [1] : vector<16x32xf32> to vector<16xf32>
    %479 = vector.shape_cast %478 : vector<16xf32> to vector<16x1xf32>
    %c0_195 = arith.constant 0 : index
    %c0_196 = arith.constant 0 : index
    %480 = vector.load %arg9[%c0_195, %c0_196] : memref<1x1xf32, #tpu.memory_space<vmem>>, vector<1x1xf32>
    %481 = vector.broadcast %480 : vector<1x1xf32> to vector<16x1xf32>
    %482 = arith.addf %479, %481 : vector<16x1xf32>
    %483 = arith.negf %482 : vector<16x1xf32>
    %484 = math.exp %483 : vector<16x1xf32>
    %cst_197 = arith.constant 1.000000e+00 : f32
    %485 = vector.broadcast %cst_197 : f32 to vector<16x1xf32>
    %486 = arith.addf %485, %484 : vector<16x1xf32>
    %487 = arith.divf %485, %486 : vector<16x1xf32>
    %c0_198 = arith.constant 0 : index
    %c0_199 = arith.constant 0 : index
    %488 = vector.load %arg10[%c0_198, %c0_199] : memref<16x1xf32, #tpu.memory_space<vmem>>, vector<16x1xf32>
    tpu.vector_store %arg10[%c0_198, %c0_199], %487 {strides = array<i32>} : memref<16x1xf32, #tpu.memory_space<vmem>>, vector<16x1xf32>,
    return
  }
  func.func @transform_0(%arg0: i32) -> (i32, i32) {
    %c0_i32 = arith.constant 0 : i32
    %c0_i32_0 = arith.constant 0 : i32
    %c0_i32_1 = arith.constant 0 : i32
    return %c0_i32, %c0_i32_0 : i32, i32
  }
  func.func @transform_1(%arg0: i32) -> (i32, i32, i32) {
    %c0_i32 = arith.constant 0 : i32
    %c0_i32_0 = arith.constant 0 : i32
    %c0_i32_1 = arith.constant 0 : i32
    %c0_i32_2 = arith.constant 0 : i32
    return %c0_i32, %c0_i32_0, %c0_i32_1 : i32, i32, i32
  }
  func.func @transform_2(%arg0: i32) -> (i32, i32, i32) {
    %c0_i32 = arith.constant 0 : i32
    %c0_i32_0 = arith.constant 0 : i32
    %c0_i32_1 = arith.constant 0 : i32
    %c0_i32_2 = arith.constant 0 : i32
    return %c0_i32, %c0_i32_0, %c0_i32_1 : i32, i32, i32
  }
  func.func @transform_3(%arg0: i32) -> (i32, i32, i32) {
    %c0_i32 = arith.constant 0 : i32
    %c0_i32_0 = arith.constant 0 : i32
    %c0_i32_1 = arith.constant 0 : i32
    %c0_i32_2 = arith.constant 0 : i32
    return %c0_i32, %c0_i32_0, %c0_i32_1 : i32, i32, i32
  }
  func.func @transform_4(%arg0: i32) -> (i32, i32, i32) {
    %c0_i32 = arith.constant 0 : i32
    %c0_i32_0 = arith.constant 0 : i32
    %c0_i32_1 = arith.constant 0 : i32
    %c0_i32_2 = arith.constant 0 : i32
    return %c0_i32, %c0_i32_0, %c0_i32_1 : i32, i32, i32
  }
  func.func @transform_5(%arg0: i32) -> (i32, i32, i32) {
    %c0_i32 = arith.constant 0 : i32
    %c0_i32_0 = arith.constant 0 : i32
    %c0_i32_1 = arith.constant 0 : i32
    %c0_i32_2 = arith.constant 0 : i32
    return %c0_i32, %c0_i32_0, %c0_i32_1 : i32, i32, i32
  }
  func.func @transform_6(%arg0: i32) -> (i32, i32, i32) {
    %c0_i32 = arith.constant 0 : i32
    %c0_i32_0 = arith.constant 0 : i32
    %c0_i32_1 = arith.constant 0 : i32
    %c0_i32_2 = arith.constant 0 : i32
    return %c0_i32, %c0_i32_0, %c0_i32_1 : i32, i32, i32
  }
  func.func @transform_7(%arg0: i32) -> (i32, i32) {
    %c0_i32 = arith.constant 0 : i32
    %c0_i32_0 = arith.constant 0 : i32
    %c0_i32_1 = arith.constant 0 : i32
    return %c0_i32, %c0_i32_0 : i32, i32
  }
  func.func @transform_8(%arg0: i32) -> (i32, i32) {
    %c0_i32 = arith.constant 0 : i32
    %c0_i32_0 = arith.constant 0 : i32
    %c0_i32_1 = arith.constant 0 : i32
    return %c0_i32, %c0_i32_0 : i32, i32
  }
  func.func @transform_9(%arg0: i32) -> (i32, i32) {
    %c0_i32 = arith.constant 0 : i32
    %c0_i32_0 = arith.constant 0 : i32
    %c0_i32_1 = arith.constant 0 : i32
    return %c0_i32, %c0_i32_0 : i32, i32
  }
}

</mosaic_0001>

<bundles_post_ra>
// kernel: transformer_lr_forward.1
= control target key start
LH: loop header
LB: loop body
LE: loop exit
PB: predicated region body
PF: predicated region fallthrough
CT: control target
= control target key end

     0   :  { %vm42_vm0 = vcmask 261120   ;;  %v124_v0 = vlaneseq  ;;  %s11237_s23 = smov 32   ;;  %v11238_v11 = vmov 0.0   ;;  %vm11239_vm1 = vmmov 0   ;;  %s11240_s24 = smov 96   ;;  %s14409_s1 = inlined_call_operand.vmem [shape: f32[2,32,96], index: 1, kind: input, shape index: {}]   ;;  %s14410_s0 = inlined_call_operand.vmem [shape: f32[16,32], index: 0, kind: input, shape index: {}]   ;;  %s14411_s6 = inlined_call_operand.vmem [shape: f32[2,9,32], index: 6, kind: input, shape index: {}]   ;;  %s14412_s2 = inlined_call_operand.vmem [shape: f32[2,32,32], index: 2, kind: input, shape index: {}]   ;;  %s14413_s3 = inlined_call_operand.vmem [shape: f32[2,32,2048], index: 3, kind: input, shape index: {}]   ;;  %s14414_s5 = inlined_call_operand.vmem [shape: f32[2,2048,32], index: 5, kind: input, shape index: {}]   ;;  %s14415_s4 = inlined_call_operand.vmem [shape: f32[2,1,2048], index: 4, kind: input, shape index: {}]   ;;  %s14416_s8 = inlined_call_operand.<no memory space> [shape: f32[1,1], index: 8, kind: input, shape index: {}]   ;;  %s14417_s7 = inlined_call_operand.vmem [shape: f32[1,32], index: 7, kind: input, shape index: {}]   ;;  %s14418_s9 = inlined_call_operand.vmem [shape: f32[16,1], index: 9, kind: output, shape index: {}]  }
   0x1   :  { %v41_v1 = vld [vmem:[%s14409_s1 + $0x18] sm:$0xff]  ;;  %v40_v2 = vld [vmem:[%s14409_s1 + $0x10] sm:$0xff]  ;;  %v34_v3 = vld [vmem:[%s14410_s0] sm:$0xff]  ;;  %10693 = vmatprep.subr.mxu1 %v11238_v11  ;;  %10695 = vmatprep.mubr.msk.f32.mxu1 %vm11239_vm1, %v11238_v11  ;;  %vm153_vm2 = vcmask 31744   ;;  %vm309_vm3 = vcmask 64512   ;;  %s11241_s25 = smov 64  }
   0x2   :  { %10682 = vmatprep.subr.mxu0 %v41_v1  ;;  %v11329_v4 = vshrl.u32 %v124_v0, 7  ;;  %v39_v5 = vld [vmem:[%s14409_s1 + $0x8] sm:$0xff]  ;;  %10690 = vmatprep.mubr.msk.f32.mxu0 %vm42_vm0, %v34_v3  ;;  %v36_v6 = vld [vmem:[%s14411_s6] sm:$0xff]  ;;  %s11242_s26 = smov 92   ;;  %s11243_s27 = smov 124   ;;  %vm828_vm4 = vcmask 64544  }
   0x3   :  { %10683 = vmatpush3.msra.mxu0 %v41_v1  ;;  %v38_v8 = vld [vmem:[%s14409_s1] sm:$0xff]  ;;  %v35_v10 = vld [vmem:[%s14410_s0 + $0x8] sm:$0xff]  ;;  %s11244_s28 = smov 60   ;;  %s11245_s29 = smov 88   ;;  %vm1171_vm5 = vcmask 97344   ;;  %vm1514_vm6 = vcmask 130144  }
   0x4   :  { %10684 = vmatprep.subr.mxu0 %v40_v2  ;;  %v11339_v7 = vsub.s32 1, %v11329_v4  ;;  %v11365_v17 = vsub.s32 0, %v11329_v4  ;;  %v11387_v31 = vsub.s32 2, %v11329_v4  ;;  %s11246_s30 = smov 120   ;;  %s11247_s10 = smov 56   ;;  %vm1857_vm7 = vcmask 162944  }
   0x5   :  { %10685 = vmatpush3.msra.mxu0 %v40_v2  ;;  %s11248_s11 = smov 84   ;;  %s11249_s12 = smov 116   ;;  %vm2200_vm8 = vcmask 195744   ;;  %vm2543_vm9 = vcmask 228544   ;;  %vm2886_vm10 = vcmask 261344   ;;  %vm9441_vm11 = vcmask 7168  }
   0x6   :  { %10686 = vmatprep.subr.mxu0 %v39_v5  ;;  %v133_v9 = vrot.slane %v36_v6, %v11339_v7  ;;  %v127_v18 = vrot.slane %v36_v6, %v11365_v17  ;;  %v143_v32 = vrot.slane %v36_v6, %v11387_v31  ;;  %s11250_s13 = smov 52   ;;  %s14455_s14 = smov 80  }
   0x7   :  { %10687 = vmatpush3.msra.mxu0 %v39_v5  ;;  %s14451_s15 = smov 112   ;;  %s14435_s16 = smov 48  }
   0x8   :  { %10688 = vmatprep.subr.mxu0 %v38_v8  ;;  %135 = vrot.lane.b32.xlu0 %v133_v9, %s11237_s23  ;;  %s14433_s17 = smov 76   ;;  %s14431_s18 = smov 108  }
   0x9   :  { %10689 = vmatpush3.msra.mxu0 %v38_v8  ;;  %s14429_s19 = smov 44   ;;  %s14421_s20 = smov 72  }
   0xa   :  { %10691 = vmatmul.mubr.msk.f32.vlgmr.msra.gmra.mxu0 %vm42_vm0, %v35_v10  ;;  %10703 = vmatprep.subr.mxu0 %v11238_v11  ;;  %s14419_s21 = smov 104   ;;  %s14427_s22 = smov 40  }
   0xb   :  { %10705 = vmatprep.mubr.msk.f32.mxu0 %vm11239_vm1, %v11238_v11 }
  0x7a   :  { %v136_v12 = vpop.permute.xlu0 %135 }
  0xca   :  { %v10692_v13 = vpop.f32.mrf.mxu0 }
  0xcb   :  { %v11356_v14 = vadd.f32 %v10692_v13, %v136_v12  ;;  %v11377_v22 = vadd.f32 %v10692_v13, %v127_v18 }
  0xcc   :  { %v115_v15 = vpop.f32.mrf.mxu0 }
  0xcd   :  { %v11358_v16 = vadd.f32 %v136_v12, %v115_v15  ;;  %230 = vrot.lane.b32.xlu1 %v11356_v14, %s11240_s24  ;;  %v11369_v20 = vadd.f32 %v127_v18, %v115_v15 }
  0xcf   :  { %151 = vrot.lane.b32.xlu0 %v11358_v16, %s11240_s24 }
 0x13f   :  { %v231_v21 = vpop.permute.xlu1 %230 }
 0x141   :  { %v152_v19 = vpop.permute.xlu0 %151 }
 0x142   :  { %10694 = vmatpush3.xpose.msk.msra.mxu1 %vm153_vm2, %v152_v19 }
 0x143   :  { %10698 = vmatprep.subr.mxu1 %v11238_v11 }
 0x145   :  { %10696 = vmatmul.mubr.msk.f32.vlgmr.msra.gmra.mxu1 %vm153_vm2, %v11369_v20 }
 0x146   :  { %10699 = vmatpush3.xpose.msk.msra.mxu1 %vm153_vm2, %v231_v21  ;;  %10700 = vmatprep.mubr.msk.f32.mxu1 %vm11239_vm1, %v11238_v11 }
 0x147   :  { %10708 = vmatprep.subr.mxu1 %v11238_v11 }
 0x149   :  { %10701 = vmatmul.mubr.msk.f32.vlgmr.msra.gmra.mxu1 %vm153_vm2, %v11377_v22 }
 0x14a   :  { %10710 = vmatprep.mubr.msk.f32.mxu1 %vm11239_vm1, %v11238_v11 }
 0x205   :  { %v225_v23 = vpop.f32.mrf.mxu1 }
 0x206   :  { %v307_v24 = vmul.f32 0.5, %v225_v23 }
 0x207   :  { %v10697_v25 = vpop.f32.mrf.mxu1 }
 0x208   :  { %v310_v26 = vsel %vm309_vm3, %v307_v24, -inf }
 0x209   :  { %311 = vmax.xlane.f32.xlu1 %v310_v26  ;;  %v303_v27 = vpop.f32.mrf.mxu1 }
 0x20a   :  { %v308_v28 = vmul.f32 0.5, %v303_v27 }
 0x20b   :  { %v10702_v29 = vpop.f32.mrf.mxu1 }
 0x20c   :  { %v313_v30 = vsel %vm309_vm3, %v308_v28, -inf }
 0x20d   :  { %314 = vmax.xlane.f32.xlu0 %v313_v30 }
 0x223   :  { %145 = vrot.lane.b32.xlu0 %v143_v32, %s11241_s25 }
 0x292   :  { %v312_v37 = vpop.xlane.xlu1 %311 }
 0x293   :  { %v316_v38 = vsub.f32 %v307_v24, %v312_v37 }
 0x295   :  { %v318_v39 = vmul.f32 1.442695, %v316_v38 }
 0x296   :  { %v315_v33 = vpop.xlane.xlu0 %314 }
 0x297   :  { %v317_v40 = vsub.f32 %v308_v28, %v315_v33  ;;  %11079 = vpow2.f32 %v318_v39 }
 0x299   :  { %v320_v41 = vmul.f32 1.442695, %v317_v40 }
 0x29a   :  { %v146_v34 = vpop.permute.xlu0 %145 }
 0x29b   :  { %v11391_v35 = vadd.f32 %v146_v34, %v115_v15  ;;  %v11393_v36 = vadd.f32 %v10692_v13, %v146_v34  ;;  %11081 = vpow2.f32 %v320_v41 }
 0x29d   :  { %410 = vrot.lane.b32.xlu0 %v11393_v36, %s11241_s25  ;;  %333 = vrot.lane.b32.xlu1 %v11391_v35, %s11241_s25 }
 0x2a1   :  { %490 = vrot.lane.b32.xlu0 %v11358_v16, %s11242_s26  ;;  %568 = vrot.lane.b32.xlu1 %v11356_v14, %s11242_s26 }
 0x2a4   :  { %v11080_v42 = vpop.eup %11079 }
 0x2a5   :  { %488 = vrot.lane.b32.xlu0 %v11369_v20, %s11243_s27  ;;  %v322_v43 = vsel %vm309_vm3, %v11080_v42, 0.0 }
 0x2a8   :  { %v11082_v44 = vpop.eup %11081 }
 0x2a9   :  { %v325_v45 = vsel %vm309_vm3, %v11082_v44, 0.0 }
 0x2c5   :  { %323 = vadd.xlane.f32.xlu1 %v322_v43 }
 0x2c9   :  { %326 = vadd.xlane.f32.xlu1 %v325_v45 }
 0x2da   :  { %566 = vrot.lane.b32.xlu1 %v11377_v22, %s11243_s27 }
 0x30f   :  { %v411_v46 = vpop.permute.xlu0 %410  ;;  %v334_v47 = vpop.permute.xlu1 %333 }
 0x310   :  { %10704 = vmatpush3.msra.mxu0 %v334_v47  ;;  %10709 = vmatpush3.msra.mxu1 %v411_v46 }
 0x311   :  { %10713 = vmatprep.subr.mxu0 %v11238_v11  ;;  %10718 = vmatprep.subr.mxu1 %v11238_v11 }
 0x313   :  { %v569_v48 = vpop.permute.xlu1 %568  ;;  %v491_v52 = vpop.permute.xlu0 %490 }
 0x317   :  { %v489_v56 = vpop.permute.xlu0 %488 }
 0x34e   :  { %v324_v49 = vpop.xlane.xlu1 %323 }
 0x34f   :  { %11083 = vrcp.f32 %v324_v49 }
 0x352   :  { %v327_v50 = vpop.xlane.xlu1 %326 }
 0x353   :  { %11085 = vrcp.f32 %v327_v50 }
 0x356   :  { %v567_v57 = vpop.permute.xlu1 %566 }
 0x35c   :  { %v11084_v51 = vpop.eup %11083 }
 0x35d   :  { %v330_v53 = vmul.f32 %v11084_v51, %v11080_v42 }
 0x35f   :  { %10706 = vmatmul.mubr.msk.f32.vlgmr.msra.gmra.mxu0 %vm309_vm3, %v330_v53 }
 0x360   :  { %v11086_v54 = vpop.eup %11085  ;;  %10714 = vmatpush3.xpose.msk.msra.mxu0 %vm153_vm2, %v491_v52  ;;  %10715 = vmatprep.mubr.msk.f32.mxu0 %vm11239_vm1, %v11238_v11 }
 0x361   :  { %v331_v55 = vmul.f32 %v11086_v54, %v11082_v44  ;;  %10723 = vmatprep.subr.mxu0 %v11238_v11 }
 0x363   :  { %10711 = vmatmul.mubr.msk.f32.vlgmr.msra.gmra.mxu1 %vm309_vm3, %v331_v55  ;;  %10716 = vmatmul.mubr.msk.f32.vlgmr.msra.gmra.mxu0 %vm153_vm2, %v489_v56 }
 0x364   :  { %10719 = vmatpush3.xpose.msk.msra.mxu1 %vm153_vm2, %v569_v48  ;;  %10720 = vmatprep.mubr.msk.f32.mxu1 %vm11239_vm1, %v11238_v11 }
 0x365   :  { %10728 = vmatprep.subr.mxu1 %v11238_v11  ;;  %10725 = vmatprep.mubr.msk.f32.mxu0 %vm11239_vm1, %v11238_v11 }
 0x367   :  { %10721 = vmatmul.mubr.msk.f32.vlgmr.msra.gmra.mxu1 %vm153_vm2, %v567_v57 }
 0x368   :  { %10730 = vmatprep.mubr.msk.f32.mxu1 %vm11239_vm1, %v11238_v11 }
 0x41f   :  { %v405_v58 = vpop.f32.mrf.mxu0 }
 0x420   :  { %486 = vst.msk [vmem:[#allocation2] sm:$0xff] %vm153_vm2, %v405_v58 }
 0x421   :  { %v10707_v59 = vpop.f32.mrf.mxu0 }
 0x423   :  { %v482_v60 = vpop.f32.mrf.mxu1  ;;  %v562_v61 = vpop.f32.mrf.mxu0 }
 0x424   :  { %487 = vst.msk [vmem:[#allocation2 + $0x8] sm:$0xff] %vm153_vm2, %v482_v60  ;;  %v644_v62 = vmul.f32 0.5, %v562_v61 }
 0x425   :  { %v10712_v63 = vpop.f32.mrf.mxu1  ;;  %v10717_v0 = vpop.f32.mrf.mxu0 }
 0x426   :  { %v646_v1 = vsel %vm309_vm3, %v644_v62, -inf }
 0x427   :  { %647 = vmax.xlane.f32.xlu0 %v646_v1  ;;  %v640_v2 = vpop.f32.mrf.mxu1 }
 0x428   :  { %v645_v3 = vmul.f32 0.5, %v640_v2 }
 0x429   :  { %v10722_v5 = vpop.f32.mrf.mxu1 }
 0x42a   :  { %v649_v6 = vsel %vm309_vm3, %v645_v3, -inf }
 0x42b   :  { %650 = vmax.xlane.f32.xlu1 %v649_v6 }
 0x43c   :  { %668 = vrot.lane.b32.xlu1 %v11391_v35, %s11244_s28 }
 0x43d   :  { %744 = vrot.lane.b32.xlu0 %v11393_v36, %s11244_s28 }
 0x440   :  { %833 = vrot.lane.b32.xlu1 %v11358_v16, %s11245_s29 }
 0x444   :  { %911 = vrot.lane.b32.xlu1 %v11356_v14, %s11245_s29 }
 0x448   :  { %909 = vrot.lane.b32.xlu1 %v11377_v22, %s11246_s30 }
 0x4b0   :  { %v648_v8 = vpop.xlane.xlu0 %647 }
 0x4b1   :  { %v652_v9 = vsub.f32 %v644_v62, %v648_v8 }
 0x4b3   :  { %v654_v10 = vmul.f32 1.442695, %v652_v9 }
 0x4b4   :  { %v745_v12 = vpop.permute.xlu0 %744  ;;  %v651_v13 = vpop.xlane.xlu1 %650 }
 0x4b5   :  { %11087 = vpow2.f32 %v654_v10  ;;  %v653_v15 = vsub.f32 %v645_v3, %v651_v13  ;;  %10729 = vmatpush3.msra.mxu1 %v745_v12 }
 0x4b6   :  { %10738 = vmatprep.subr.mxu1 %v11238_v11 }
 0x4b7   :  { %v656_v18 = vmul.f32 1.442695, %v653_v15 }
 0x4b8   :  { %v669_v19 = vpop.permute.xlu1 %668 }
 0x4b9   :  { %11089 = vpow2.f32 %v656_v18  ;;  %10724 = vmatpush3.msra.mxu0 %v669_v19 }
 0x4ba   :  { %10733 = vmatprep.subr.mxu0 %v11238_v11 }
 0x4bc   :  { %v834_v28 = vpop.permute.xlu1 %833 }
 0x4c0   :  { %v912_v33 = vpop.permute.xlu1 %911 }
 0x4c2   :  { %v11088_v21 = vpop.eup %11087 }
 0x4c3   :  { %v658_v23 = vsel %vm309_vm3, %v11088_v21, 0.0 }
 0x4c4   :  { %659 = vadd.xlane.f32.xlu0 %v658_v23  ;;  %v910_v38 = vpop.permute.xlu1 %909 }
 0x4c6   :  { %v11090_v24 = vpop.eup %11089 }
 0x4c7   :  { %v661_v25 = vsel %vm309_vm3, %v11090_v24, 0.0 }
 0x4c8   :  { %662 = vadd.xlane.f32.xlu0 %v661_v25 }
 0x4de   :  { %831 = vrot.lane.b32.xlu0 %v11369_v20, %s11246_s30 }
 0x54d   :  { %v660_v26 = vpop.xlane.xlu0 %659 }
 0x54e   :  { %11091 = vrcp.f32 %v660_v26 }
 0x551   :  { %v663_v27 = vpop.xlane.xlu0 %662 }
 0x552   :  { %11093 = vrcp.f32 %v663_v27 }
 0x555   :  { %v832_v37 = vpop.permute.xlu0 %831 }
 0x55b   :  { %v11092_v29 = vpop.eup %11091 }
 0x55c   :  { %v666_v30 = vmul.f32 %v11092_v29, %v11088_v21 }
 0x55e   :  { %10726 = vmatmul.mubr.msk.f32.vlgmr.msra.gmra.mxu0 %vm309_vm3, %v666_v30 }
 0x55f   :  { %v11094_v32 = vpop.eup %11093  ;;  %10734 = vmatpush3.xpose.msk.msra.mxu0 %vm153_vm2, %v834_v28  ;;  %10735 = vmatprep.mubr.msk.f32.mxu0 %vm11239_vm1, %v11238_v11 }
 0x560   :  { %v667_v34 = vmul.f32 %v11094_v32, %v11090_v24  ;;  %10743 = vmatprep.subr.mxu0 %v11238_v11 }
 0x562   :  { %10731 = vmatmul.mubr.msk.f32.vlgmr.msra.gmra.mxu1 %vm309_vm3, %v667_v34  ;;  %10736 = vmatmul.mubr.msk.f32.vlgmr.msra.gmra.mxu0 %vm153_vm2, %v832_v37 }
 0x563   :  { %10739 = vmatpush3.xpose.msk.msra.mxu1 %vm153_vm2, %v912_v33  ;;  %10740 = vmatprep.mubr.msk.f32.mxu1 %vm11239_vm1, %v11238_v11 }
 0x564   :  { %10748 = vmatprep.subr.mxu1 %v11238_v11  ;;  %10745 = vmatprep.mubr.msk.f32.mxu0 %vm11239_vm1, %v11238_v11 }
 0x566   :  { %10741 = vmatmul.mubr.msk.f32.vlgmr.msra.gmra.mxu1 %vm153_vm2, %v910_v38 }
 0x567   :  { %10750 = vmatprep.mubr.msk.f32.mxu1 %vm11239_vm1, %v11238_v11 }
 0x61e   :  { %v11463_v39 = vpop.f32.mrf.mxu0 }
 0x620   :  { %v10727_v40 = vpop.f32.mrf.mxu0 }
 0x622   :  { %v11465_v41 = vpop.f32.mrf.mxu1  ;;  %v905_v42 = vpop.f32.mrf.mxu0 }
 0x623   :  { %v987_v43 = vmul.f32 0.5, %v905_v42 }
 0x624   :  { %v10732_v44 = vpop.f32.mrf.mxu1  ;;  %v10737_v45 = vpop.f32.mrf.mxu0 }
 0x625   :  { %v989_v46 = vsel %vm309_vm3, %v987_v43, -inf }
 0x626   :  { %990 = vmax.xlane.f32.xlu0 %v989_v46  ;;  %v983_v47 = vpop.f32.mrf.mxu1 }
 0x627   :  { %v988_v48 = vmul.f32 0.5, %v983_v47 }
 0x628   :  { %v10742_v49 = vpop.f32.mrf.mxu1 }
 0x629   :  { %v992_v50 = vsel %vm309_vm3, %v988_v48, -inf }
 0x62a   :  { %993 = vmax.xlane.f32.xlu1 %v992_v50 }
 0x63b   :  { %1011 = vrot.lane.b32.xlu1 %v11391_v35, %s11247_s10 }
 0x63c   :  { %1087 = vrot.lane.b32.xlu0 %v11393_v36, %s11247_s10 }
 0x63f   :  { %1176 = vrot.lane.b32.xlu1 %v11358_v16, %s11248_s11 }
 0x643   :  { %1254 = vrot.lane.b32.xlu1 %v11356_v14, %s11248_s11 }
 0x647   :  { %1252 = vrot.lane.b32.xlu1 %v11377_v22, %s11249_s12 }
 0x6af   :  { %v991_v51 = vpop.xlane.xlu0 %990 }
 0x6b0   :  { %v995_v52 = vsub.f32 %v987_v43, %v991_v51 }
 0x6b2   :  { %v997_v53 = vmul.f32 1.442695, %v995_v52 }
 0x6b3   :  { %v1088_v54 = vpop.permute.xlu0 %1087  ;;  %v994_v55 = vpop.xlane.xlu1 %993 }
 0x6b4   :  { %11095 = vpow2.f32 %v997_v53  ;;  %v996_v56 = vsub.f32 %v988_v48, %v994_v55  ;;  %10749 = vmatpush3.msra.mxu1 %v1088_v54 }
 0x6b5   :  { %10758 = vmatprep.subr.mxu1 %v11238_v11 }
 0x6b6   :  { %v999_v57 = vmul.f32 1.442695, %v996_v56 }
 0x6b7   :  { %v1012_v58 = vpop.permute.xlu1 %1011 }
 0x6b8   :  { %11097 = vpow2.f32 %v999_v57  ;;  %10744 = vmatpush3.msra.mxu0 %v1012_v58 }
 0x6b9   :  { %10753 = vmatprep.subr.mxu0 %v11238_v11 }
 0x6bb   :  { %v1177_v1 = vpop.permute.xlu1 %1176 }
 0x6bf   :  { %v1255_v6 = vpop.permute.xlu1 %1254 }
 0x6c1   :  { %v11096_v59 = vpop.eup %11095 }
 0x6c2   :  { %v1001_v60 = vsel %vm309_vm3, %v11096_v59, 0.0 }
 0x6c3   :  { %1002 = vadd.xlane.f32.xlu0 %v1001_v60  ;;  %v1253_v10 = vpop.permute.xlu1 %1252 }
 0x6c5   :  { %v11098_v61 = vpop.eup %11097 }
 0x6c6   :  { %v1004_v62 = vsel %vm309_vm3, %v11098_v61, 0.0 }
 0x6c7   :  { %1005 = vadd.xlane.f32.xlu0 %v1004_v62 }
 0x6dd   :  { %1174 = vrot.lane.b32.xlu0 %v11369_v20, %s11249_s12 }
 0x74c   :  { %v1003_v63 = vpop.xlane.xlu0 %1002 }
 0x74d   :  { %11099 = vrcp.f32 %v1003_v63 }
 0x750   :  { %v1006_v0 = vpop.xlane.xlu0 %1005 }
 0x751   :  { %11101 = vrcp.f32 %v1006_v0 }
 0x754   :  { %v1175_v9 = vpop.permute.xlu0 %1174 }
 0x75a   :  { %v11100_v2 = vpop.eup %11099 }
 0x75b   :  { %v1009_v3 = vmul.f32 %v11100_v2, %v11096_v59 }
 0x75d   :  { %10746 = vmatmul.mubr.msk.f32.vlgmr.msra.gmra.mxu0 %vm309_vm3, %v1009_v3 }
 0x75e   :  { %v11102_v5 = vpop.eup %11101  ;;  %10754 = vmatpush3.xpose.msk.msra.mxu0 %vm153_vm2, %v1177_v1  ;;  %10755 = vmatprep.mubr.msk.f32.mxu0 %vm11239_vm1, %v11238_v11 }
 0x75f   :  { %v1010_v8 = vmul.f32 %v11102_v5, %v11098_v61  ;;  %10763 = vmatprep.subr.mxu0 %v11238_v11 }
 0x761   :  { %10751 = vmatmul.mubr.msk.f32.vlgmr.msra.gmra.mxu1 %vm309_vm3, %v1010_v8  ;;  %10756 = vmatmul.mubr.msk.f32.vlgmr.msra.gmra.mxu0 %vm153_vm2, %v1175_v9 }
 0x762   :  { %10759 = vmatpush3.xpose.msk.msra.mxu1 %vm153_vm2, %v1255_v6  ;;  %10760 = vmatprep.mubr.msk.f32.mxu1 %vm11239_vm1, %v11238_v11 }
 0x763   :  { %10768 = vmatprep.subr.mxu1 %v11238_v11  ;;  %10765 = vmatprep.mubr.msk.f32.mxu0 %vm11239_vm1, %v11238_v11 }
 0x765   :  { %10761 = vmatmul.mubr.msk.f32.vlgmr.msra.gmra.mxu1 %vm153_vm2, %v1253_v10 }
 0x766   :  { %10770 = vmatprep.mubr.msk.f32.mxu1 %vm11239_vm1, %v11238_v11 }
 0x81d   :  { %v11501_v12 = vpop.f32.mrf.mxu0 }
 0x81f   :  { %v10747_v13 = vpop.f32.mrf.mxu0 }
 0x821   :  { %v11503_v15 = vpop.f32.mrf.mxu1  ;;  %v1248_v18 = vpop.f32.mrf.mxu0 }
 0x822   :  { %v1330_v19 = vmul.f32 0.5, %v1248_v18 }
 0x823   :  { %v10752_v21 = vpop.f32.mrf.mxu1  ;;  %v10757_v23 = vpop.f32.mrf.mxu0 }
 0x824   :  { %v1332_v24 = vsel %vm309_vm3, %v1330_v19, -inf }
 0x825   :  { %1333 = vmax.xlane.f32.xlu0 %v1332_v24  ;;  %v1326_v25 = vpop.f32.mrf.mxu1 }
 0x826   :  { %v1331_v26 = vmul.f32 0.5, %v1326_v25 }
 0x827   :  { %v10762_v27 = vpop.f32.mrf.mxu1 }
 0x828   :  { %v1335_v28 = vsel %vm309_vm3, %v1331_v26, -inf }
 0x829   :  { %1336 = vmax.xlane.f32.xlu1 %v1335_v28 }
 0x83a   :  { %1354 = vrot.lane.b32.xlu1 %v11391_v35, %s11250_s13 }
 0x83b   :  { %1430 = vrot.lane.b32.xlu0 %v11393_v36, %s11250_s13 }
 0x83e   :  { %1519 = vrot.lane.b32.xlu1 %v11358_v16, %s14455_s14 }
 0x842   :  { %1597 = vrot.lane.b32.xlu1 %v11356_v14, %s14455_s14  ;;  %s14470_s14 = smov 8  }
 0x846   :  { %1595 = vrot.lane.b32.xlu1 %v11377_v22, %s14451_s15 }
 0x8ae   :  { %v1334_v29 = vpop.xlane.xlu0 %1333 }
 0x8af   :  { %v1338_v30 = vsub.f32 %v1330_v19, %v1334_v29 }
 0x8b1   :  { %v1340_v32 = vmul.f32 1.442695, %v1338_v30 }
 0x8b2   :  { %v1431_v33 = vpop.permute.xlu0 %1430  ;;  %v1337_v34 = vpop.xlane.xlu1 %1336 }
 0x8b3   :  { %11103 = vpow2.f32 %v1340_v32  ;;  %v1339_v37 = vsub.f32 %v1331_v26, %v1337_v34  ;;  %10769 = vmatpush3.msra.mxu1 %v1431_v33 }
 0x8b4   :  { %10778 = vmatprep.subr.mxu1 %v11238_v11 }
 0x8b5   :  { %v1342_v38 = vmul.f32 1.442695, %v1339_v37 }
 0x8b6   :  { %v1355_v40 = vpop.permute.xlu1 %1354 }
 0x8b7   :  { %11105 = vpow2.f32 %v1342_v38  ;;  %10764 = vmatpush3.msra.mxu0 %v1355_v40 }
 0x8b8   :  { %10773 = vmatprep.subr.mxu0 %v11238_v11 }
 0x8ba   :  { %v1520_v48 = vpop.permute.xlu1 %1519 }
 0x8be   :  { %v1598_v52 = vpop.permute.xlu1 %1597 }
 0x8c0   :  { %v11104_v42 = vpop.eup %11103 }
 0x8c1   :  { %v1344_v43 = vsel %vm309_vm3, %v11104_v42, 0.0 }
 0x8c2   :  { %1345 = vadd.xlane.f32.xlu0 %v1344_v43  ;;  %v1596_v55 = vpop.permute.xlu1 %1595 }
 0x8c4   :  { %v11106_v44 = vpop.eup %11105 }
 0x8c5   :  { %v1347_v45 = vsel %vm309_vm3, %v11106_v44, 0.0 }
 0x8c6   :  { %1348 = vadd.xlane.f32.xlu0 %v1347_v45 }
 0x8dc   :  { %1517 = vrot.lane.b32.xlu0 %v11369_v20, %s14451_s15  ;;  %s14474_s15 = smov 24  }
 0x94b   :  { %v1346_v46 = vpop.xlane.xlu0 %1345 }
 0x94c   :  { %11107 = vrcp.f32 %v1346_v46 }
 0x94f   :  { %v1349_v47 = vpop.xlane.xlu0 %1348 }
 0x950   :  { %11109 = vrcp.f32 %v1349_v47 }
 0x953   :  { %v1518_v54 = vpop.permute.xlu0 %1517 }
 0x959   :  { %v11108_v49 = vpop.eup %11107 }
 0x95a   :  { %v1352_v50 = vmul.f32 %v11108_v49, %v11104_v42 }
 0x95c   :  { %10766 = vmatmul.mubr.msk.f32.vlgmr.msra.gmra.mxu0 %vm309_vm3, %v1352_v50 }
 0x95d   :  { %v11110_v51 = vpop.eup %11109  ;;  %10774 = vmatpush3.xpose.msk.msra.mxu0 %vm153_vm2, %v1520_v48  ;;  %10775 = vmatprep.mubr.msk.f32.mxu0 %vm11239_vm1, %v11238_v11 }
 0x95e   :  { %v1353_v53 = vmul.f32 %v11110_v51, %v11106_v44  ;;  %10783 = vmatprep.subr.mxu0 %v11238_v11 }
 0x960   :  { %10771 = vmatmul.mubr.msk.f32.vlgmr.msra.gmra.mxu1 %vm309_vm3, %v1353_v53  ;;  %10776 = vmatmul.mubr.msk.f32.vlgmr.msra.gmra.mxu0 %vm153_vm2, %v1518_v54 }
 0x961   :  { %10779 = vmatpush3.xpose.msk.msra.mxu1 %vm153_vm2, %v1598_v52  ;;  %10780 = vmatprep.mubr.msk.f32.mxu1 %vm11239_vm1, %v11238_v11 }
 0x962   :  { %10788 = vmatprep.subr.mxu1 %v11238_v11  ;;  %10785 = vmatprep.mubr.msk.f32.mxu0 %vm11239_vm1, %v11238_v11 }
 0x964   :  { %10781 = vmatmul.mubr.msk.f32.vlgmr.msra.gmra.mxu1 %vm153_vm2, %v1596_v55 }
 0x965   :  { %10790 = vmatprep.mubr.msk.f32.mxu1 %vm11239_vm1, %v11238_v11 }
 0xa1c   :  { %v11539_v56 = vpop.f32.mrf.mxu0 }
 0xa1e   :  { %v10767_v57 = vpop.f32.mrf.mxu0 }
 0xa20   :  { %v11541_v58 = vpop.f32.mrf.mxu1  ;;  %v1591_v59 = vpop.f32.mrf.mxu0 }
 0xa21   :  { %v1673_v60 = vmul.f32 0.5, %v1591_v59 }
 0xa22   :  { %v10772_v61 = vpop.f32.mrf.mxu1  ;;  %v10777_v62 = vpop.f32.mrf.mxu0 }
 0xa23   :  { %v1675_v63 = vsel %vm309_vm3, %v1673_v60, -inf }
 0xa24   :  { %1676 = vmax.xlane.f32.xlu0 %v1675_v63  ;;  %v1669_v0 = vpop.f32.mrf.mxu1 }
 0xa25   :  { %v1674_v1 = vmul.f32 0.5, %v1669_v0 }
 0xa26   :  { %v10782_v2 = vpop.f32.mrf.mxu1 }
 0xa27   :  { %v1678_v3 = vsel %vm309_vm3, %v1674_v1, -inf }
 0xa28   :  { %1679 = vmax.xlane.f32.xlu1 %v1678_v3 }
 0xa39   :  { %1697 = vrot.lane.b32.xlu1 %v11391_v35, %s14435_s16 }
 0xa3a   :  { %1773 = vrot.lane.b32.xlu0 %v11393_v36, %s14435_s16  ;;  %s14437_s16 = smov 24  }
 0xa3d   :  { %1862 = vrot.lane.b32.xlu1 %v11358_v16, %s14433_s17 }
 0xa41   :  { %1940 = vrot.lane.b32.xlu1 %v11356_v14, %s14433_s17  ;;  %s14439_s17 = smov 20  }
 0xa45   :  { %1938 = vrot.lane.b32.xlu1 %v11377_v22, %s14431_s18 }
 0xaad   :  { %v1677_v5 = vpop.xlane.xlu0 %1676 }
 0xaae   :  { %v1681_v6 = vsub.f32 %v1673_v60, %v1677_v5 }
 0xab0   :  { %v1683_v8 = vmul.f32 1.442695, %v1681_v6 }
 0xab1   :  { %v1774_v9 = vpop.permute.xlu0 %1773  ;;  %v1680_v10 = vpop.xlane.xlu1 %1679 }
 0xab2   :  { %11111 = vpow2.f32 %v1683_v8  ;;  %v1682_v13 = vsub.f32 %v1674_v1, %v1680_v10  ;;  %10789 = vmatpush3.msra.mxu1 %v1774_v9 }
 0xab3   :  { %10798 = vmatprep.subr.mxu1 %v11238_v11 }
 0xab4   :  { %v1685_v18 = vmul.f32 1.442695, %v1682_v13 }
 0xab5   :  { %v1698_v19 = vpop.permute.xlu1 %1697 }
 0xab6   :  { %11113 = vpow2.f32 %v1685_v18  ;;  %10784 = vmatpush3.msra.mxu0 %v1698_v19 }
 0xab7   :  { %10793 = vmatprep.subr.mxu0 %v11238_v11 }
 0xab9   :  { %v1863_v28 = vpop.permute.xlu1 %1862 }
 0xabd   :  { %v1941_v33 = vpop.permute.xlu1 %1940 }
 0xabf   :  { %v11112_v21 = vpop.eup %11111 }
 0xac0   :  { %v1687_v23 = vsel %vm309_vm3, %v11112_v21, 0.0 }
 0xac1   :  { %1688 = vadd.xlane.f32.xlu0 %v1687_v23  ;;  %v1939_v38 = vpop.permute.xlu1 %1938 }
 0xac3   :  { %v11114_v24 = vpop.eup %11113 }
 0xac4   :  { %v1690_v25 = vsel %vm309_vm3, %v11114_v24, 0.0 }
 0xac5   :  { %1691 = vadd.xlane.f32.xlu0 %v1690_v25 }
 0xadb   :  { %1860 = vrot.lane.b32.xlu0 %v11369_v20, %s14431_s18  ;;  %s14441_s18 = smov 16  }
 0xb4a   :  { %v1689_v26 = vpop.xlane.xlu0 %1688 }
 0xb4b   :  { %11115 = vrcp.f32 %v1689_v26 }
 0xb4e   :  { %v1692_v27 = vpop.xlane.xlu0 %1691 }
 0xb4f   :  { %11117 = vrcp.f32 %v1692_v27 }
 0xb52   :  { %v1861_v37 = vpop.permute.xlu0 %1860 }
 0xb58   :  { %v11116_v29 = vpop.eup %11115 }
 0xb59   :  { %v1695_v30 = vmul.f32 %v11116_v29, %v11112_v21 }
 0xb5b   :  { %10786 = vmatmul.mubr.msk.f32.vlgmr.msra.gmra.mxu0 %vm309_vm3, %v1695_v30 }
 0xb5c   :  { %v11118_v32 = vpop.eup %11117  ;;  %10794 = vmatpush3.xpose.msk.msra.mxu0 %vm153_vm2, %v1863_v28  ;;  %10795 = vmatprep.mubr.msk.f32.mxu0 %vm11239_vm1, %v11238_v11 }
 0xb5d   :  { %v1696_v34 = vmul.f32 %v11118_v32, %v11114_v24  ;;  %10803 = vmatprep.subr.mxu0 %v11238_v11 }
 0xb5f   :  { %10791 = vmatmul.mubr.msk.f32.vlgmr.msra.gmra.mxu1 %vm309_vm3, %v1696_v34  ;;  %10796 = vmatmul.mubr.msk.f32.vlgmr.msra.gmra.mxu0 %vm153_vm2, %v1861_v37 }
 0xb60   :  { %10799 = vmatpush3.xpose.msk.msra.mxu1 %vm153_vm2, %v1941_v33  ;;  %10800 = vmatprep.mubr.msk.f32.mxu1 %vm11239_vm1, %v11238_v11 }
 0xb61   :  { %10808 = vmatprep.subr.mxu1 %v11238_v11  ;;  %10805 = vmatprep.mubr.msk.f32.mxu0 %vm11239_vm1, %v11238_v11 }
 0xb63   :  { %10801 = vmatmul.mubr.msk.f32.vlgmr.msra.gmra.mxu1 %vm153_vm2, %v1939_v38 }
 0xb64   :  { %10810 = vmatprep.mubr.msk.f32.mxu1 %vm11239_vm1, %v11238_v11 }
 0xc1b   :  { %v11577_v40 = vpop.f32.mrf.mxu0 }
 0xc1d   :  { %v10787_v42 = vpop.f32.mrf.mxu0 }
 0xc1f   :  { %v11579_v43 = vpop.f32.mrf.mxu1  ;;  %v1934_v44 = vpop.f32.mrf.mxu0 }
 0xc20   :  { %v2016_v45 = vmul.f32 0.5, %v1934_v44 }
 0xc21   :  { %v10792_v46 = vpop.f32.mrf.mxu1  ;;  %v10797_v47 = vpop.f32.mrf.mxu0 }
 0xc22   :  { %v2018_v48 = vsel %vm309_vm3, %v2016_v45, -inf }
 0xc23   :  { %2019 = vmax.xlane.f32.xlu0 %v2018_v48  ;;  %v2012_v49 = vpop.f32.mrf.mxu1 }
 0xc24   :  { %v2017_v50 = vmul.f32 0.5, %v2012_v49 }
 0xc25   :  { %v10802_v51 = vpop.f32.mrf.mxu1 }
 0xc26   :  { %v2021_v52 = vsel %vm309_vm3, %v2017_v50, -inf }
 0xc27   :  { %2022 = vmax.xlane.f32.xlu1 %v2021_v52 }
 0xc38   :  { %2040 = vrot.lane.b32.xlu1 %v11391_v35, %s14429_s19 }
 0xc39   :  { %2116 = vrot.lane.b32.xlu0 %v11393_v36, %s14429_s19  ;;  %s14443_s19 = smov 12  }
 0xc3c   :  { %2205 = vrot.lane.b32.xlu1 %v11358_v16, %s14421_s20 }
 0xc40   :  { %2283 = vrot.lane.b32.xlu1 %v11356_v14, %s14421_s20  ;;  %s14423_s20 = smov 100  }
 0xc44   :  { %2281 = vrot.lane.b32.xlu1 %v11377_v22, %s14419_s21 }
 0xcac   :  { %v2020_v53 = vpop.xlane.xlu0 %2019 }
 0xcad   :  { %v2024_v54 = vsub.f32 %v2016_v45, %v2020_v53 }
 0xcaf   :  { %v2026_v55 = vmul.f32 1.442695, %v2024_v54 }
 0xcb0   :  { %v2117_v57 = vpop.permute.xlu0 %2116  ;;  %v2023_v59 = vpop.xlane.xlu1 %2022 }
 0xcb1   :  { %11119 = vpow2.f32 %v2026_v55  ;;  %v2025_v60 = vsub.f32 %v2017_v50, %v2023_v59  ;;  %10809 = vmatpush3.msra.mxu1 %v2117_v57 }
 0xcb2   :  { %10818 = vmatprep.subr.mxu1 %v11238_v11 }
 0xcb3   :  { %v2028_v61 = vmul.f32 1.442695, %v2025_v60 }
 0xcb4   :  { %v2041_v62 = vpop.permute.xlu1 %2040 }
 0xcb5   :  { %11121 = vpow2.f32 %v2028_v61  ;;  %10804 = vmatpush3.msra.mxu0 %v2041_v62 }
 0xcb6   :  { %10813 = vmatprep.subr.mxu0 %v11238_v11 }
 0xcb8   :  { %v2206_v6 = vpop.permute.xlu1 %2205 }
 0xcbc   :  { %v2284_v13 = vpop.permute.xlu1 %2283 }
 0xcbe   :  { %v11120_v63 = vpop.eup %11119 }
 0xcbf   :  { %v2030_v0 = vsel %vm309_vm3, %v11120_v63, 0.0 }
 0xcc0   :  { %2031 = vadd.xlane.f32.xlu0 %v2030_v0  ;;  %v2282_v21 = vpop.permute.xlu1 %2281 }
 0xcc2   :  { %v11122_v1 = vpop.eup %11121 }
 0xcc3   :  { %v2033_v2 = vsel %vm309_vm3, %v11122_v1, 0.0 }
 0xcc4   :  { %2034 = vadd.xlane.f32.xlu0 %v2033_v2 }
 0xcda   :  { %2203 = vrot.lane.b32.xlu0 %v11369_v20, %s14419_s21  ;;  %s14425_s21 = smov 68  }
 0xd49   :  { %v2032_v3 = vpop.xlane.xlu0 %2031 }
 0xd4a   :  { %11123 = vrcp.f32 %v2032_v3 }
 0xd4d   :  { %v2035_v5 = vpop.xlane.xlu0 %2034 }
 0xd4e   :  { %11125 = vrcp.f32 %v2035_v5 }
 0xd51   :  { %v2204_v19 = vpop.permute.xlu0 %2203 }
 0xd57   :  { %v11124_v8 = vpop.eup %11123 }
 0xd58   :  { %v2038_v9 = vmul.f32 %v11124_v8, %v11120_v63 }
 0xd5a   :  { %10806 = vmatmul.mubr.msk.f32.vlgmr.msra.gmra.mxu0 %vm309_vm3, %v2038_v9 }
 0xd5b   :  { %v11126_v10 = vpop.eup %11125  ;;  %10814 = vmatpush3.xpose.msk.msra.mxu0 %vm153_vm2, %v2206_v6  ;;  %10815 = vmatprep.mubr.msk.f32.mxu0 %vm11239_vm1, %v11238_v11 }
 0xd5c   :  { %v2039_v18 = vmul.f32 %v11126_v10, %v11122_v1  ;;  %10823 = vmatprep.subr.mxu0 %v11238_v11 }
 0xd5e   :  { %10811 = vmatmul.mubr.msk.f32.vlgmr.msra.gmra.mxu1 %vm309_vm3, %v2039_v18  ;;  %10816 = vmatmul.mubr.msk.f32.vlgmr.msra.gmra.mxu0 %vm153_vm2, %v2204_v19 }
 0xd5f   :  { %10819 = vmatpush3.xpose.msk.msra.mxu1 %vm153_vm2, %v2284_v13  ;;  %10820 = vmatprep.mubr.msk.f32.mxu1 %vm11239_vm1, %v11238_v11 }
 0xd60   :  { %10828 = vmatprep.subr.mxu1 %v11238_v11  ;;  %10825 = vmatprep.mubr.msk.f32.mxu0 %vm11239_vm1, %v11238_v11 }
 0xd62   :  { %10821 = vmatmul.mubr.msk.f32.vlgmr.msra.gmra.mxu1 %vm153_vm2, %v2282_v21 }
 0xd63   :  { %10830 = vmatprep.mubr.msk.f32.mxu1 %vm11239_vm1, %v11238_v11 }
 0xe1a   :  { %v11615_v23 = vpop.f32.mrf.mxu0 }
 0xe1c   :  { %v10807_v24 = vpop.f32.mrf.mxu0 }
 0xe1e   :  { %v11617_v25 = vpop.f32.mrf.mxu1  ;;  %v2277_v26 = vpop.f32.mrf.mxu0 }
 0xe1f   :  { %v2359_v27 = vmul.f32 0.5, %v2277_v26 }
 0xe20   :  { %v10812_v28 = vpop.f32.mrf.mxu1  ;;  %v10817_v29 = vpop.f32.mrf.mxu0 }
 0xe21   :  { %v2361_v30 = vsel %vm309_vm3, %v2359_v27, -inf }
 0xe22   :  { %2362 = vmax.xlane.f32.xlu0 %v2361_v30  ;;  %v2355_v32 = vpop.f32.mrf.mxu1 }
 0xe23   :  { %v2360_v33 = vmul.f32 0.5, %v2355_v32 }
 0xe24   :  { %v10822_v34 = vpop.f32.mrf.mxu1 }
 0xe25   :  { %v2364_v37 = vsel %vm309_vm3, %v2360_v33, -inf }
 0xe26   :  { %2365 = vmax.xlane.f32.xlu1 %v2364_v37 }
 0xe37   :  { %2383 = vrot.lane.b32.xlu1 %v11391_v35, %s14427_s22 }
 0xe38   :  { %2459 = vrot.lane.b32.xlu0 %v11393_v36, %s14427_s22  ;;  %s14445_s22 = smov 8  }
 0xe3b   :  { %2548 = vrot.lane.b32.xlu1 %v11358_v16, %s14425_s21 }
 0xe3f   :  { %2626 = vrot.lane.b32.xlu1 %v11356_v14, %s14425_s21  ;;  %s14447_s21 = smov 4  }
 0xe43   :  { %2624 = vrot.lane.b32.xlu1 %v11377_v22, %s14423_s20 }
 0xeab   :  { %v2363_v38 = vpop.xlane.xlu0 %2362 }
 0xeac   :  { %v2367_v42 = vsub.f32 %v2359_v27, %v2363_v38 }
 0xeae   :  { %v2369_v44 = vmul.f32 1.442695, %v2367_v42 }
 0xeaf   :  { %v2460_v45 = vpop.permute.xlu0 %2459  ;;  %v2366_v46 = vpop.xlane.xlu1 %2365 }
 0xeb0   :  { %11127 = vpow2.f32 %v2369_v44  ;;  %v2368_v47 = vsub.f32 %v2360_v33, %v2366_v46  ;;  %10829 = vmatpush3.msra.mxu1 %v2460_v45 }
 0xeb1   :  { %10838 = vmatprep.subr.mxu1 %v11238_v11 }
 0xeb2   :  { %v2371_v48 = vmul.f32 1.442695, %v2368_v47  ;;  %v2894_v47 = vld [vmem:[%s14412_s2 + $0x18] sm:$0xff] }
 0xeb3   :  { %v2384_v49 = vpop.permute.xlu1 %2383 }
 0xeb4   :  { %11129 = vpow2.f32 %v2371_v48  ;;  %10824 = vmatpush3.msra.mxu0 %v2384_v49  ;;  %v2893_v48 = vld [vmem:[%s14412_s2 + $0x10] sm:$0xff]  ;;  %v2892_v49 = vld [vmem:[%s14412_s2 + $0x8] sm:$0xff] }
 0xeb5   :  { %10833 = vmatprep.subr.mxu0 %v11238_v11 }
 0xeb7   :  { %v2549_v53 = vpop.permute.xlu1 %2548 }
 0xebb   :  { %v2627_v59 = vpop.permute.xlu1 %2626 }
 0xebd   :  { %v11128_v14 = vpop.eup %11127 }
 0xebe   :  { %v2373_v16 = vsel %vm309_vm3, %v11128_v14, 0.0 }
 0xebf   :  { %2374 = vadd.xlane.f32.xlu0 %v2373_v16  ;;  %v2625_v61 = vpop.permute.xlu1 %2624 }
 0xec1   :  { %v11130_v22 = vpop.eup %11129 }
 0xec2   :  { %v2376_v50 = vsel %vm309_vm3, %v11130_v22, 0.0 }
 0xec3   :  { %2377 = vadd.xlane.f32.xlu0 %v2376_v50 }
 0xed9   :  { %2546 = vrot.lane.b32.xlu0 %v11369_v20, %s14423_s20  ;;  %s14449_s20 = smov 36  }
 0xf48   :  { %v2375_v51 = vpop.xlane.xlu0 %2374 }
 0xf49   :  { %11131 = vrcp.f32 %v2375_v51 }
 0xf4c   :  { %v2378_v52 = vpop.xlane.xlu0 %2377 }
 0xf4d   :  { %11133 = vrcp.f32 %v2378_v52 }
 0xf50   :  { %v2547_v20 = vpop.permute.xlu0 %2546 }
 0xf56   :  { %v11132_v54 = vpop.eup %11131 }
 0xf57   :  { %v2381_v55 = vmul.f32 %v11132_v54, %v11128_v14  ;;  %v2891_v14 = vld [vmem:[%s14412_s2] sm:$0xff] }
 0xf59   :  { %10826 = vmatmul.mubr.msk.f32.vlgmr.msra.gmra.mxu0 %vm309_vm3, %v2381_v55 }
 0xf5a   :  { %v11134_v57 = vpop.eup %11133  ;;  %10834 = vmatpush3.xpose.msk.msra.mxu0 %vm153_vm2, %v2549_v53  ;;  %10835 = vmatprep.mubr.msk.f32.mxu0 %vm11239_vm1, %v11238_v11 }
 0xf5b   :  { %v2382_v60 = vmul.f32 %v11134_v57, %v11130_v22  ;;  %10843 = vmatprep.subr.mxu0 %v11238_v11  ;;  %v11721_v57 = vsub.s32 3, %v11329_v4 }
 0xf5d   :  { %10831 = vmatmul.mubr.msk.f32.vlgmr.msra.gmra.mxu1 %vm309_vm3, %v2382_v60  ;;  %10836 = vmatmul.mubr.msk.f32.vlgmr.msra.gmra.mxu0 %vm153_vm2, %v2547_v20 }
 0xf5e   :  { %10839 = vmatpush3.xpose.msk.msra.mxu1 %vm153_vm2, %v2627_v59  ;;  %10840 = vmatprep.mubr.msk.f32.mxu1 %vm11239_vm1, %v11238_v11  ;;  %v11726_v59 = vld [vmem:[%s14411_s6] sm:$0xff] }
 0xf5f   :  { %10848 = vmatprep.subr.mxu1 %v11238_v11  ;;  %10845 = vmatprep.mubr.msk.f32.mxu0 %vm11239_vm1, %v11238_v11  ;;  %v2898_v60 = vrot.slane %v11726_v59, %v11721_v57 }
 0xf61   :  { %10841 = vmatmul.mubr.msk.f32.vlgmr.msra.gmra.mxu1 %vm153_vm2, %v2625_v61 }
 0xf62   :  { %10850 = vmatprep.mubr.msk.f32.mxu1 %vm11239_vm1, %v11238_v11 }
0x1019   :  { %v11653_v62 = vpop.f32.mrf.mxu0 }
0x101b   :  { %v10827_v63 = vpop.f32.mrf.mxu0 }
0x101d   :  { %v2531_v0 = vpop.f32.mrf.mxu1  ;;  %v2620_v1 = vpop.f32.mrf.mxu0 }
0x101e   :  { %v2702_v2 = vmul.f32 0.5, %v2620_v1 }
0x101f   :  { %v10832_v3 = vpop.f32.mrf.mxu1  ;;  %v10837_v5 = vpop.f32.mrf.mxu0 }
0x1020   :  { %v2704_v6 = vsel %vm309_vm3, %v2702_v2, -inf  ;;  %v11233_v3 = vld [vmem:[%s14410_s0] sm:$0xff] }
0x1021   :  { %2705 = vmax.xlane.f32.xlu0 %v2704_v6  ;;  %v2698_v8 = vpop.f32.mrf.mxu1 }
0x1022   :  { %v2703_v9 = vmul.f32 0.5, %v2698_v8 }
0x1023   :  { %v10842_v10 = vpop.f32.mrf.mxu1 }
0x1024   :  { %v2707_v13 = vsel %vm309_vm3, %v2703_v9, -inf }
0x1025   :  { %2708 = vmax.xlane.f32.xlu1 %v2707_v13 }
0x1036   :  { %2726 = vrot.lane.b32.xlu1 %v11391_v35, %s14449_s20 }
0x103a   :  { %822 = vrot.lane.b32.xlu1 %v11463_v39, %s14447_s21 }
0x103e   :  { %824 = vrot.lane.b32.xlu1 %v11465_v41, %s14447_s21  ;;  %s14469_s21 = smov 4  }
0x1042   :  { %1167 = vrot.lane.b32.xlu1 %v11503_v15, %s14445_s22 }
0x1046   :  { %1510 = vrot.lane.b32.xlu1 %v11541_v58, %s14443_s19 }
0x104a   :  { %1853 = vrot.lane.b32.xlu1 %v11579_v43, %s14441_s18 }
0x104e   :  { %2196 = vrot.lane.b32.xlu1 %v11617_v25, %s14439_s17 }
0x1052   :  { %2539 = vrot.lane.b32.xlu1 %v2531_v0, %s14437_s16  ;;  %v11232_v0 = vld [vmem:[%s14410_s0 + $0x8] sm:$0xff]  ;;  %s14472_s0 = smov 16  }
0x10aa   :  { %v2706_v35 = vpop.xlane.xlu0 %2705 }
0x10ab   :  { %v2710_v39 = vsub.f32 %v2702_v2, %v2706_v35 }
0x10ad   :  { %v2712_v41 = vmul.f32 1.442695, %v2710_v39 }
0x10ae   :  { %v2709_v18 = vpop.xlane.xlu1 %2708 }
0x10af   :  { %11135 = vpow2.f32 %v2712_v41  ;;  %v2711_v15 = vsub.f32 %v2703_v9, %v2709_v18 }
0x10b1   :  { %v2714_v19 = vmul.f32 1.442695, %v2711_v15 }
0x10b2   :  { %v2727_v21 = vpop.permute.xlu1 %2726 }
0x10b3   :  { %11137 = vpow2.f32 %v2714_v19  ;;  %10844 = vmatpush3.msra.mxu0 %v2727_v21  ;;  %v3070_v21 = vld [vmem:[%s14413_s3 + $0x188] sm:$0xff] }
0x10b4   :  { %10853 = vmatprep.subr.mxu0 %v2894_v47 }
0x10b6   :  { %v823_v58 = vpop.permute.xlu1 %822 }
0x10b7   :  { %829 = vst.msk [vmem:[#allocation2] sm:$0xff] %vm828_vm4, %v823_v58  ;;  %v3072_v58 = vld [vmem:[%s14413_s3 + $0x198] sm:$0xff] }
0x10ba   :  { %v825_v43 = vpop.permute.xlu1 %824 }
0x10bb   :  { %830 = vst.msk [vmem:[#allocation2 + $0x8] sm:$0xff] %vm828_vm4, %v825_v43  ;;  %v3069_v43 = vld [vmem:[%s14413_s3 + $0x180] sm:$0xff] }
0x10bc   :  { %v11136_v24 = vpop.eup %11135 }
0x10bd   :  { %v2716_v25 = vsel %vm309_vm3, %v11136_v24, 0.0 }
0x10be   :  { %2717 = vadd.xlane.f32.xlu0 %v2716_v25  ;;  %v1168_v26 = vpop.permute.xlu1 %1167  ;;  %v3054_v25 = vld [vmem:[%s14413_s3 + $0x108] sm:$0xff] }
0x10bf   :  { %1173 = vst.msk [vmem:[#allocation2 + $0x8] sm:$0xff] %vm1171_vm5, %v1168_v26  ;;  %v3056_v26 = vld [vmem:[%s14413_s3 + $0x118] sm:$0xff] }
0x10c0   :  { %v11138_v27 = vpop.eup %11137 }
0x10c1   :  { %v2719_v28 = vsel %vm309_vm3, %v11138_v27, 0.0 }
0x10c2   :  { %2720 = vadd.xlane.f32.xlu0 %v2719_v28  ;;  %v1511_v29 = vpop.permute.xlu1 %1510  ;;  %v3055_v28 = vld [vmem:[%s14413_s3 + $0x110] sm:$0xff] }
0x10c3   :  { %1516 = vst.msk [vmem:[#allocation2 + $0x8] sm:$0xff] %vm1514_vm6, %v1511_v29  ;;  %v3038_v29 = vld [vmem:[%s14413_s3 + $0x88] sm:$0xff] }
0x10c6   :  { %v1854_v30 = vpop.permute.xlu1 %1853 }
0x10c7   :  { %1859 = vst.msk [vmem:[#allocation2 + $0x8] sm:$0xff] %vm1857_vm7, %v1854_v30  ;;  %v3040_v30 = vld [vmem:[%s14413_s3 + $0x98] sm:$0xff] }
0x10ca   :  { %v2197_v32 = vpop.permute.xlu1 %2196 }
0x10cb   :  { %2202 = vst.msk [vmem:[#allocation2 + $0x8] sm:$0xff] %vm2200_vm8, %v2197_v32  ;;  %v3037_v32 = vld [vmem:[%s14413_s3 + $0x80] sm:$0xff] }
0x10ce   :  { %v2540_v33 = vpop.permute.xlu1 %2539 }
0x10cf   :  { %2545 = vst.msk [vmem:[#allocation2 + $0x8] sm:$0xff] %vm2543_vm9, %v2540_v33  ;;  %v3039_v33 = vld [vmem:[%s14413_s3 + $0x90] sm:$0xff] }
0x10d8   :  { %2802 = vrot.lane.b32.xlu0 %v11393_v36, %s14449_s20 }
0x10dc   :  { %1165 = vrot.lane.b32.xlu0 %v11501_v12, %s14445_s22  ;;  %s14473_s22 = smov 20  }
0x10e0   :  { %1508 = vrot.lane.b32.xlu0 %v11539_v56, %s14443_s19 }
0x10e4   :  { %1851 = vrot.lane.b32.xlu0 %v11577_v40, %s14441_s18 }
0x10e8   :  { %2194 = vrot.lane.b32.xlu0 %v11615_v23, %s14439_s17 }
0x10ec   :  { %2537 = vrot.lane.b32.xlu0 %v11653_v62, %s14437_s16  ;;  %s14453_s16 = smov 28  }
0x1147   :  { %v2718_v34 = vpop.xlane.xlu0 %2717 }
0x1148   :  { %11139 = vrcp.f32 %v2718_v34  ;;  %v3022_v34 = vld [vmem:[%s14413_s3 + $0x8] sm:$0xff] }
0x114b   :  { %v2721_v37 = vpop.xlane.xlu0 %2720 }
0x114c   :  { %11141 = vrcp.f32 %v2721_v37  ;;  %v3024_v37 = vld [vmem:[%s14413_s3 + $0x18] sm:$0xff] }
0x114f   :  { %v2803_v36 = vpop.permute.xlu0 %2802 }
0x1150   :  { %10849 = vmatpush3.msra.mxu1 %v2803_v36  ;;  %v3021_v36 = vld [vmem:[%s14413_s3] sm:$0xff] }
0x1151   :  { %3199 = vmatprep.subr.mxu1 %v3070_v21  ;;  %v3046_v21 = vld [vmem:[%s14413_s3 + $0xc8] sm:$0xff] }
0x1153   :  { %v1166_v38 = vpop.permute.xlu0 %1165 }
0x1154   :  { %1172 = vst.msk [vmem:[#allocation2] sm:$0xff] %vm1171_vm5, %v1166_v38  ;;  %v3023_v38 = vld [vmem:[%s14413_s3 + $0x10] sm:$0xff] }
0x1155   :  { %v11140_v12 = vpop.eup %11139 }
0x1156   :  { %v2724_v56 = vmul.f32 %v11140_v12, %v11136_v24  ;;  %v3071_v24 = vld [vmem:[%s14413_s3 + $0x190] sm:$0xff]  ;;  %v3074_v12 = vld [vmem:[%s14413_s3 + $0x1a8] sm:$0xff] }
0x1157   :  { %v1509_v42 = vpop.permute.xlu0 %1508 }
0x1158   :  { %1515 = vst.msk [vmem:[#allocation2] sm:$0xff] %vm1514_vm6, %v1509_v42  ;;  %10846 = vmatmul.mubr.msk.f32.vlgmr.msra.gmra.mxu0 %vm309_vm3, %v2724_v56  ;;  %v3076_v56 = vld [vmem:[%s14413_s3 + $0x1b8] sm:$0xff] }
0x1159   :  { %v11142_v40 = vpop.eup %11141  ;;  %10854 = vmatpush3.msra.mxu0 %v2894_v47  ;;  %v11795_v47 = vsub.s32 5, %v11329_v4 }
0x115a   :  { %v2725_v23 = vmul.f32 %v11142_v40, %v11138_v27  ;;  %10855 = vmatprep.subr.mxu0 %v2893_v48  ;;  %v3053_v27 = vld [vmem:[%s14413_s3 + $0x100] sm:$0xff] }
0x115b   :  { %v1852_v44 = vpop.permute.xlu0 %1851  ;;  %10856 = vmatpush3.msra.mxu0 %v2893_v48  ;;  %v11798_v48 = vsub.s32 6, %v11329_v4 }
0x115c   :  { %1858 = vst.msk [vmem:[#allocation2] sm:$0xff] %vm1857_vm7, %v1852_v44  ;;  %10851 = vmatmul.mubr.msk.f32.vlgmr.msra.gmra.mxu1 %vm309_vm3, %v2725_v23  ;;  %10857 = vmatprep.subr.mxu0 %v2892_v49 }
0x115d   :  { %3239 = vmatprep.mubr.f32.mxu1 %v11238_v11  ;;  %10858 = vmatpush3.msra.mxu0 %v2892_v49  ;;  %v3012_v49 = vrot.slane %v11726_v59, %v11795_v47 }
0x115e   :  { %10859 = vmatprep.subr.mxu0 %v2891_v14  ;;  %3200 = vmatpush1.msra.mxu1 %v3069_v43  ;;  %v3045_v43 = vld [vmem:[%s14413_s3 + $0xc0] sm:$0xff] }
0x115f   :  { %v2195_v45 = vpop.permute.xlu0 %2194  ;;  %10860 = vmatpush3.msra.mxu0 %v2891_v14  ;;  %3201 = vmatprep.subr.mxu1 %v3054_v25  ;;  %v3030_v25 = vld [vmem:[%s14413_s3 + $0x48] sm:$0xff] }
0x1160   :  { %2201 = vst.msk [vmem:[#allocation2] sm:$0xff] %vm2200_vm8, %v2195_v45  ;;  %3276 = vmatprep.subr.mxu0 %v3072_v58  ;;  %3202 = vmatpush1.msra.mxu1 %v3053_v27  ;;  %v3048_v58 = vld [vmem:[%s14413_s3 + $0xd8] sm:$0xff]  ;;  %v3029_v27 = vld [vmem:[%s14413_s3 + $0x40] sm:$0xff] }
0x1161   :  { %3203 = vmatprep.subr.mxu1 %v3038_v29  ;;  %v3082_v29 = vld [vmem:[%s14413_s3 + $0x1e8] sm:$0xff] }
0x1162   :  { %3204 = vmatpush1.msra.mxu1 %v3037_v32  ;;  %v3081_v32 = vld [vmem:[%s14413_s3 + $0x1e0] sm:$0xff] }
0x1163   :  { %v2538_v46 = vpop.permute.xlu0 %2537  ;;  %3205 = vmatprep.subr.mxu1 %v3022_v34  ;;  %v3066_v34 = vld [vmem:[%s14413_s3 + $0x168] sm:$0xff] }
0x1164   :  { %2544 = vst.msk [vmem:[#allocation2] sm:$0xff] %vm2543_vm9, %v2538_v46  ;;  %3206 = vmatpush1.msra.mxu1 %v3021_v36  ;;  %v3065_v36 = vld [vmem:[%s14413_s3 + $0x160] sm:$0xff] }
0x1165   :  { %3353 = vmatprep.subr.mxu1 %v3074_v12  ;;  %v3050_v12 = vld [vmem:[%s14413_s3 + $0xe8] sm:$0xff] }
0x1218   :  { %v2798_v16 = vpop.f32.mrf.mxu0 }
0x1219   :  { %2880 = vrot.lane.b32.xlu0 %v2798_v16, %s14453_s16  ;;  %v3018_v16 = vrot.slane %v11726_v59, %v11798_v48  ;;  %v3060_v59 = vld [vmem:[%s14413_s3 + $0x138] sm:$0xff] }
0x121a   :  { %v10847_v22 = vpop.f32.mrf.mxu0 }
0x121c   :  { %v2874_v50 = vpop.f32.mrf.mxu1 }
0x121d   :  { %2882 = vrot.lane.b32.xlu1 %v2874_v50, %s14453_s16  ;;  %s14471_s16 = smov 12  }
0x121e   :  { %v10852_v51 = vpop.f32.mrf.mxu1 }
0x128b   :  { %v2881_v52 = vpop.permute.xlu0 %2880 }
0x128c   :  { %2887 = vst.msk [vmem:[#allocation2] sm:$0xff] %vm2886_vm10, %v2881_v52 }
0x128f   :  { %v2883_v53 = vpop.permute.xlu1 %2882 }
0x1290   :  { %2888 = vst.msk [vmem:[#allocation2 + $0x8] sm:$0xff] %vm2886_vm10, %v2883_v53 }
0x1293   :  { %v2889_v54 = vld [vmem:[#allocation2] sm:$0xff] }
0x1294   :  { %10861 = vmatprep.mubr.msk.f32.mxu0 %vm42_vm0, %v2889_v54  ;;  %v3073_v54 = vld [vmem:[%s14413_s3 + $0x1a0] sm:$0xff] }
0x1297   :  { %v2890_v55 = vld [vmem:[#allocation2 + $0x8] sm:$0xff] }
0x1298   :  { %10862 = vmatmul.mubr.msk.f32.vlgmr.msra.gmra.mxu0 %vm42_vm0, %v2890_v55  ;;  %v3075_v55 = vld [vmem:[%s14413_s3 + $0x1b0] sm:$0xff] }
0x1299   :  { %3316 = vmatprep.mubr.f32.mxu0 %v11238_v11  ;;  %3277 = vmatpush1.msra.mxu0 %v3071_v24  ;;  %v3047_v24 = vld [vmem:[%s14413_s3 + $0xd0] sm:$0xff] }
0x129a   :  { %3278 = vmatprep.subr.mxu0 %v3056_v26  ;;  %v3032_v26 = vld [vmem:[%s14413_s3 + $0x58] sm:$0xff] }
0x129b   :  { %3279 = vmatpush1.msra.mxu0 %v3055_v28  ;;  %v3031_v28 = vld [vmem:[%s14413_s3 + $0x50] sm:$0xff] }
0x129c   :  { %3280 = vmatprep.subr.mxu0 %v3040_v30  ;;  %v3084_v30 = vld [vmem:[%s14413_s3 + $0x1f8] sm:$0xff] }
0x129d   :  { %3281 = vmatpush1.msra.mxu0 %v3039_v33  ;;  %v3083_v33 = vld [vmem:[%s14413_s3 + $0x1f0] sm:$0xff] }
0x129e   :  { %3282 = vmatprep.subr.mxu0 %v3024_v37  ;;  %v3068_v37 = vld [vmem:[%s14413_s3 + $0x178] sm:$0xff] }
0x129f   :  { %3283 = vmatpush1.msra.mxu0 %v3023_v38  ;;  %v3067_v38 = vld [vmem:[%s14413_s3 + $0x170] sm:$0xff] }
0x12a0   :  { %3430 = vmatprep.subr.mxu0 %v3076_v56  ;;  %v3052_v56 = vld [vmem:[%s14413_s3 + $0xf8] sm:$0xff] }
0x1358   :  { %v10863_v20 = vpop.f32.mrf.mxu0 }
0x1359   :  { %v2977_v61 = vadd.f32 %v10863_v20, %v2898_v60 }
0x135a   :  { %v2971_v62 = vpop.f32.mrf.mxu0 }
0x135b   :  { %v2972_v63 = vadd.f32 %v2971_v62, %v2898_v60  ;;  %v2981_v1 = vadd.f32 %v11232_v0, %v2977_v61  ;;  %v3058_v60 = vld [vmem:[%s14413_s3 + $0x128] sm:$0xff]  ;;  %v3057_v61 = vld [vmem:[%s14413_s3 + $0x120] sm:$0xff]  ;;  %v3059_v62 = vld [vmem:[%s14413_s3 + $0x130] sm:$0xff] }
0x135c   :  { %v3042_v0 = vld [vmem:[%s14413_s3 + $0xa8] sm:$0xff] }
0x135d   :  { %v2985_v2 = vsel %vm42_vm0, %v2981_v1, 0.0  ;;  %v2980_v5 = vadd.f32 %v11233_v3, %v2972_v63  ;;  %v3043_v3 = vld [vmem:[%s14413_s3 + $0xb0] sm:$0xff] }
0x135e   :  { %2986 = vadd.xlane.f32.xlu1 %v2985_v2  ;;  %v3041_v2 = vld [vmem:[%s14413_s3 + $0xa0] sm:$0xff] }
0x135f   :  { %v2982_v6 = vsel %vm42_vm0, %v2980_v5, 0.0 }
0x1360   :  { %2983 = vadd.xlane.f32.xlu0 %v2982_v6  ;;  %v3028_v6 = vld [vmem:[%s14413_s3 + $0x38] sm:$0xff] }
0x13e7   :  { %v2987_v8 = vpop.xlane.xlu1 %2986 }
0x13e8   :  { %v2990_v9 = vmul.f32 0.03125, %v2987_v8  ;;  %v3025_v8 = vld [vmem:[%s14413_s3 + $0x20] sm:$0xff] }
0x13e9   :  { %v2984_v10 = vpop.xlane.xlu0 %2983 }
0x13ea   :  { %v2989_v13 = vmul.f32 0.03125, %v2984_v10  ;;  %v2992_v35 = vsub.f32 %v2981_v1, %v2990_v9  ;;  %v3044_v1 = vld [vmem:[%s14413_s3 + $0xb8] sm:$0xff]  ;;  %v3027_v9 = vld [vmem:[%s14413_s3 + $0x30] sm:$0xff]  ;;  %v3078_v10 = vld [vmem:[%s14413_s3 + $0x1c8] sm:$0xff] }
0x13ec   :  { %v2991_v39 = vsub.f32 %v2980_v5, %v2989_v13  ;;  %v2994_v15 = vmul.f32 %v2992_v35, %v2992_v35  ;;  %v3026_v5 = vld [vmem:[%s14413_s3 + $0x28] sm:$0xff]  ;;  %v3080_v13 = vld [vmem:[%s14413_s3 + $0x1d8] sm:$0xff] }
0x13ee   :  { %v2993_v41 = vmul.f32 %v2991_v39, %v2991_v39  ;;  %v2998_v19 = vsel %vm42_vm0, %v2994_v15, 0.0  ;;  %v3061_v15 = vld [vmem:[%s14413_s3 + $0x140] sm:$0xff] }
0x13f0   :  { %v2995_v18 = vsel %vm42_vm0, %v2993_v41, 0.0  ;;  %v3062_v41 = vld [vmem:[%s14413_s3 + $0x148] sm:$0xff] }
0x13f1   :  { %2996 = vadd.xlane.f32.xlu0 %v2995_v18  ;;  %v3064_v18 = vld [vmem:[%s14413_s3 + $0x158] sm:$0xff] }
0x13f5   :  { %2999 = vadd.xlane.f32.xlu0 %v2998_v19  ;;  %v3063_v19 = vld [vmem:[%s14413_s3 + $0x150] sm:$0xff] }
0x147a   :  { %v2997_v42 = vpop.xlane.xlu0 %2996 }
0x147b   :  { %v3001_v40 = vmul.f32 0.03125, %v2997_v42  ;;  %v3049_v42 = vld [vmem:[%s14413_s3 + $0xe0] sm:$0xff] }
0x147d   :  { %v3003_v23 = vadd.f32 1e-05, %v3001_v40  ;;  %v3051_v40 = vld [vmem:[%s14413_s3 + $0xf0] sm:$0xff] }
0x147e   :  { %v3000_v44 = vpop.xlane.xlu0 %2999 }
0x147f   :  { %11143 = vrsqrt.f32 %v3003_v23  ;;  %v3002_v45 = vmul.f32 0.03125, %v3000_v44  ;;  %v3034_v23 = vld [vmem:[%s14413_s3 + $0x68] sm:$0xff]  ;;  %v3036_v44 = vld [vmem:[%s14413_s3 + $0x78] sm:$0xff] }
0x1481   :  { %v3004_v46 = vadd.f32 1e-05, %v3002_v45  ;;  %v3033_v45 = vld [vmem:[%s14413_s3 + $0x60] sm:$0xff] }
0x1483   :  { %11145 = vrsqrt.f32 %v3004_v46  ;;  %v3035_v46 = vld [vmem:[%s14413_s3 + $0x70] sm:$0xff] }
0x148c   :  { %v11144_v14 = vpop.eup %11143 }
0x148d   :  { %v3007_v22 = vmul.f32 %v11144_v14, %v2991_v39  ;;  %v3079_v39 = vld [vmem:[%s14413_s3 + $0x1d0] sm:$0xff]  ;;  %v3886_v14 = vld [vmem:[%s14414_s5 + $0x1f8] sm:$0xff] }
0x148f   :  { %v3013_v50 = vmul.f32 %v3012_v49, %v3007_v22  ;;  %v3870_v22 = vld [vmem:[%s14414_s5 + $0x178] sm:$0xff] }
0x1490   :  { %v11146_v51 = vpop.eup %11145 }
0x1491   :  { %v11804_v52 = vadd.f32 %v3018_v16, %v3013_v50  ;;  %v3008_v53 = vmul.f32 %v11146_v51, %v2992_v35  ;;  %v3077_v35 = vld [vmem:[%s14413_s3 + $0x1c0] sm:$0xff]  ;;  %v3853_v50 = vld [vmem:[%s14414_s5 + $0xf0] sm:$0xff] }
0x1492   :  { %v3885_v51 = vld [vmem:[%s14414_s5 + $0x1f0] sm:$0xff] }
0x1493   :  { %v3014_v20 = vmul.f32 %v3012_v49, %v3008_v53  ;;  %9500 = vmatmul.mubr.msk.f32.vlgmr.msra.gmra.mxu1 %vm42_vm0, %v11804_v52  ;;  %9502 = vmatmul.mubr.msk.f32.vlgmr.msra.gmra.mxu0 %vm42_vm0, %v11804_v52  ;;  %v3854_v49 = vld [vmem:[%s14414_s5 + $0xf8] sm:$0xff]  ;;  %v3837_v53 = vld [vmem:[%s14414_s5 + $0x70] sm:$0xff] }
0x1494   :  { %3354 = vmatpush1.msra.mxu1 %v3073_v54  ;;  %3431 = vmatpush1.msra.mxu0 %v3075_v55  ;;  %v3869_v54 = vld [vmem:[%s14414_s5 + $0x170] sm:$0xff]  ;;  %v3852_v55 = vld [vmem:[%s14414_s5 + $0xe8] sm:$0xff] }
0x1495   :  { %v11828_v63 = vadd.f32 %v3018_v16, %v3014_v20  ;;  %3355 = vmatprep.subr.mxu1 %v3058_v60  ;;  %3432 = vmatprep.subr.mxu0 %v3060_v59  ;;  %v3838_v16 = vld [vmem:[%s14414_s5 + $0x78] sm:$0xff]  ;;  %v3884_v60 = vld [vmem:[%s14414_s5 + $0x1e8] sm:$0xff] }
0x1496   :  { %3245 = vmatprep.mubr.f32.mxu1 %v11238_v11  ;;  %3322 = vmatprep.mubr.f32.mxu0 %v11238_v11  ;;  %v3836_v59 = vld [vmem:[%s14414_s5 + $0x68] sm:$0xff] }
0x1497   :  { %3356 = vmatpush1.msra.mxu1 %v3057_v61  ;;  %3433 = vmatpush1.msra.mxu0 %v3059_v62  ;;  %v3868_v20 = vld [vmem:[%s14414_s5 + $0x168] sm:$0xff]  ;;  %v3851_v61 = vld [vmem:[%s14414_s5 + $0xe0] sm:$0xff] }
0x1498   :  { %9501 = vmatmul.mubr.msk.f32.gmra.mxu1 %vm42_vm0, %v11828_v63  ;;  %9503 = vmatmul.mubr.msk.f32.gmra.mxu0 %vm42_vm0, %v11828_v63  ;;  %v3883_v62 = vld [vmem:[%s14414_s5 + $0x1e0] sm:$0xff] }
0x1499   :  { %3357 = vmatprep.subr.mxu1 %v3042_v0  ;;  %3434 = vmatprep.subr.mxu0 %v3044_v1  ;;  %v3835_v0 = vld [vmem:[%s14414_s5 + $0x60] sm:$0xff] }
0x149a   :  { %3358 = vmatpush1.msra.mxu1 %v3041_v2  ;;  %3435 = vmatpush1.msra.mxu0 %v3043_v3  ;;  %v3867_v1 = vld [vmem:[%s14414_s5 + $0x160] sm:$0xff]  ;;  %v3850_v2 = vld [vmem:[%s14414_s5 + $0xd8] sm:$0xff] }
0x149b   :  { %3359 = vmatprep.subr.mxu1 %v3026_v5  ;;  %3436 = vmatprep.subr.mxu0 %v3028_v6  ;;  %v3882_v3 = vld [vmem:[%s14414_s5 + $0x1d8] sm:$0xff] }
0x149c   :  { %3360 = vmatpush1.msra.mxu1 %v3025_v8  ;;  %3393 = vmatprep.mubr.f32.mxu1 %v11238_v11  ;;  %v3834_v5 = vld [vmem:[%s14414_s5 + $0x58] sm:$0xff]  ;;  %v3849_v8 = vld [vmem:[%s14414_s5 + $0xd0] sm:$0xff] }
0x149d   :  { %3437 = vmatpush1.msra.mxu0 %v3027_v9  ;;  %3470 = vmatprep.mubr.f32.mxu0 %v11238_v11  ;;  %v3866_v6 = vld [vmem:[%s14414_s5 + $0x158] sm:$0xff]  ;;  %v3881_v9 = vld [vmem:[%s14414_s5 + $0x1d0] sm:$0xff] }
0x149e   :  { %9504 = vmatmul.mubr.msk.f32.vlgmr.msra.gmra.mxu1 %vm42_vm0, %v11804_v52  ;;  %9506 = vmatmul.mubr.msk.f32.vlgmr.msra.gmra.mxu0 %vm42_vm0, %v11804_v52 }
0x149f   :  { %3507 = vmatprep.subr.mxu1 %v3078_v10  ;;  %3584 = vmatprep.subr.mxu0 %v3080_v13  ;;  %v3833_v10 = vld [vmem:[%s14414_s5 + $0x50] sm:$0xff] }
0x14a0   :  { %3508 = vmatpush1.msra.mxu1 %v3077_v35  ;;  %3585 = vmatpush1.msra.mxu0 %v3079_v39  ;;  %v3865_v13 = vld [vmem:[%s14414_s5 + $0x150] sm:$0xff]  ;;  %v3848_v35 = vld [vmem:[%s14414_s5 + $0xc8] sm:$0xff] }
0x14a1   :  { %3509 = vmatprep.subr.mxu1 %v3062_v41  ;;  %3586 = vmatprep.subr.mxu0 %v3064_v18  ;;  %v3880_v39 = vld [vmem:[%s14414_s5 + $0x1c8] sm:$0xff] }
0x14a2   :  { %3399 = vmatprep.mubr.f32.mxu1 %v11238_v11  ;;  %3476 = vmatprep.mubr.f32.mxu0 %v11238_v11  ;;  %v3832_v41 = vld [vmem:[%s14414_s5 + $0x48] sm:$0xff] }
0x14a3   :  { %3510 = vmatpush1.msra.mxu1 %v3061_v15  ;;  %3587 = vmatpush1.msra.mxu0 %v3063_v19  ;;  %v3864_v18 = vld [vmem:[%s14414_s5 + $0x148] sm:$0xff]  ;;  %v3847_v15 = vld [vmem:[%s14414_s5 + $0xc0] sm:$0xff] }
0x14a4   :  { %9505 = vmatmul.mubr.msk.f32.gmra.mxu1 %vm42_vm0, %v11828_v63  ;;  %9507 = vmatmul.mubr.msk.f32.gmra.mxu0 %vm42_vm0, %v11828_v63  ;;  %v3879_v19 = vld [vmem:[%s14414_s5 + $0x1c0] sm:$0xff] }
0x14a5   :  { %3511 = vmatprep.subr.mxu1 %v3046_v21  ;;  %3588 = vmatprep.subr.mxu0 %v3048_v58  ;;  %v3831_v21 = vld [vmem:[%s14414_s5 + $0x40] sm:$0xff] }
0x14a6   :  { %3512 = vmatpush1.msra.mxu1 %v3045_v43  ;;  %3589 = vmatpush1.msra.mxu0 %v3047_v24  ;;  %v3863_v58 = vld [vmem:[%s14414_s5 + $0x140] sm:$0xff]  ;;  %v3846_v43 = vld [vmem:[%s14414_s5 + $0xb8] sm:$0xff] }
0x14a7   :  { %3513 = vmatprep.subr.mxu1 %v3030_v25  ;;  %3590 = vmatprep.subr.mxu0 %v3032_v26  ;;  %v3878_v24 = vld [vmem:[%s14414_s5 + $0x1b8] sm:$0xff] }
0x14a8   :  { %3514 = vmatpush1.msra.mxu1 %v3029_v27  ;;  %3547 = vmatprep.mubr.f32.mxu1 %v11238_v11  ;;  %v3830_v25 = vld [vmem:[%s14414_s5 + $0x38] sm:$0xff]  ;;  %v3845_v27 = vld [vmem:[%s14414_s5 + $0xb0] sm:$0xff] }
0x14a9   :  { %3591 = vmatpush1.msra.mxu0 %v3031_v28  ;;  %3624 = vmatprep.mubr.f32.mxu0 %v11238_v11  ;;  %v3862_v26 = vld [vmem:[%s14414_s5 + $0x138] sm:$0xff]  ;;  %v3877_v28 = vld [vmem:[%s14414_s5 + $0x1b0] sm:$0xff] }
0x14aa   :  { %9508 = vmatmul.mubr.msk.f32.vlgmr.msra.gmra.mxu1 %vm42_vm0, %v11804_v52  ;;  %9510 = vmatmul.mubr.msk.f32.vlgmr.msra.gmra.mxu0 %vm42_vm0, %v11804_v52 }
0x14ab   :  { %3661 = vmatprep.subr.mxu1 %v3082_v29  ;;  %3738 = vmatprep.subr.mxu0 %v3084_v30  ;;  %v3829_v29 = vld [vmem:[%s14414_s5 + $0x30] sm:$0xff] }
0x14ac   :  { %3662 = vmatpush1.msra.mxu1 %v3081_v32  ;;  %3739 = vmatpush1.msra.mxu0 %v3083_v33  ;;  %v3861_v30 = vld [vmem:[%s14414_s5 + $0x130] sm:$0xff]  ;;  %v3844_v32 = vld [vmem:[%s14414_s5 + $0xa8] sm:$0xff] }
0x14ad   :  { %3663 = vmatprep.subr.mxu1 %v3066_v34  ;;  %3740 = vmatprep.subr.mxu0 %v3068_v37  ;;  %v3876_v33 = vld [vmem:[%s14414_s5 + $0x1a8] sm:$0xff] }
0x14ae   :  { %3553 = vmatprep.mubr.f32.mxu1 %v11238_v11  ;;  %3630 = vmatprep.mubr.f32.mxu0 %v11238_v11  ;;  %v3828_v34 = vld [vmem:[%s14414_s5 + $0x28] sm:$0xff] }
0x14af   :  { %3664 = vmatpush1.msra.mxu1 %v3065_v36  ;;  %3741 = vmatpush1.msra.mxu0 %v3067_v38  ;;  %v3860_v37 = vld [vmem:[%s14414_s5 + $0x128] sm:$0xff]  ;;  %v3843_v36 = vld [vmem:[%s14414_s5 + $0xa0] sm:$0xff] }
0x14b0   :  { %9509 = vmatmul.mubr.msk.f32.gmra.mxu1 %vm42_vm0, %v11828_v63  ;;  %9511 = vmatmul.mubr.msk.f32.gmra.mxu0 %vm42_vm0, %v11828_v63  ;;  %v3875_v38 = vld [vmem:[%s14414_s5 + $0x1a0] sm:$0xff] }
0x14b1   :  { %3665 = vmatprep.subr.mxu1 %v3050_v12  ;;  %3742 = vmatprep.subr.mxu0 %v3052_v56  ;;  %v3827_v12 = vld [vmem:[%s14414_s5 + $0x20] sm:$0xff] }
0x14b2   :  { %3666 = vmatpush1.msra.mxu1 %v3049_v42  ;;  %3743 = vmatpush1.msra.mxu0 %v3051_v40  ;;  %v3859_v56 = vld [vmem:[%s14414_s5 + $0x120] sm:$0xff]  ;;  %v3842_v42 = vld [vmem:[%s14414_s5 + $0x98] sm:$0xff] }
0x14b3   :  { %3667 = vmatprep.subr.mxu1 %v3034_v23  ;;  %3744 = vmatprep.subr.mxu0 %v3036_v44  ;;  %v3874_v40 = vld [vmem:[%s14414_s5 + $0x198] sm:$0xff] }
0x14b4   :  { %3668 = vmatpush1.msra.mxu1 %v3033_v45  ;;  %3701 = vmatprep.mubr.f32.mxu1 %v11238_v11  ;;  %v3826_v23 = vld [vmem:[%s14414_s5 + $0x18] sm:$0xff]  ;;  %v3841_v45 = vld [vmem:[%s14414_s5 + $0x90] sm:$0xff] }
0x14b5   :  { %3745 = vmatpush1.msra.mxu0 %v3035_v46  ;;  %3778 = vmatprep.mubr.f32.mxu0 %v11238_v11  ;;  %v3858_v44 = vld [vmem:[%s14414_s5 + $0x118] sm:$0xff]  ;;  %v3873_v46 = vld [vmem:[%s14414_s5 + $0x190] sm:$0xff] }
0x14b6   :  { %9512 = vmatmul.mubr.msk.f32.vlgmr.msra.gmra.mxu1 %vm42_vm0, %v11804_v52  ;;  %9514 = vmatmul.mubr.msk.f32.vlgmr.msra.gmra.mxu0 %vm42_vm0, %v11804_v52 }
0x14b7   :  { %3707 = vmatprep.mubr.f32.mxu1 %v11238_v11  ;;  %3784 = vmatprep.mubr.f32.mxu0 %v11238_v11 }
0x14b8   :  { %9998 = vmatprep.subr.mxu1 %v3854_v49  ;;  %10036 = vmatprep.subr.mxu0 %v3886_v14  ;;  %v3825_v49 = vld [vmem:[%s14414_s5 + $0x10] sm:$0xff] }
0x14b9   :  { %9999 = vmatpush3.msra.mxu1 %v3838_v16  ;;  %10037 = vmatpush3.msra.mxu0 %v3870_v22  ;;  %v3857_v14 = vld [vmem:[%s14414_s5 + $0x110] sm:$0xff]  ;;  %v3840_v16 = vld [vmem:[%s14414_s5 + $0x88] sm:$0xff] }
0x14ba   :  { %9513 = vmatmul.mubr.msk.f32.gmra.mxu1 %vm42_vm0, %v11828_v63  ;;  %9515 = vmatmul.mubr.msk.f32.gmra.mxu0 %vm42_vm0, %v11828_v63  ;;  %v3872_v22 = vld [vmem:[%s14414_s5 + $0x188] sm:$0xff] }
0x14bb   :  { %10000 = vmatprep.subr.mxu1 %v3853_v50  ;;  %10038 = vmatprep.subr.mxu0 %v3885_v51  ;;  %v3824_v50 = vld [vmem:[%s14414_s5 + $0x8] sm:$0xff] }
0x14bc   :  { %10001 = vmatpush3.msra.mxu1 %v3837_v53  ;;  %10039 = vmatpush3.msra.mxu0 %v3869_v54  ;;  %v3856_v51 = vld [vmem:[%s14414_s5 + $0x108] sm:$0xff]  ;;  %v3839_v53 = vld [vmem:[%s14414_s5 + $0x80] sm:$0xff] }
0x14bd   :  { %10002 = vmatprep.subr.mxu1 %v3852_v55  ;;  %10040 = vmatprep.subr.mxu0 %v3884_v60  ;;  %v3871_v54 = vld [vmem:[%s14414_s5 + $0x180] sm:$0xff] }
0x14be   :  { %10003 = vmatpush3.msra.mxu1 %v3836_v59  ;;  %10041 = vmatpush3.msra.mxu0 %v3868_v20  ;;  %v3823_v55 = vld [vmem:[%s14414_s5] sm:$0xff]  ;;  %v3918_v59 = vld [vmem:[%s14414_s5 + $0x2f8] sm:$0xff] }
0x14bf   :  { %10004 = vmatprep.subr.mxu1 %v3851_v61  ;;  %10042 = vmatprep.subr.mxu0 %v3883_v62  ;;  %v3855_v60 = vld [vmem:[%s14414_s5 + $0x100] sm:$0xff]  ;;  %v3950_v20 = vld [vmem:[%s14414_s5 + $0x3f8] sm:$0xff] }
0x14c0   :  { %10005 = vmatpush3.msra.mxu1 %v3835_v0  ;;  %10043 = vmatpush3.msra.mxu0 %v3867_v1  ;;  %v12193_v61 = vld [vmem:[%s14415_s4] sm:$0xff] }
0x14c1   :  { %10006 = vmatprep.subr.mxu1 %v3850_v2  ;;  %10044 = vmatprep.subr.mxu0 %v3882_v3  ;;  %v3092_v62 = vrot.slane %v12193_v61, %v11365_v17  ;;  %v3100_v0 = vrot.slane %v12193_v61, %v11387_v31  ;;  %v3096_v1 = vrot.slane %v12193_v61, %v11339_v7 }
0x14c2   :  { %10007 = vmatpush3.msra.mxu1 %v3834_v5  ;;  %10045 = vmatpush3.msra.mxu0 %v3866_v6  ;;  %v3104_v2 = vrot.slane %v12193_v61, %v11721_v57 }
0x14c3   :  { %10008 = vmatprep.subr.mxu1 %v3849_v8  ;;  %10046 = vmatprep.subr.mxu0 %v3881_v9 }
0x14c4   :  { %10009 = vmatpush3.msra.mxu1 %v3833_v10  ;;  %10047 = vmatpush3.msra.mxu0 %v3865_v13 }
0x14c5   :  { %10010 = vmatprep.subr.mxu1 %v3848_v35  ;;  %10048 = vmatprep.subr.mxu0 %v3880_v39 }
0x14c6   :  { %10011 = vmatpush3.msra.mxu1 %v3832_v41  ;;  %10049 = vmatpush3.msra.mxu0 %v3864_v18 }
0x14c7   :  { %10012 = vmatprep.subr.mxu1 %v3847_v15  ;;  %10050 = vmatprep.subr.mxu0 %v3879_v19 }
0x14c8   :  { %10013 = vmatpush3.msra.mxu1 %v3831_v21  ;;  %10051 = vmatpush3.msra.mxu0 %v3863_v58  ;;  %v3902_v58 = vld [vmem:[%s14414_s5 + $0x278] sm:$0xff] }
0x14c9   :  { %10014 = vmatprep.subr.mxu1 %v3846_v43  ;;  %10052 = vmatprep.subr.mxu0 %v3878_v24  ;;  %v3934_v43 = vld [vmem:[%s14414_s5 + $0x378] sm:$0xff]  ;;  %v12210_v24 = vsub.s32 7, %v11329_v4 }
0x14ca   :  { %10015 = vmatpush3.msra.mxu1 %v3830_v25  ;;  %10053 = vmatpush3.msra.mxu0 %v3862_v26 }
0x14cb   :  { %10016 = vmatprep.subr.mxu1 %v3845_v27  ;;  %10054 = vmatprep.subr.mxu0 %v3877_v28  ;;  %v3917_v28 = vld [vmem:[%s14414_s5 + $0x2f0] sm:$0xff] }
0x14cc   :  { %10017 = vmatpush3.msra.mxu1 %v3829_v29  ;;  %10055 = vmatpush3.msra.mxu0 %v3861_v30  ;;  %v3949_v29 = vld [vmem:[%s14414_s5 + $0x3f0] sm:$0xff] }
0x14cd   :  { %10018 = vmatprep.subr.mxu1 %v3844_v32  ;;  %10056 = vmatprep.subr.mxu0 %v3876_v33 }
0x14ce   :  { %10019 = vmatpush3.msra.mxu1 %v3828_v34  ;;  %10057 = vmatpush3.msra.mxu0 %v3860_v37  ;;  %v3901_v34 = vld [vmem:[%s14414_s5 + $0x270] sm:$0xff] }
0x14cf   :  { %10020 = vmatprep.subr.mxu1 %v3843_v36  ;;  %10058 = vmatprep.subr.mxu0 %v3875_v38  ;;  %v3933_v37 = vld [vmem:[%s14414_s5 + $0x370] sm:$0xff] }
0x14d0   :  { %10021 = vmatpush3.msra.mxu1 %v3827_v12  ;;  %10059 = vmatpush3.msra.mxu0 %v3859_v56  ;;  %v12226_v12 = vrot.slane %v12193_v61, %v11795_v47  ;;  %v12230_v56 = vrot.slane %v12193_v61, %v12210_v24 }
0x14d1   :  { %10022 = vmatprep.subr.mxu1 %v3842_v42  ;;  %10060 = vmatprep.subr.mxu0 %v3874_v40  ;;  %v3916_v42 = vld [vmem:[%s14414_s5 + $0x2e8] sm:$0xff] }
0x14d2   :  { %10023 = vmatpush3.msra.mxu1 %v3826_v23  ;;  %10061 = vmatpush3.msra.mxu0 %v3858_v44  ;;  %v3948_v40 = vld [vmem:[%s14414_s5 + $0x3e8] sm:$0xff] }
0x14d3   :  { %10024 = vmatprep.subr.mxu1 %v3841_v45  ;;  %10062 = vmatprep.subr.mxu0 %v3873_v46 }
0x14d4   :  { %10025 = vmatpush3.msra.mxu1 %v3825_v49  ;;  %10063 = vmatpush3.msra.mxu0 %v3857_v14  ;;  %v3900_v49 = vld [vmem:[%s14414_s5 + $0x268] sm:$0xff] }
0x14d5   :  { %10026 = vmatprep.subr.mxu1 %v3840_v16  ;;  %10064 = vmatprep.subr.mxu0 %v3872_v22  ;;  %v3932_v14 = vld [vmem:[%s14414_s5 + $0x368] sm:$0xff] }
0x14d6   :  { %10027 = vmatpush3.msra.mxu1 %v3824_v50  ;;  %10065 = vmatpush3.msra.mxu0 %v3856_v51  ;;  %v3915_v50 = vld [vmem:[%s14414_s5 + $0x2e0] sm:$0xff] }
0x14d7   :  { %10028 = vmatprep.subr.mxu1 %v3839_v53  ;;  %10066 = vmatprep.subr.mxu0 %v3871_v54  ;;  %v3947_v51 = vld [vmem:[%s14414_s5 + $0x3e0] sm:$0xff] }
0x14d8   :  { %10029 = vmatpush3.msra.mxu1 %v3823_v55  ;;  %10067 = vmatpush3.msra.mxu0 %v3855_v60  ;;  %v3899_v55 = vld [vmem:[%s14414_s5 + $0x260] sm:$0xff] }
0x14d9   :  { %10074 = vmatprep.subr.mxu1 %v3918_v59  ;;  %10112 = vmatprep.subr.mxu0 %v3950_v20  ;;  %v3931_v60 = vld [vmem:[%s14414_s5 + $0x360] sm:$0xff]  ;;  %v3914_v59 = vld [vmem:[%s14414_s5 + $0x2d8] sm:$0xff] }
0x1553   :  { %v3241_v3 = vpop.f32.mrf.mxu1  ;;  %v3318_v5 = vpop.f32.mrf.mxu0 }
0x1554   :  { %v3242_v6 = vadd.f32 %v3241_v3, %v3092_v62  ;;  %v3319_v8 = vadd.f32 %v3318_v5, %v3100_v0  ;;  %v3913_v3 = vld [vmem:[%s14414_s5 + $0x2d0] sm:$0xff] }
0x1555   :  { %v3243_v9 = vpop.f32.mrf.mxu1  ;;  %v3320_v10 = vpop.f32.mrf.mxu0  ;;  %v3945_v5 = vld [vmem:[%s14414_s5 + $0x3d0] sm:$0xff] }
0x1556   :  { %v3244_v13 = vadd.f32 %v3243_v9, %v3096_v1  ;;  %v3321_v35 = vadd.f32 %v3320_v10, %v3104_v2  ;;  %v3791_v19 = vmax.f32 %v3242_v6, 0.0  ;;  %v3793_v21 = vmax.f32 %v3319_v8, 0.0  ;;  %v3897_v6 = vld [vmem:[%s14414_s5 + $0x250] sm:$0xff]  ;;  %v3912_v9 = vld [vmem:[%s14414_s5 + $0x2c8] sm:$0xff] }
0x1557   :  { %v3929_v8 = vld [vmem:[%s14414_s5 + $0x350] sm:$0xff]  ;;  %v3944_v10 = vld [vmem:[%s14414_s5 + $0x3c8] sm:$0xff] }
0x1558   :  { %v3792_v39 = vmax.f32 %v3244_v13, 0.0  ;;  %v3794_v41 = vmax.f32 %v3321_v35, 0.0  ;;  %v3247_v18 = vpop.f32.mrf.mxu1  ;;  %v3324_v15 = vpop.f32.mrf.mxu0  ;;  %v3896_v13 = vld [vmem:[%s14414_s5 + $0x248] sm:$0xff] }
0x1559   :  { %v3248_v25 = vadd.f32 %v3247_v18, %v3092_v62  ;;  %v3325_v30 = vadd.f32 %v3324_v15, %v3100_v0  ;;  %v3946_v0 = vld [vmem:[%s14414_s5 + $0x3d8] sm:$0xff]  ;;  %v3928_v35 = vld [vmem:[%s14414_s5 + $0x348] sm:$0xff]  ;;  %v3895_v18 = vld [vmem:[%s14414_s5 + $0x240] sm:$0xff] }
0x155a   :  { %v3249_v26 = vpop.f32.mrf.mxu1  ;;  %v3326_v27 = vpop.f32.mrf.mxu0  ;;  %4147 = vmatprep.mubr.f32.mxu1 %v3792_v39  ;;  %4222 = vmatprep.mubr.f32.mxu0 %v3794_v41  ;;  %v3911_v39 = vld [vmem:[%s14414_s5 + $0x2c0] sm:$0xff] }
0x155b   :  { %v3250_v32 = vadd.f32 %v3249_v26, %v3096_v1  ;;  %v3327_v33 = vadd.f32 %v3326_v27, %v3104_v2  ;;  %4148 = vmatmul.mubr.f32.vlgmr.msra.gmra.mxu1 %v3791_v19  ;;  %4223 = vmatmul.mubr.f32.vlgmr.msra.gmra.mxu0 %v3793_v21  ;;  %v3807_v45 = vmax.f32 %v3248_v25, 0.0  ;;  %v3809_v46 = vmax.f32 %v3325_v30, 0.0  ;;  %v3898_v1 = vld [vmem:[%s14414_s5 + $0x258] sm:$0xff]  ;;  %v3943_v41 = vld [vmem:[%s14414_s5 + $0x3c0] sm:$0xff]  ;;  %v3909_v25 = vld [vmem:[%s14414_s5 + $0x2b0] sm:$0xff] }
0x155c   :  { %10075 = vmatpush3.msra.mxu1 %v3902_v58  ;;  %10113 = vmatpush3.msra.mxu0 %v3934_v43  ;;  %v3930_v2 = vld [vmem:[%s14414_s5 + $0x358] sm:$0xff]  ;;  %v3927_v15 = vld [vmem:[%s14414_s5 + $0x340] sm:$0xff]  ;;  %v3941_v26 = vld [vmem:[%s14414_s5 + $0x3b0] sm:$0xff] }
0x155d   :  { %v3808_v36 = vmax.f32 %v3250_v32, 0.0  ;;  %v3810_v38 = vmax.f32 %v3327_v33, 0.0  ;;  %10076 = vmatprep.subr.mxu1 %v3917_v28  ;;  %10114 = vmatprep.subr.mxu0 %v3949_v29  ;;  %v3910_v19 = vld [vmem:[%s14414_s5 + $0x2b8] sm:$0xff]  ;;  %v3893_v27 = vld [vmem:[%s14414_s5 + $0x230] sm:$0xff]  ;;  %v3908_v29 = vld [vmem:[%s14414_s5 + $0x2a8] sm:$0xff]  ;;  %v12341_v32 = vsub.s32 4, %v11329_v4 }
0x155e   :  { %v12238_v23 = vpop.f32.mrf.mxu1  ;;  %v12240_v44 = vpop.f32.mrf.mxu0  ;;  %10077 = vmatpush3.msra.mxu1 %v3901_v34  ;;  %10115 = vmatpush3.msra.mxu0 %v3933_v37  ;;  %v3942_v21 = vld [vmem:[%s14414_s5 + $0x3b8] sm:$0xff]  ;;  %v3925_v28 = vld [vmem:[%s14414_s5 + $0x330] sm:$0xff]  ;;  %v3940_v30 = vld [vmem:[%s14414_s5 + $0x3a8] sm:$0xff] }
0x155f   :  { %4152 = vmatprep.mubr.f32.mxu1 %v3808_v36  ;;  %4227 = vmatprep.mubr.f32.mxu0 %v3810_v38  ;;  %v3894_v58 = vld [vmem:[%s14414_s5 + $0x238] sm:$0xff]  ;;  %v3892_v33 = vld [vmem:[%s14414_s5 + $0x228] sm:$0xff]  ;;  %v3907_v36 = vld [vmem:[%s14414_s5 + $0x2a0] sm:$0xff] }
0x1560   :  { %v3397_v16 = vpop.f32.mrf.mxu1  ;;  %v3474_v22 = vpop.f32.mrf.mxu0  ;;  %10078 = vmatprep.subr.mxu1 %v3916_v42  ;;  %10116 = vmatprep.subr.mxu0 %v3948_v40  ;;  %v3926_v43 = vld [vmem:[%s14414_s5 + $0x338] sm:$0xff]  ;;  %v3924_v34 = vld [vmem:[%s14414_s5 + $0x328] sm:$0xff]  ;;  %v3939_v4 = vld [vmem:[%s14414_s5 + $0x3a0] sm:$0xff] }
0x1561   :  { %v3398_v53 = vadd.f32 %v3397_v16, %v12226_v12  ;;  %v3475_v54 = vadd.f32 %v3474_v22, %v12230_v56  ;;  %4153 = vmatmul.mubr.f32.gmra.mxu1 %v3807_v45  ;;  %4228 = vmatmul.mubr.f32.gmra.mxu0 %v3809_v46  ;;  %v3891_v42 = vld [vmem:[%s14414_s5 + $0x220] sm:$0xff]  ;;  %v3906_v45 = vld [vmem:[%s14414_s5 + $0x298] sm:$0xff] }
0x1562   :  { %10079 = vmatpush3.msra.mxu1 %v3900_v49  ;;  %10117 = vmatpush3.msra.mxu0 %v3932_v14  ;;  %v3923_v40 = vld [vmem:[%s14414_s5 + $0x320] sm:$0xff]  ;;  %v3938_v46 = vld [vmem:[%s14414_s5 + $0x398] sm:$0xff]  ;;  %v3108_v49 = vrot.slane %v12193_v61, %v12341_v32  ;;  %v3116_v14 = vrot.slane %v12193_v61, %v11798_v48  ;;  %v3937_v61 = vld [vmem:[%s14414_s5 + $0x390] sm:$0xff] }
0x1563   :  { %v3796_v20 = vmax.f32 %v3398_v53, 0.0  ;;  %v3798_v62 = vmax.f32 %v3475_v54, 0.0  ;;  %10080 = vmatprep.subr.mxu1 %v3915_v50  ;;  %10118 = vmatprep.subr.mxu0 %v3947_v51  ;;  %v3890_v16 = vld [vmem:[%s14414_s5 + $0x218] sm:$0xff]  ;;  %v3905_v51 = vld [vmem:[%s14414_s5 + $0x290] sm:$0xff] }
0x1564   :  { %10081 = vmatpush3.msra.mxu1 %v3899_v55  ;;  %10119 = vmatpush3.msra.mxu0 %v3931_v60  ;;  %v12349_v37 = vpop.f32.mrf.mxu1  ;;  %v3478_v38 = vpop.f32.mrf.mxu0  ;;  %v3922_v22 = vld [vmem:[%s14414_s5 + $0x318] sm:$0xff]  ;;  %v3889_v54 = vld [vmem:[%s14414_s5 + $0x210] sm:$0xff]  ;;  %v3904_v60 = vld [vmem:[%s14414_s5 + $0x288] sm:$0xff] }
0x1565   :  { %10082 = vmatprep.subr.mxu1 %v3914_v59  ;;  %4297 = vmatprep.mubr.f32.mxu1 %v3796_v20  ;;  %v3921_v55 = vld [vmem:[%s14414_s5 + $0x310] sm:$0xff]  ;;  %v3936_v59 = vld [vmem:[%s14414_s5 + $0x388] sm:$0xff]  ;;  %v3396_v20 = vadd.f32 %v12238_v23, %v3108_v49  ;;  %v3903_v23 = vld [vmem:[%s14414_s5 + $0x280] sm:$0xff] }
0x1566   :  { %10120 = vmatprep.subr.mxu0 %v3946_v0  ;;  %4372 = vmatprep.mubr.f32.mxu0 %v3798_v62  ;;  %v3403_v50 = vpop.f32.mrf.mxu1  ;;  %v3480_v53 = vpop.f32.mrf.mxu0  ;;  %v3473_v62 = vadd.f32 %v12240_v44, %v3116_v14  ;;  %v3888_v0 = vld [vmem:[%s14414_s5 + $0x208] sm:$0xff]  ;;  %v3935_v44 = vld [vmem:[%s14414_s5 + $0x380] sm:$0xff] }
0x1567   :  { %10083 = vmatpush3.msra.mxu1 %v3898_v1  ;;  %10121 = vmatpush3.msra.mxu0 %v3930_v2  ;;  %v3920_v1 = vld [vmem:[%s14414_s5 + $0x308] sm:$0xff] }
0x1568   :  { %10084 = vmatprep.subr.mxu1 %v3913_v3  ;;  %10122 = vmatprep.subr.mxu0 %v3945_v5  ;;  %v3404_v3 = vadd.f32 %v3403_v50, %v12226_v12  ;;  %v3481_v5 = vadd.f32 %v3480_v53, %v12230_v56  ;;  %v3795_v12 = vmax.f32 %v3396_v20, 0.0  ;;  %v3797_v56 = vmax.f32 %v3473_v62, 0.0  ;;  %v3978_v50 = vld [vmem:[%s14414_s5 + $0x4d8] sm:$0xff]  ;;  %v3976_v20 = vld [vmem:[%s14414_s5 + $0x4c8] sm:$0xff] }
0x1569   :  { %10085 = vmatpush3.msra.mxu1 %v3897_v6  ;;  %10123 = vmatpush3.msra.mxu0 %v3929_v8  ;;  %v3887_v8 = vld [vmem:[%s14414_s5 + $0x200] sm:$0xff]  ;;  %v3994_v53 = vld [vmem:[%s14414_s5 + $0x558] sm:$0xff]  ;;  %v4008_v62 = vld [vmem:[%s14414_s5 + $0x5c8] sm:$0xff] }
0x156a   :  { %10086 = vmatprep.subr.mxu1 %v3912_v9  ;;  %10124 = vmatprep.subr.mxu0 %v3944_v10  ;;  %v12405_v2 = vpop.f32.mrf.mxu1  ;;  %v12415_v6 = vpop.f32.mrf.mxu0  ;;  %v3919_v9 = vld [vmem:[%s14414_s5 + $0x300] sm:$0xff]  ;;  %v12426_v10 = vld [vmem:[%s14415_s4 + $0x8] sm:$0xff] }
0x156b   :  { %10087 = vmatpush3.msra.mxu1 %v3896_v13  ;;  %10125 = vmatpush3.msra.mxu0 %v3928_v35  ;;  %v12430_v13 = vrot.slane %v12426_v10, %v11339_v7  ;;  %v3982_v35 = vld [vmem:[%s14414_s5 + $0x4f8] sm:$0xff] }
0x156c   :  { %10088 = vmatprep.subr.mxu1 %v3911_v39  ;;  %10126 = vmatprep.subr.mxu0 %v3943_v41  ;;  %v4014_v39 = vld [vmem:[%s14414_s5 + $0x5f8] sm:$0xff]  ;;  %v3551_v41 = vpop.f32.mrf.mxu1 }
0x156d   :  { %10089 = vmatpush3.msra.mxu1 %v3895_v18  ;;  %10127 = vmatpush3.msra.mxu0 %v3927_v15  ;;  %v12440_v18 = vrot.slane %v12426_v10, %v11721_v57  ;;  %v3402_v15 = vadd.f32 %v12349_v37, %v3108_v49  ;;  %v3979_v49 = vld [vmem:[%s14414_s5 + $0x4e0] sm:$0xff] }
0x156e   :  { %10090 = vmatprep.subr.mxu1 %v3910_v19  ;;  %10128 = vmatprep.subr.mxu0 %v3942_v21  ;;  %v3479_v19 = vadd.f32 %v3478_v38, %v3116_v14  ;;  %v3812_v21 = vmax.f32 %v3404_v3, 0.0  ;;  %v4012_v38 = vld [vmem:[%s14414_s5 + $0x5e8] sm:$0xff]  ;;  %v4011_v14 = vld [vmem:[%s14414_s5 + $0x5e0] sm:$0xff] }
0x156f   :  { %10091 = vmatpush3.msra.mxu1 %v3894_v58  ;;  %10129 = vmatpush3.msra.mxu0 %v3926_v43  ;;  %v3814_v58 = vmax.f32 %v3481_v5, 0.0  ;;  %v3628_v43 = vpop.f32.mrf.mxu0  ;;  %v3811_v37 = vmax.f32 %v3402_v15, 0.0  ;;  %v3959_v3 = vld [vmem:[%s14414_s5 + $0x440] sm:$0xff]  ;;  %v3989_v15 = vld [vmem:[%s14414_s5 + $0x530] sm:$0xff] }
0x1570   :  { %10092 = vmatprep.subr.mxu1 %v3909_v25  ;;  %10130 = vmatprep.subr.mxu0 %v3941_v26  ;;  %v3966_v25 = vld [vmem:[%s14414_s5 + $0x478] sm:$0xff]  ;;  %v3991_v5 = vld [vmem:[%s14414_s5 + $0x540] sm:$0xff] }
0x1571   :  { %10093 = vmatpush3.msra.mxu1 %v3893_v27  ;;  %10131 = vmatpush3.msra.mxu0 %v3925_v28  ;;  %v3998_v26 = vld [vmem:[%s14414_s5 + $0x578] sm:$0xff]  ;;  %v3981_v27 = vld [vmem:[%s14414_s5 + $0x4f0] sm:$0xff] }
0x1572   :  { %10094 = vmatprep.subr.mxu1 %v3908_v29  ;;  %10132 = vmatprep.subr.mxu0 %v3940_v30  ;;  %v4013_v28 = vld [vmem:[%s14414_s5 + $0x5f0] sm:$0xff]  ;;  %v3552_v29 = vadd.f32 %v3551_v41, %v12430_v13 }
0x1573   :  { %10095 = vmatpush3.msra.mxu1 %v3892_v33  ;;  %10133 = vmatpush3.msra.mxu0 %v3924_v34  ;;  %v3965_v30 = vld [vmem:[%s14414_s5 + $0x470] sm:$0xff]  ;;  %v3629_v34 = vadd.f32 %v3628_v43, %v12440_v18  ;;  %v3988_v43 = vld [vmem:[%s14414_s5 + $0x528] sm:$0xff] }
0x1574   :  { %10096 = vmatprep.subr.mxu1 %v3907_v36  ;;  %10134 = vmatprep.subr.mxu0 %v3939_v4  ;;  %v3997_v33 = vld [vmem:[%s14414_s5 + $0x570] sm:$0xff]  ;;  %v3813_v36 = vmax.f32 %v3479_v19, 0.0  ;;  %v3980_v4 = vld [vmem:[%s14414_s5 + $0x4e8] sm:$0xff] }
0x1575   :  { %10097 = vmatpush3.msra.mxu1 %v3891_v42  ;;  %10135 = vmatpush3.msra.mxu0 %v3923_v40  ;;  %v3964_v42 = vld [vmem:[%s14414_s5 + $0x468] sm:$0xff]  ;;  %v3800_v40 = vmax.f32 %v3552_v29, 0.0  ;;  %v3957_v41 = vld [vmem:[%s14414_s5 + $0x430] sm:$0xff]  ;;  %v3955_v29 = vld [vmem:[%s14414_s5 + $0x420] sm:$0xff] }
0x1576   :  { %10098 = vmatprep.subr.mxu1 %v3906_v45  ;;  %10136 = vmatprep.subr.mxu0 %v3938_v46  ;;  %v3996_v45 = vld [vmem:[%s14414_s5 + $0x568] sm:$0xff]  ;;  %v3802_v46 = vmax.f32 %v3629_v34, 0.0  ;;  %v4002_v34 = vld [vmem:[%s14414_s5 + $0x598] sm:$0xff] }
0x1577   :  { %10099 = vmatpush3.msra.mxu1 %v3890_v16  ;;  %10137 = vmatpush3.msra.mxu0 %v3922_v22  ;;  %v3963_v16 = vld [vmem:[%s14414_s5 + $0x460] sm:$0xff]  ;;  %v3972_v19 = vld [vmem:[%s14414_s5 + $0x4a8] sm:$0xff] }
0x1578   :  { %10100 = vmatprep.subr.mxu1 %v3905_v51  ;;  %10138 = vmatprep.subr.mxu0 %v3937_v61  ;;  %v3995_v22 = vld [vmem:[%s14414_s5 + $0x560] sm:$0xff]  ;;  %v4010_v51 = vld [vmem:[%s14414_s5 + $0x5d8] sm:$0xff] }
0x1579   :  { %10101 = vmatpush3.msra.mxu1 %v3889_v54  ;;  %10139 = vmatpush3.msra.mxu0 %v3921_v55  ;;  %v3962_v61 = vld [vmem:[%s14414_s5 + $0x458] sm:$0xff]  ;;  %v3977_v54 = vld [vmem:[%s14414_s5 + $0x4d0] sm:$0xff] }
0x157a   :  { %10102 = vmatprep.subr.mxu1 %v3904_v60  ;;  %10140 = vmatprep.subr.mxu0 %v3936_v59  ;;  %v4009_v55 = vld [vmem:[%s14414_s5 + $0x5d0] sm:$0xff] }
0x157b   :  { %10103 = vmatpush3.msra.mxu1 %v3888_v0  ;;  %10141 = vmatpush3.msra.mxu0 %v3920_v1  ;;  %v3961_v60 = vld [vmem:[%s14414_s5 + $0x450] sm:$0xff]  ;;  %v3960_v0 = vld [vmem:[%s14414_s5 + $0x448] sm:$0xff] }
0x157c   :  { %10104 = vmatprep.subr.mxu1 %v3903_v23  ;;  %10142 = vmatprep.subr.mxu0 %v3935_v44  ;;  %v3993_v59 = vld [vmem:[%s14414_s5 + $0x550] sm:$0xff]  ;;  %v3992_v1 = vld [vmem:[%s14414_s5 + $0x548] sm:$0xff]  ;;  %v3975_v23 = vld [vmem:[%s14414_s5 + $0x4c0] sm:$0xff] }
0x157d   :  { %10105 = vmatpush3.msra.mxu1 %v3887_v8  ;;  %10143 = vmatpush3.msra.mxu0 %v3919_v9  ;;  %v4007_v44 = vld [vmem:[%s14414_s5 + $0x5c0] sm:$0xff]  ;;  %v3974_v8 = vld [vmem:[%s14414_s5 + $0x4b8] sm:$0xff] }
0x157e   :  { %4298 = vmatmul.mubr.f32.vlgmr.msra.gmra.mxu1 %v3795_v12  ;;  %4373 = vmatmul.mubr.f32.vlgmr.msra.gmra.mxu0 %v3797_v56  ;;  %v4006_v9 = vld [vmem:[%s14414_s5 + $0x5b8] sm:$0xff] }
0x157f   :  { %10150 = vmatprep.subr.mxu1 %v3982_v35  ;;  %10188 = vmatprep.subr.mxu0 %v4014_v39  ;;  %v3958_v12 = vld [vmem:[%s14414_s5 + $0x438] sm:$0xff]  ;;  %v3973_v35 = vld [vmem:[%s14414_s5 + $0x4b0] sm:$0xff] }
0x1580   :  { %4302 = vmatprep.mubr.f32.mxu1 %v3812_v21  ;;  %4377 = vmatprep.mubr.f32.mxu0 %v3814_v58  ;;  %v3990_v56 = vld [vmem:[%s14414_s5 + $0x538] sm:$0xff]  ;;  %v4005_v39 = vld [vmem:[%s14414_s5 + $0x5b0] sm:$0xff]  ;;  %v4004_v21 = vld [vmem:[%s14414_s5 + $0x5a8] sm:$0xff] }
0x1581   :  { %10151 = vmatpush3.msra.mxu1 %v3966_v25  ;;  %10189 = vmatpush3.msra.mxu0 %v3998_v26  ;;  %v3956_v58 = vld [vmem:[%s14414_s5 + $0x428] sm:$0xff]  ;;  %v12571_v25 = vpop.f32.mrf.mxu1  ;;  %v3971_v26 = vld [vmem:[%s14414_s5 + $0x4a0] sm:$0xff] }
0x1582   :  { %10152 = vmatprep.subr.mxu1 %v3981_v27  ;;  %10190 = vmatprep.subr.mxu0 %v4013_v28  ;;  %v4003_v27 = vld [vmem:[%s14414_s5 + $0x5a0] sm:$0xff]  ;;  %v3632_v28 = vpop.f32.mrf.mxu0 }
0x1583   :  { %10153 = vmatpush3.msra.mxu1 %v3965_v30  ;;  %10191 = vmatpush3.msra.mxu0 %v3997_v33  ;;  %v3987_v30 = vld [vmem:[%s14414_s5 + $0x520] sm:$0xff]  ;;  %v3970_v33 = vld [vmem:[%s14414_s5 + $0x498] sm:$0xff] }
0x1584   :  { %4303 = vmatmul.mubr.f32.gmra.mxu1 %v3811_v37  ;;  %4378 = vmatmul.mubr.f32.gmra.mxu0 %v3813_v36  ;;  %v3124_v37 = vrot.slane %v12426_v10, %v11365_v17  ;;  %v3132_v36 = vrot.slane %v12426_v10, %v11387_v31 }
0x1585   :  { %10154 = vmatprep.subr.mxu1 %v3980_v4  ;;  %10192 = vmatprep.subr.mxu0 %v4012_v38  ;;  %v3954_v4 = vld [vmem:[%s14414_s5 + $0x418] sm:$0xff] }
0x1586   :  { %10155 = vmatpush3.msra.mxu1 %v3964_v42  ;;  %4447 = vmatprep.mubr.f32.mxu1 %v3800_v40  ;;  %v3986_v38 = vld [vmem:[%s14414_s5 + $0x518] sm:$0xff]  ;;  %v3557_v42 = vpop.f32.mrf.mxu1  ;;  %v3969_v40 = vld [vmem:[%s14414_s5 + $0x490] sm:$0xff] }
0x1587   :  { %10193 = vmatpush3.msra.mxu0 %v3996_v45  ;;  %4522 = vmatprep.mubr.f32.mxu0 %v3802_v46  ;;  %v4001_v45 = vld [vmem:[%s14414_s5 + $0x590] sm:$0xff]  ;;  %v3634_v46 = vpop.f32.mrf.mxu0 }
0x1588   :  { %10156 = vmatprep.subr.mxu1 %v3979_v49  ;;  %10194 = vmatprep.subr.mxu0 %v4011_v14  ;;  %v3953_v49 = vld [vmem:[%s14414_s5 + $0x410] sm:$0xff] }
0x1589   :  { %10157 = vmatpush3.msra.mxu1 %v3963_v16  ;;  %10195 = vmatpush3.msra.mxu0 %v3995_v22  ;;  %v3985_v14 = vld [vmem:[%s14414_s5 + $0x510] sm:$0xff]  ;;  %v3968_v16 = vld [vmem:[%s14414_s5 + $0x488] sm:$0xff] }
0x158a   :  { %10158 = vmatprep.subr.mxu1 %v3978_v50  ;;  %10196 = vmatprep.subr.mxu0 %v4010_v51  ;;  %v4000_v22 = vld [vmem:[%s14414_s5 + $0x588] sm:$0xff]  ;;  %v3550_v50 = vadd.f32 %v12405_v2, %v3124_v37  ;;  %v3627_v51 = vadd.f32 %v12415_v6, %v3132_v36  ;;  %v3967_v2 = vld [vmem:[%s14414_s5 + $0x480] sm:$0xff] }
0x158b   :  { %10159 = vmatpush3.msra.mxu1 %v3962_v61  ;;  %10197 = vmatpush3.msra.mxu0 %v3994_v53  ;;  %v3952_v61 = vld [vmem:[%s14414_s5 + $0x408] sm:$0xff]  ;;  %v3999_v6 = vld [vmem:[%s14414_s5 + $0x580] sm:$0xff] }
0x158c   :  { %10160 = vmatprep.subr.mxu1 %v3977_v54  ;;  %10198 = vmatprep.subr.mxu0 %v4009_v55  ;;  %v3984_v53 = vld [vmem:[%s14414_s5 + $0x508] sm:$0xff]  ;;  %v12627_v54 = vpop.f32.mrf.mxu1  ;;  %v3558_v55 = vadd.f32 %v3557_v42, %v12430_v13  ;;  %v12647_v13 = vrot.slane %v12426_v10, %v11795_v47  ;;  %v4042_v42 = vld [vmem:[%s14414_s5 + $0x6d8] sm:$0xff] }
0x158d   :  { %10161 = vmatpush3.msra.mxu1 %v3961_v60  ;;  %10199 = vmatpush3.msra.mxu0 %v3993_v59  ;;  %v3635_v60 = vadd.f32 %v3634_v46, %v12440_v18  ;;  %v12637_v59 = vpop.f32.mrf.mxu0  ;;  %v4046_v18 = vld [vmem:[%s14414_s5 + $0x6f8] sm:$0xff] }
0x158e   :  { %10162 = vmatprep.subr.mxu1 %v3976_v20  ;;  %10200 = vmatprep.subr.mxu0 %v4008_v62  ;;  %v3951_v20 = vld [vmem:[%s14414_s5 + $0x400] sm:$0xff]  ;;  %v4058_v46 = vld [vmem:[%s14414_s5 + $0x758] sm:$0xff] }
0x158f   :  { %10163 = vmatpush3.msra.mxu1 %v3960_v0  ;;  %10201 = vmatpush3.msra.mxu0 %v3992_v1  ;;  %v3983_v62 = vld [vmem:[%s14414_s5 + $0x500] sm:$0xff]  ;;  %v3799_v0 = vmax.f32 %v3550_v50, 0.0  ;;  %v3801_v1 = vmax.f32 %v3627_v51, 0.0  ;;  %v4040_v50 = vld [vmem:[%s14414_s5 + $0x6c8] sm:$0xff] }
0x1590   :  { %10164 = vmatprep.subr.mxu1 %v3975_v23  ;;  %10202 = vmatprep.subr.mxu0 %v4007_v44  ;;  %v4078_v23 = vld [vmem:[%s14414_s5 + $0x7f8] sm:$0xff]  ;;  %v3705_v44 = vpop.f32.mrf.mxu1  ;;  %v4072_v51 = vld [vmem:[%s14414_s5 + $0x7c8] sm:$0xff] }
0x1591   :  { %10165 = vmatpush3.msra.mxu1 %v3959_v3  ;;  %10203 = vmatpush3.msra.mxu0 %v3991_v5  ;;  %v12657_v3 = vrot.slane %v12426_v10, %v12210_v24  ;;  %v3556_v5 = vadd.f32 %v12571_v25, %v3124_v37  ;;  %v4043_v37 = vld [vmem:[%s14414_s5 + $0x6e0] sm:$0xff] }
0x1592   :  { %10166 = vmatprep.subr.mxu1 %v3974_v8  ;;  %10204 = vmatprep.subr.mxu0 %v4006_v9  ;;  %v3633_v8 = vadd.f32 %v3632_v28, %v3132_v36  ;;  %v3816_v9 = vmax.f32 %v3558_v55, 0.0  ;;  %v4076_v28 = vld [vmem:[%s14414_s5 + $0x7e8] sm:$0xff]  ;;  %v4075_v36 = vld [vmem:[%s14414_s5 + $0x7e0] sm:$0xff] }
0x1593   :  { %10167 = vmatpush3.msra.mxu1 %v3958_v12  ;;  %10205 = vmatpush3.msra.mxu0 %v3990_v56  ;;  %v3818_v12 = vmax.f32 %v3635_v60, 0.0  ;;  %v3782_v56 = vpop.f32.mrf.mxu0  ;;  %v3815_v25 = vmax.f32 %v3556_v5, 0.0  ;;  %v4023_v55 = vld [vmem:[%s14414_s5 + $0x640] sm:$0xff]  ;;  %v4053_v5 = vld [vmem:[%s14414_s5 + $0x730] sm:$0xff] }
0x1594   :  { %10168 = vmatprep.subr.mxu1 %v3973_v35  ;;  %10206 = vmatprep.subr.mxu0 %v4005_v39  ;;  %v4030_v35 = vld [vmem:[%s14414_s5 + $0x678] sm:$0xff]  ;;  %v4055_v60 = vld [vmem:[%s14414_s5 + $0x740] sm:$0xff] }
0x1595   :  { %10169 = vmatpush3.msra.mxu1 %v3957_v41  ;;  %10207 = vmatpush3.msra.mxu0 %v3989_v15  ;;  %v4062_v39 = vld [vmem:[%s14414_s5 + $0x778] sm:$0xff]  ;;  %v4045_v41 = vld [vmem:[%s14414_s5 + $0x6f0] sm:$0xff] }
0x1596   :  { %10170 = vmatprep.subr.mxu1 %v3972_v19  ;;  %10208 = vmatprep.subr.mxu0 %v4004_v21  ;;  %v4077_v15 = vld [vmem:[%s14414_s5 + $0x7f0] sm:$0xff]  ;;  %v3706_v19 = vadd.f32 %v3705_v44, %v12647_v13 }
0x1597   :  { %10171 = vmatpush3.msra.mxu1 %v3956_v58  ;;  %10209 = vmatpush3.msra.mxu0 %v3988_v43  ;;  %v4029_v21 = vld [vmem:[%s14414_s5 + $0x670] sm:$0xff]  ;;  %v3783_v43 = vadd.f32 %v3782_v56, %v12657_v3  ;;  %v4052_v56 = vld [vmem:[%s14414_s5 + $0x728] sm:$0xff] }
0x1598   :  { %10172 = vmatprep.subr.mxu1 %v3971_v26  ;;  %10210 = vmatprep.subr.mxu0 %v4003_v27  ;;  %v4061_v58 = vld [vmem:[%s14414_s5 + $0x770] sm:$0xff]  ;;  %v3817_v26 = vmax.f32 %v3633_v8, 0.0  ;;  %v4044_v27 = vld [vmem:[%s14414_s5 + $0x6e8] sm:$0xff] }
0x1599   :  { %10173 = vmatpush3.msra.mxu1 %v3955_v29  ;;  %10211 = vmatpush3.msra.mxu0 %v3987_v30  ;;  %v4028_v29 = vld [vmem:[%s14414_s5 + $0x668] sm:$0xff]  ;;  %v3804_v30 = vmax.f32 %v3706_v19, 0.0  ;;  %v4021_v44 = vld [vmem:[%s14414_s5 + $0x630] sm:$0xff]  ;;  %v4019_v19 = vld [vmem:[%s14414_s5 + $0x620] sm:$0xff] }
0x159a   :  { %10174 = vmatprep.subr.mxu1 %v3970_v33  ;;  %10212 = vmatprep.subr.mxu0 %v4002_v34  ;;  %v4060_v33 = vld [vmem:[%s14414_s5 + $0x768] sm:$0xff]  ;;  %v3806_v34 = vmax.f32 %v3783_v43, 0.0  ;;  %v4066_v43 = vld [vmem:[%s14414_s5 + $0x798] sm:$0xff] }
0x159b   :  { %10175 = vmatpush3.msra.mxu1 %v3954_v4  ;;  %10213 = vmatpush3.msra.mxu0 %v3986_v38  ;;  %v4027_v4 = vld [vmem:[%s14414_s5 + $0x660] sm:$0xff]  ;;  %v4036_v8 = vld [vmem:[%s14414_s5 + $0x6a8] sm:$0xff] }
0x159c   :  { %10176 = vmatprep.subr.mxu1 %v3969_v40  ;;  %10214 = vmatprep.subr.mxu0 %v4001_v45  ;;  %v4059_v38 = vld [vmem:[%s14414_s5 + $0x760] sm:$0xff]  ;;  %v4074_v40 = vld [vmem:[%s14414_s5 + $0x7d8] sm:$0xff] }
0x159d   :  { %10177 = vmatpush3.msra.mxu1 %v3953_v49  ;;  %10215 = vmatpush3.msra.mxu0 %v3985_v14  ;;  %v4026_v45 = vld [vmem:[%s14414_s5 + $0x658] sm:$0xff]  ;;  %v4041_v49 = vld [vmem:[%s14414_s5 + $0x6d0] sm:$0xff] }
0x159e   :  { %10178 = vmatprep.subr.mxu1 %v3968_v16  ;;  %10216 = vmatprep.subr.mxu0 %v4000_v22  ;;  %v4073_v14 = vld [vmem:[%s14414_s5 + $0x7d0] sm:$0xff] }
0x159f   :  { %10179 = vmatpush3.msra.mxu1 %v3952_v61  ;;  %10217 = vmatpush3.msra.mxu0 %v3984_v53  ;;  %v4025_v16 = vld [vmem:[%s14414_s5 + $0x650] sm:$0xff]  ;;  %v4024_v61 = vld [vmem:[%s14414_s5 + $0x648] sm:$0xff] }
0x15a0   :  { %10180 = vmatprep.subr.mxu1 %v3967_v2  ;;  %10218 = vmatprep.subr.mxu0 %v3999_v6  ;;  %v4057_v22 = vld [vmem:[%s14414_s5 + $0x750] sm:$0xff]  ;;  %v4056_v53 = vld [vmem:[%s14414_s5 + $0x748] sm:$0xff]  ;;  %v4039_v2 = vld [vmem:[%s14414_s5 + $0x6c0] sm:$0xff] }
0x15a1   :  { %10181 = vmatpush3.msra.mxu1 %v3951_v20  ;;  %10219 = vmatpush3.msra.mxu0 %v3983_v62  ;;  %v4071_v6 = vld [vmem:[%s14414_s5 + $0x7c0] sm:$0xff]  ;;  %v4038_v20 = vld [vmem:[%s14414_s5 + $0x6b8] sm:$0xff] }
0x15a2   :  { %4448 = vmatmul.mubr.f32.vlgmr.msra.gmra.mxu1 %v3799_v0  ;;  %4523 = vmatmul.mubr.f32.vlgmr.msra.gmra.mxu0 %v3801_v1  ;;  %v4070_v62 = vld [vmem:[%s14414_s5 + $0x7b8] sm:$0xff] }
0x15a3   :  { %10226 = vmatprep.subr.mxu1 %v4046_v18  ;;  %10264 = vmatprep.subr.mxu0 %v4078_v23  ;;  %v4022_v0 = vld [vmem:[%s14414_s5 + $0x638] sm:$0xff]  ;;  %v4037_v18 = vld [vmem:[%s14414_s5 + $0x6b0] sm:$0xff] }
0x15a4   :  { %4452 = vmatprep.mubr.f32.mxu1 %v3816_v9  ;;  %4527 = vmatprep.mubr.f32.mxu0 %v3818_v12  ;;  %v4054_v1 = vld [vmem:[%s14414_s5 + $0x738] sm:$0xff]  ;;  %v4069_v23 = vld [vmem:[%s14414_s5 + $0x7b0] sm:$0xff]  ;;  %v4068_v9 = vld [vmem:[%s14414_s5 + $0x7a8] sm:$0xff] }
0x15a5   :  { %10227 = vmatpush3.msra.mxu1 %v4030_v35  ;;  %10265 = vmatpush3.msra.mxu0 %v4062_v39  ;;  %v4020_v12 = vld [vmem:[%s14414_s5 + $0x628] sm:$0xff]  ;;  %v4035_v35 = vld [vmem:[%s14414_s5 + $0x6a0] sm:$0xff] }
0x15a6   :  { %10228 = vmatprep.subr.mxu1 %v4045_v41  ;;  %10266 = vmatprep.subr.mxu0 %v4077_v15  ;;  %v4067_v39 = vld [vmem:[%s14414_s5 + $0x7a0] sm:$0xff]  ;;  %v3709_v41 = vpop.f32.mrf.mxu1  ;;  %v3786_v15 = vpop.f32.mrf.mxu0 }
0x15a7   :  { %10229 = vmatpush3.msra.mxu1 %v4029_v21  ;;  %10267 = vmatpush3.msra.mxu0 %v4061_v58  ;;  %v4051_v21 = vld [vmem:[%s14414_s5 + $0x720] sm:$0xff]  ;;  %v4034_v58 = vld [vmem:[%s14414_s5 + $0x698] sm:$0xff] }
0x15a8   :  { %4453 = vmatmul.mubr.f32.gmra.mxu1 %v3815_v25  ;;  %4528 = vmatmul.mubr.f32.gmra.mxu0 %v3817_v26  ;;  %v3140_v25 = vrot.slane %v12426_v10, %v12341_v32  ;;  %v3148_v26 = vrot.slane %v12426_v10, %v11798_v48  ;;  %v4065_v10 = vld [vmem:[%s14414_s5 + $0x790] sm:$0xff] }
0x15a9   :  { %10230 = vmatprep.subr.mxu1 %v4044_v27  ;;  %10268 = vmatprep.subr.mxu0 %v4076_v28  ;;  %v4018_v27 = vld [vmem:[%s14414_s5 + $0x618] sm:$0xff] }
0x15aa   :  { %10231 = vmatpush3.msra.mxu1 %v4028_v29  ;;  %4597 = vmatprep.mubr.f32.mxu1 %v3804_v30  ;;  %v4050_v28 = vld [vmem:[%s14414_s5 + $0x718] sm:$0xff]  ;;  %v4033_v29 = vld [vmem:[%s14414_s5 + $0x690] sm:$0xff]  ;;  %v3711_v30 = vpop.f32.mrf.mxu1 }
0x15ab   :  { %10269 = vmatpush3.msra.mxu0 %v4060_v33  ;;  %4672 = vmatprep.mubr.f32.mxu0 %v3806_v34  ;;  %v3788_v33 = vpop.f32.mrf.mxu0  ;;  %v4017_v34 = vld [vmem:[%s14414_s5 + $0x610] sm:$0xff] }
0x15ac   :  { %10232 = vmatprep.subr.mxu1 %v4043_v37  ;;  %10270 = vmatprep.subr.mxu0 %v4075_v36  ;;  %v4049_v37 = vld [vmem:[%s14414_s5 + $0x710] sm:$0xff]  ;;  %v4032_v36 = vld [vmem:[%s14414_s5 + $0x688] sm:$0xff] }
0x15ad   :  { %10233 = vmatpush3.msra.mxu1 %v4027_v4  ;;  %10271 = vmatpush3.msra.mxu0 %v4059_v38  ;;  %v4064_v4 = vld [vmem:[%s14414_s5 + $0x788] sm:$0xff]  ;;  %v3704_v38 = vadd.f32 %v12627_v54, %v3140_v25  ;;  %v4031_v54 = vld [vmem:[%s14414_s5 + $0x680] sm:$0xff] }
0x15ae   :  { %10234 = vmatprep.subr.mxu1 %v4042_v42  ;;  %10272 = vmatprep.subr.mxu0 %v4074_v40  ;;  %v3781_v42 = vadd.f32 %v12637_v59, %v3148_v26  ;;  %v4016_v40 = vld [vmem:[%s14414_s5 + $0x608] sm:$0xff]  ;;  %v4063_v59 = vld [vmem:[%s14414_s5 + $0x780] sm:$0xff] }
0x15af   :  { %10235 = vmatpush3.msra.mxu1 %v4026_v45  ;;  %10273 = vmatpush3.msra.mxu0 %v4058_v46  ;;  %v4048_v45 = vld [vmem:[%s14414_s5 + $0x708] sm:$0xff]  ;;  %v3712_v46 = vadd.f32 %v3711_v30, %v12647_v13  ;;  %v4047_v13 = vld [vmem:[%s14414_s5 + $0x700] sm:$0xff] }
0x15b0   :  { %10236 = vmatprep.subr.mxu1 %v4041_v49  ;;  %10274 = vmatprep.subr.mxu0 %v4073_v14  ;;  %v3789_v49 = vadd.f32 %v3788_v33, %v12657_v3  ;;  %v4015_v14 = vld [vmem:[%s14414_s5 + $0x600] sm:$0xff]  ;;  %v3803_v3 = vmax.f32 %v3704_v38, 0.0 }
0x15b1   :  { %10237 = vmatpush3.msra.mxu1 %v4025_v16  ;;  %10275 = vmatpush3.msra.mxu0 %v4057_v22  ;;  %v3805_v16 = vmax.f32 %v3781_v42, 0.0  ;;  %v3710_v22 = vadd.f32 %v3709_v41, %v3140_v25 }
0x15b2   :  { %10238 = vmatprep.subr.mxu1 %v4040_v50  ;;  %10276 = vmatprep.subr.mxu0 %v4072_v51  ;;  %v3787_v50 = vadd.f32 %v3786_v15, %v3148_v26  ;;  %v3820_v51 = vmax.f32 %v3712_v46, 0.0 }
0x15b3   :  { %10239 = vmatpush3.msra.mxu1 %v4024_v61  ;;  %10277 = vmatpush3.msra.mxu0 %v4056_v53  ;;  %v3822_v61 = vmax.f32 %v3789_v49, 0.0  ;;  %v3819_v53 = vmax.f32 %v3710_v22, 0.0 }
0x15b4   :  { %10240 = vmatprep.subr.mxu1 %v4039_v2  ;;  %10278 = vmatprep.subr.mxu0 %v4071_v6  ;;  %v3821_v2 = vmax.f32 %v3787_v50, 0.0 }
0x15b5   :  { %10241 = vmatpush3.msra.mxu1 %v4023_v55  ;;  %10279 = vmatpush3.msra.mxu0 %v4055_v60 }
0x15b6   :  { %10242 = vmatprep.subr.mxu1 %v4038_v20  ;;  %10280 = vmatprep.subr.mxu0 %v4070_v62 }
0x15b7   :  { %10243 = vmatpush3.msra.mxu1 %v4022_v0  ;;  %10281 = vmatpush3.msra.mxu0 %v4054_v1 }
0x15b8   :  { %10244 = vmatprep.subr.mxu1 %v4037_v18  ;;  %10282 = vmatprep.subr.mxu0 %v4069_v23 }
0x15b9   :  { %10245 = vmatpush3.msra.mxu1 %v4021_v44  ;;  %10283 = vmatpush3.msra.mxu0 %v4053_v5 }
0x15ba   :  { %10246 = vmatprep.subr.mxu1 %v4036_v8  ;;  %10284 = vmatprep.subr.mxu0 %v4068_v9 }
0x15bb   :  { %10247 = vmatpush3.msra.mxu1 %v4020_v12  ;;  %10285 = vmatpush3.msra.mxu0 %v4052_v56 }
0x15bc   :  { %10248 = vmatprep.subr.mxu1 %v4035_v35  ;;  %10286 = vmatprep.subr.mxu0 %v4067_v39  ;;  %v12862_v35 = vld [vmem:[%s14411_s6] sm:$0xff] }
0x15bd   :  { %10249 = vmatpush3.msra.mxu1 %v4019_v19  ;;  %10287 = vmatpush3.msra.mxu0 %v4051_v21  ;;  %v4082_v39 = vrot.slane %v12862_v35, %v12341_v32 }
0x15be   :  { %10250 = vmatprep.subr.mxu1 %v4034_v58  ;;  %10288 = vmatprep.subr.mxu0 %v4066_v43 }
0x15bf   :  { %10251 = vmatpush3.msra.mxu1 %v4018_v27  ;;  %10289 = vmatpush3.msra.mxu0 %v4050_v28 }
0x15c0   :  { %10252 = vmatprep.subr.mxu1 %v4033_v29  ;;  %10290 = vmatprep.subr.mxu0 %v4065_v10 }
0x15c1   :  { %10253 = vmatpush3.msra.mxu1 %v4017_v34  ;;  %10291 = vmatpush3.msra.mxu0 %v4049_v37 }
0x15c2   :  { %10254 = vmatprep.subr.mxu1 %v4032_v36  ;;  %10292 = vmatprep.subr.mxu0 %v4064_v4 }
0x15c3   :  { %10255 = vmatpush3.msra.mxu1 %v4016_v40  ;;  %10293 = vmatpush3.msra.mxu0 %v4048_v45 }
0x15c4   :  { %10256 = vmatprep.subr.mxu1 %v4031_v54  ;;  %10294 = vmatprep.subr.mxu0 %v4063_v59 }
0x15c5   :  { %10257 = vmatpush3.msra.mxu1 %v4015_v14  ;;  %10295 = vmatpush3.msra.mxu0 %v4047_v13 }
0x15c6   :  { %4598 = vmatmul.mubr.f32.vlgmr.msra.gmra.mxu1 %v3803_v3  ;;  %4673 = vmatmul.mubr.f32.vlgmr.msra.gmra.mxu0 %v3805_v16 }
0x15c7   :  { %4602 = vmatprep.mubr.f32.mxu1 %v3820_v51  ;;  %4677 = vmatprep.mubr.f32.mxu0 %v3822_v61 }
0x15c8   :  { %10880 = vmatprep.subr.mxu0 %v11238_v11 }
0x15ca   :  { %4603 = vmatmul.mubr.f32.gmra.mxu1 %v3819_v53  ;;  %4678 = vmatmul.mubr.f32.gmra.mxu0 %v3821_v2 }
0x15cb   :  { %10882 = vmatprep.mubr.msk.f32.mxu0 %vm11239_vm1, %v11238_v11 }
0x161b   :  { %v10030_v6 = vpop.f32.mrf.mxu1  ;;  %v10068_v55 = vpop.f32.mrf.mxu0 }
0x161d   :  { %v10031_v60 = vpop.f32.mrf.mxu1  ;;  %v10069_v20 = vpop.f32.mrf.mxu0 }
0x161e   :  { %v10032_v41 = vadd.f32 %v10031_v60, %v10030_v6  ;;  %v10070_v26 = vadd.f32 %v10069_v20, %v10068_v55 }
0x1620   :  { %v4150_v58 = vadd.f32 %v10032_v41, %v4082_v39 }
0x1621   :  { %v10033_v62 = vpop.f32.mrf.mxu1  ;;  %v10071_v0 = vpop.f32.mrf.mxu0 }
0x1622   :  { %v4225_v29 = vadd.f32 %v10070_v26, %v4150_v58 }
0x1623   :  { %v10034_v1 = vpop.f32.mrf.mxu1  ;;  %v10072_v18 = vpop.f32.mrf.mxu0 }
0x1624   :  { %v10035_v43 = vadd.f32 %v10034_v1, %v10033_v62  ;;  %v10073_v33 = vadd.f32 %v10072_v18, %v10071_v0 }
0x1626   :  { %v4155_v10 = vadd.f32 %v10035_v43, %v4082_v39 }
0x1628   :  { %v4230_v4 = vadd.f32 %v10073_v33, %v4155_v10  ;;  %v9520_v10 = vld [vmem:[%s14409_s1 + $0x28] sm:$0xff]  ;;  %v9517_v33 = vld [vmem:[%s14411_s6 + $0x10] sm:$0xff] }
0x163e   :  { %v10106_v23 = vpop.f32.mrf.mxu1  ;;  %v10144_v44 = vpop.f32.mrf.mxu0 }
0x1640   :  { %v10107_v5 = vpop.f32.mrf.mxu1  ;;  %v10145_v8 = vpop.f32.mrf.mxu0 }
0x1641   :  { %v10108_v27 = vadd.f32 %v10107_v5, %v10106_v23  ;;  %v10146_v38 = vadd.f32 %v10145_v8, %v10144_v44 }
0x1643   :  { %v4300_v34 = vadd.f32 %v10108_v27, %v4225_v29  ;;  %v9521_v29 = vld [vmem:[%s14409_s1 + $0x30] sm:$0xff] }
0x1644   :  { %v10109_v9 = vpop.f32.mrf.mxu1  ;;  %v10147_v12 = vpop.f32.mrf.mxu0 }
0x1645   :  { %v4375_v45 = vadd.f32 %v10146_v38, %v4300_v34  ;;  %v4821_v34 = vrot.slane %v9517_v33, %v11339_v7 }
0x1646   :  { %v10110_v56 = vpop.f32.mrf.mxu1  ;;  %v10148_v15 = vpop.f32.mrf.mxu0 }
0x1647   :  { %v10111_v37 = vadd.f32 %v10110_v56, %v10109_v9  ;;  %v10149_v54 = vadd.f32 %v10148_v15, %v10147_v12 }
0x1649   :  { %v4305_v46 = vadd.f32 %v10111_v37, %v4230_v4 }
0x164b   :  { %v4380_v16 = vadd.f32 %v10149_v54, %v4305_v46  ;;  %v9516_v54 = vld [vmem:[%s14411_s6 + $0x8] ss:$0 sm:$0xff] }
0x1662   :  { %v10182_v19 = vpop.f32.mrf.mxu1  ;;  %v10220_v21 = vpop.f32.mrf.mxu0 }
0x1664   :  { %v10183_v25 = vpop.f32.mrf.mxu1  ;;  %v10221_v28 = vpop.f32.mrf.mxu0 }
0x1665   :  { %v10184_v42 = vadd.f32 %v10183_v25, %v10182_v19  ;;  %v10222_v22 = vadd.f32 %v10221_v28, %v10220_v21 }
0x1667   :  { %v4450_v59 = vadd.f32 %v10184_v42, %v4375_v45  ;;  %v4714_v45 = vrot.slane %v12862_v35, %v12210_v24 }
0x1668   :  { %v10185_v30 = vpop.f32.mrf.mxu1  ;;  %v10223_v36 = vpop.f32.mrf.mxu0 }
0x1669   :  { %v4525_v61 = vadd.f32 %v10222_v22, %v4450_v59 }
0x166a   :  { %v10186_v40 = vpop.f32.mrf.mxu1  ;;  %v10224_v49 = vpop.f32.mrf.mxu0 }
0x166b   :  { %v10187_v14 = vadd.f32 %v10186_v40, %v10185_v30  ;;  %v10225_v60 = vadd.f32 %v10224_v49, %v10223_v36  ;;  %v9519_v30 = vld [vmem:[%s14409_s1 + $0x20] sm:$0xff] }
0x166d   :  { %v4455_v53 = vadd.f32 %v10187_v14, %v4380_v16 }
0x166f   :  { %v4530_v18 = vadd.f32 %v10225_v60, %v4455_v53 }
0x1686   :  { %v10258_v13 = vpop.f32.mrf.mxu1  ;;  %v10296_v3 = vpop.f32.mrf.mxu0 }
0x1688   :  { %v10259_v50 = vpop.f32.mrf.mxu1  ;;  %v10297_v51 = vpop.f32.mrf.mxu0 }
0x1689   :  { %v10260_v2 = vadd.f32 %v10259_v50, %v10258_v13  ;;  %v10298_v62 = vadd.f32 %v10297_v51, %v10296_v3 }
0x168a   :  { %v10261_v6 = vpop.f32.mrf.mxu1  ;;  %v10299_v55 = vpop.f32.mrf.mxu0 }
0x168b   :  { %v4600_v20 = vadd.f32 %v10260_v2, %v4525_v61  ;;  %v4815_v2 = vrot.slane %v9517_v33, %v11365_v17 }
0x168c   :  { %v10262_v0 = vpop.f32.mrf.mxu1  ;;  %v10300_v1 = vpop.f32.mrf.mxu0 }
0x168d   :  { %v4675_v23 = vadd.f32 %v10298_v62, %v4600_v20  ;;  %v10263_v44 = vadd.f32 %v10262_v0, %v10261_v6  ;;  %v10301_v8 = vadd.f32 %v10300_v1, %v10299_v55 }
0x168f   :  { %v4605_v5 = vadd.f32 %v10263_v44, %v4530_v18  ;;  %v4683_v9 = vadd.f32 %v4675_v23, %v11804_v52 }
0x1691   :  { %v4680_v12 = vadd.f32 %v10301_v8, %v4605_v5  ;;  %v4685_v56 = vsel %vm42_vm0, %v4683_v9, 0.0 }
0x1692   :  { %4686 = vadd.xlane.f32.xlu1 %v4685_v56 }
0x1693   :  { %v4684_v39 = vadd.f32 %v4680_v12, %v11828_v63  ;;  %v9522_v63 = vld [vmem:[%s14409_s1 + $0x38] sm:$0xff] }
0x1694   :  { %10864 = vmatprep.subr.mxu1 %v9522_v63 }
0x1695   :  { %v4688_v41 = vsel %vm42_vm0, %v4684_v39, 0.0  ;;  %10865 = vmatpush3.msra.mxu1 %v9522_v63 }
0x1696   :  { %4689 = vadd.xlane.f32.xlu0 %v4688_v41  ;;  %10866 = vmatprep.subr.mxu1 %v9521_v29 }
0x1697   :  { %10867 = vmatpush3.msra.mxu1 %v9521_v29 }
0x1698   :  { %10868 = vmatprep.subr.mxu1 %v9520_v10 }
0x1699   :  { %10869 = vmatpush3.msra.mxu1 %v9520_v10 }
0x169a   :  { %10870 = vmatprep.subr.mxu1 %v9519_v30 }
0x169b   :  { %10871 = vmatpush3.msra.mxu1 %v9519_v30 }
0x169c   :  { %10875 = vmatprep.subr.mxu1 %v11238_v11 }
0x171b   :  { %v4687_v15 = vpop.xlane.xlu1 %4686 }
0x171c   :  { %v4691_v19 = vmul.f32 0.03125, %v4687_v15 }
0x171e   :  { %v4693_v21 = vsub.f32 %v4683_v9, %v4691_v19  ;;  %v4831_v9 = vrot.slane %v9517_v33, %v11387_v31 }
0x171f   :  { %v4690_v58 = vpop.xlane.xlu0 %4689 }
0x1720   :  { %v4692_v43 = vmul.f32 0.03125, %v4690_v58  ;;  %v4695_v25 = vmul.f32 %v4693_v21, %v4693_v21 }
0x1722   :  { %v4694_v26 = vsub.f32 %v4684_v39, %v4692_v43  ;;  %v4697_v27 = vsel %vm42_vm0, %v4695_v25, 0.0 }
0x1723   :  { %4698 = vadd.xlane.f32.xlu1 %v4697_v27 }
0x1724   :  { %v4696_v52 = vmul.f32 %v4694_v26, %v4694_v26 }
0x1726   :  { %v4700_v28 = vsel %vm42_vm0, %v4696_v52, 0.0 }
0x1727   :  { %4701 = vadd.xlane.f32.xlu0 %v4700_v28 }
0x1734   :  { %4823 = vrot.lane.b32.xlu1 %v4821_v34, %s11237_s23  ;;  %s14457_s23 = smov 80  }
0x17ac   :  { %v4699_v37 = vpop.xlane.xlu1 %4698 }
0x17ad   :  { %v4703_v36 = vmul.f32 0.03125, %v4699_v37 }
0x17af   :  { %v4705_v4 = vadd.f32 1e-05, %v4703_v36 }
0x17b0   :  { %v4702_v38 = vpop.xlane.xlu0 %4701  ;;  %v4824_v35 = vpop.permute.xlu1 %4823 }
0x17b1   :  { %11147 = vrsqrt.f32 %v4705_v4  ;;  %v4704_v42 = vmul.f32 0.03125, %v4702_v38 }
0x17b3   :  { %v4706_v40 = vadd.f32 1e-05, %v4704_v42 }
0x17b5   :  { %11149 = vrsqrt.f32 %v4706_v40 }
0x17be   :  { %v11148_v46 = vpop.eup %11147 }
0x17bf   :  { %v4709_v49 = vmul.f32 %v11148_v46, %v4693_v21 }
0x17c1   :  { %v4715_v59 = vmul.f32 %v4714_v45, %v4709_v49 }
0x17c2   :  { %v11150_v14 = vpop.eup %11149 }
0x17c3   :  { %v4710_v13 = vmul.f32 %v11150_v14, %v4694_v26  ;;  %v12895_v3 = vadd.f32 %v9516_v54, %v4715_v59 }
0x17c5   :  { %v4716_v16 = vmul.f32 %v4714_v45, %v4710_v13  ;;  %10872 = vmatprep.mubr.msk.f32.mxu1 %vm42_vm0, %v12895_v3 }
0x17c7   :  { %v12899_v22 = vadd.f32 %v9516_v54, %v4716_v16 }
0x17c9   :  { %10873 = vmatmul.mubr.msk.f32.vlgmr.msra.gmra.mxu1 %vm42_vm0, %v12899_v22 }
0x17ca   :  { %10877 = vmatprep.mubr.msk.f32.mxu1 %vm11239_vm1, %v11238_v11 }
0x1889   :  { %v10874_v50 = vpop.f32.mrf.mxu1 }
0x188a   :  { %v12905_v51 = vadd.f32 %v10874_v50, %v4824_v35  ;;  %v12915_v55 = vadd.f32 %v10874_v50, %v4815_v2 }
0x188b   :  { %v4803_v61 = vpop.f32.mrf.mxu1 }
0x188c   :  { %v12907_v53 = vadd.f32 %v4824_v35, %v4803_v61  ;;  %4917 = vrot.lane.b32.xlu1 %v12905_v51, %s11240_s24  ;;  %v12919_v20 = vadd.f32 %v4815_v2, %v4803_v61 }
0x188e   :  { %4839 = vrot.lane.b32.xlu0 %v12907_v53, %s11240_s24  ;;  %s14458_s24 = smov 112  }
0x18fe   :  { %v4918_v6 = vpop.permute.xlu1 %4917 }
0x18ff   :  { %10881 = vmatpush3.xpose.msk.msra.mxu0 %vm153_vm2, %v4918_v6 }
0x1900   :  { %v4840_v60 = vpop.permute.xlu0 %4839  ;;  %10890 = vmatprep.subr.mxu0 %v11238_v11 }
0x1901   :  { %10876 = vmatpush3.xpose.msk.msra.mxu1 %vm153_vm2, %v4840_v60 }
0x1902   :  { %10883 = vmatmul.mubr.msk.f32.vlgmr.msra.gmra.mxu0 %vm153_vm2, %v12915_v55  ;;  %10885 = vmatprep.subr.mxu1 %v11238_v11 }
0x1903   :  { %10892 = vmatprep.mubr.msk.f32.mxu0 %vm11239_vm1, %v11238_v11 }
0x1904   :  { %10878 = vmatmul.mubr.msk.f32.vlgmr.msra.gmra.mxu1 %vm153_vm2, %v12919_v20 }
0x1905   :  { %10887 = vmatprep.mubr.msk.f32.mxu1 %vm11239_vm1, %v11238_v11 }
0x19c2   :  { %v4990_v62 = vpop.f32.mrf.mxu0 }
0x19c3   :  { %v4995_v0 = vmul.f32 0.5, %v4990_v62 }
0x19c4   :  { %v4912_v1 = vpop.f32.mrf.mxu1  ;;  %v10884_v18 = vpop.f32.mrf.mxu0 }
0x19c5   :  { %v4994_v23 = vmul.f32 0.5, %v4912_v1  ;;  %v4999_v44 = vsel %vm309_vm3, %v4995_v0, -inf }
0x19c6   :  { %5000 = vmax.xlane.f32.xlu0 %v4999_v44  ;;  %v10879_v5 = vpop.f32.mrf.mxu1 }
0x19c7   :  { %v4996_v8 = vsel %vm309_vm3, %v4994_v23, -inf }
0x19c8   :  { %4997 = vmax.xlane.f32.xlu1 %v4996_v8 }
0x19dc   :  { %4833 = vrot.lane.b32.xlu0 %v4831_v9, %s11241_s25 }
0x1a4f   :  { %v5001_v12 = vpop.xlane.xlu0 %5000 }
0x1a50   :  { %v5003_v15 = vsub.f32 %v4995_v0, %v5001_v12 }
0x1a51   :  { %v4998_v19 = vpop.xlane.xlu1 %4997 }
0x1a52   :  { %v5006_v21 = vmul.f32 1.442695, %v5003_v15  ;;  %v5002_v58 = vsub.f32 %v4994_v23, %v4998_v19 }
0x1a53   :  { %v4834_v56 = vpop.permute.xlu0 %4833 }
0x1a54   :  { %v12934_v39 = vadd.f32 %v4834_v56, %v4803_v61  ;;  %v12936_v41 = vadd.f32 %v10874_v50, %v4834_v56  ;;  %11151 = vpow2.f32 %v5006_v21  ;;  %v5004_v43 = vmul.f32 1.442695, %v5002_v58 }
0x1a56   :  { %5096 = vrot.lane.b32.xlu0 %v12936_v41, %s11241_s25  ;;  %5019 = vrot.lane.b32.xlu1 %v12934_v39, %s11241_s25  ;;  %11153 = vpow2.f32 %v5004_v43  ;;  %s14459_s25 = smov 48  }
0x1a5a   :  { %5176 = vrot.lane.b32.xlu0 %v12907_v53, %s11242_s26  ;;  %5254 = vrot.lane.b32.xlu1 %v12905_v51, %s11242_s26  ;;  %s14460_s26 = smov 76  }
0x1a5e   :  { %5174 = vrot.lane.b32.xlu0 %v12919_v20, %s11243_s27 }
0x1a61   :  { %v11152_v25 = vpop.eup %11151 }
0x1a62   :  { %v5011_v26 = vsel %vm309_vm3, %v11152_v25, 0.0 }
0x1a63   :  { %v11154_v27 = vpop.eup %11153 }
0x1a64   :  { %v5008_v52 = vsel %vm309_vm3, %v11154_v27, 0.0 }
0x1a7e   :  { %5012 = vadd.xlane.f32.xlu1 %v5011_v26 }
0x1a82   :  { %5009 = vadd.xlane.f32.xlu1 %v5008_v52 }
0x1a93   :  { %5252 = vrot.lane.b32.xlu1 %v12915_v55, %s11243_s27  ;;  %s14461_s27 = smov 108  }
0x1ac8   :  { %v5097_v28 = vpop.permute.xlu0 %5096  ;;  %v5020_v63 = vpop.permute.xlu1 %5019 }
0x1ac9   :  { %10886 = vmatpush3.msra.mxu1 %v5020_v63  ;;  %10891 = vmatpush3.msra.mxu0 %v5097_v28 }
0x1aca   :  { %10900 = vmatprep.subr.mxu0 %v11238_v11  ;;  %10895 = vmatprep.subr.mxu1 %v11238_v11 }
0x1acc   :  { %v5255_v29 = vpop.permute.xlu1 %5254  ;;  %v5177_v36 = vpop.permute.xlu0 %5176 }
0x1ad0   :  { %v5175_v42 = vpop.permute.xlu0 %5174 }
0x1b07   :  { %v5013_v10 = vpop.xlane.xlu1 %5012 }
0x1b08   :  { %11155 = vrcp.f32 %v5013_v10 }
0x1b0b   :  { %v5010_v30 = vpop.xlane.xlu1 %5009 }
0x1b0c   :  { %11157 = vrcp.f32 %v5010_v30 }
0x1b0f   :  { %v5253_v38 = vpop.permute.xlu1 %5252 }
0x1b15   :  { %v11156_v33 = vpop.eup %11155 }
0x1b16   :  { %v5017_v34 = vmul.f32 %v11156_v33, %v11152_v25 }
0x1b18   :  { %10893 = vmatmul.mubr.msk.f32.vlgmr.msra.gmra.mxu0 %vm309_vm3, %v5017_v34 }
0x1b19   :  { %v11158_v37 = vpop.eup %11157  ;;  %10901 = vmatpush3.xpose.msk.msra.mxu0 %vm153_vm2, %v5255_v29  ;;  %10902 = vmatprep.mubr.msk.f32.mxu0 %vm11239_vm1, %v11238_v11 }
0x1b1a   :  { %v5016_v4 = vmul.f32 %v11158_v37, %v11154_v27  ;;  %10910 = vmatprep.subr.mxu0 %v11238_v11 }
0x1b1c   :  { %10888 = vmatmul.mubr.msk.f32.vlgmr.msra.gmra.mxu1 %vm309_vm3, %v5016_v4  ;;  %10903 = vmatmul.mubr.msk.f32.vlgmr.msra.gmra.mxu0 %vm153_vm2, %v5253_v38 }
0x1b1d   :  { %10896 = vmatpush3.xpose.msk.msra.mxu1 %vm153_vm2, %v5177_v36  ;;  %10897 = vmatprep.mubr.msk.f32.mxu1 %vm11239_vm1, %v11238_v11 }
0x1b1e   :  { %10905 = vmatprep.subr.mxu1 %v11238_v11  ;;  %10912 = vmatprep.mubr.msk.f32.mxu0 %vm11239_vm1, %v11238_v11 }
0x1b20   :  { %10898 = vmatmul.mubr.msk.f32.vlgmr.msra.gmra.mxu1 %vm153_vm2, %v5175_v42 }
0x1b21   :  { %10907 = vmatprep.mubr.msk.f32.mxu1 %vm11239_vm1, %v11238_v11 }
0x1bd8   :  { %v5168_v40 = vpop.f32.mrf.mxu0 }
0x1bd9   :  { %5173 = vst.msk [vmem:[#allocation2 + $0x8] sm:$0xff] %vm153_vm2, %v5168_v40 }
0x1bda   :  { %v10894_v45 = vpop.f32.mrf.mxu0 }
0x1bdc   :  { %v5091_v46 = vpop.f32.mrf.mxu1  ;;  %v5326_v49 = vpop.f32.mrf.mxu0 }
0x1bdd   :  { %5172 = vst.msk [vmem:[#allocation2] sm:$0xff] %vm153_vm2, %v5091_v46  ;;  %v5331_v54 = vmul.f32 0.5, %v5326_v49 }
0x1bde   :  { %v10889_v59 = vpop.f32.mrf.mxu1  ;;  %v10904_v14 = vpop.f32.mrf.mxu0 }
0x1bdf   :  { %v5335_v13 = vsel %vm309_vm3, %v5331_v54, -inf }
0x1be0   :  { %v5248_v16 = vpop.f32.mrf.mxu1  ;;  %5336 = vmax.xlane.f32.xlu1 %v5335_v13 }
0x1be1   :  { %v5330_v35 = vmul.f32 0.5, %v5248_v16 }
0x1be2   :  { %v10899_v50 = vpop.f32.mrf.mxu1 }
0x1be3   :  { %v5332_v61 = vsel %vm309_vm3, %v5330_v35, -inf }
0x1be4   :  { %5333 = vmax.xlane.f32.xlu0 %v5332_v61 }
0x1bf1   :  { %5354 = vrot.lane.b32.xlu1 %v12934_v39, %s11244_s28 }
0x1bf5   :  { %5518 = vrot.lane.b32.xlu1 %v12907_v53, %s11245_s29 }
0x1bf9   :  { %5596 = vrot.lane.b32.xlu1 %v12905_v51, %s11245_s29  ;;  %s14463_s29 = smov 72  }
0x1bfd   :  { %5594 = vrot.lane.b32.xlu1 %v12915_v55, %s11246_s30 }
0x1c69   :  { %v5337_v2 = vpop.xlane.xlu1 %5336 }
0x1c6a   :  { %v5339_v6 = vsub.f32 %v5331_v54, %v5337_v2 }
0x1c6c   :  { %v5342_v60 = vmul.f32 1.442695, %v5339_v6 }
0x1c6d   :  { %v5334_v62 = vpop.xlane.xlu0 %5333  ;;  %v5355_v0 = vpop.permute.xlu1 %5354 }
0x1c6e   :  { %11159 = vpow2.f32 %v5342_v60  ;;  %v5338_v1 = vsub.f32 %v5330_v35, %v5334_v62  ;;  %10906 = vmatpush3.msra.mxu1 %v5355_v0 }
0x1c6f   :  { %10915 = vmatprep.subr.mxu1 %v11238_v11 }
0x1c70   :  { %v5340_v18 = vmul.f32 1.442695, %v5338_v1 }
0x1c71   :  { %v5519_v56 = vpop.permute.xlu1 %5518 }
0x1c72   :  { %11161 = vpow2.f32 %v5340_v18 }
0x1c75   :  { %v5597_v21 = vpop.permute.xlu1 %5596 }
0x1c79   :  { %v5595_v26 = vpop.permute.xlu1 %5594 }
0x1c7b   :  { %v11160_v23 = vpop.eup %11159 }
0x1c7c   :  { %v5347_v44 = vsel %vm309_vm3, %v11160_v23, 0.0 }
0x1c7d   :  { %5348 = vadd.xlane.f32.xlu0 %v5347_v44 }
0x1c7f   :  { %v11162_v5 = vpop.eup %11161 }
0x1c80   :  { %v5344_v8 = vsel %vm309_vm3, %v11162_v5, 0.0 }
0x1c81   :  { %5345 = vadd.xlane.f32.xlu0 %v5344_v8 }
0x1c97   :  { %5430 = vrot.lane.b32.xlu0 %v12936_v41, %s11244_s28  ;;  %s14462_s28 = smov 44  }
0x1c9b   :  { %5516 = vrot.lane.b32.xlu0 %v12919_v20, %s11246_s30  ;;  %s14464_s30 = smov 104  }
0x1d06   :  { %v5349_v9 = vpop.xlane.xlu0 %5348 }
0x1d07   :  { %11163 = vrcp.f32 %v5349_v9 }
0x1d0a   :  { %v5346_v12 = vpop.xlane.xlu0 %5345 }
0x1d0b   :  { %11165 = vrcp.f32 %v5346_v12 }
0x1d0e   :  { %v5431_v15 = vpop.permute.xlu0 %5430 }
0x1d0f   :  { %10911 = vmatpush3.msra.mxu0 %v5431_v15 }
0x1d10   :  { %10920 = vmatprep.subr.mxu0 %v11238_v11 }
0x1d12   :  { %v5517_v27 = vpop.permute.xlu0 %5516 }
0x1d14   :  { %v11164_v19 = vpop.eup %11163 }
0x1d15   :  { %v5353_v58 = vmul.f32 %v11164_v19, %v11160_v23 }
0x1d17   :  { %10913 = vmatmul.mubr.msk.f32.vlgmr.msra.gmra.mxu0 %vm309_vm3, %v5353_v58 }
0x1d18   :  { %v11166_v43 = vpop.eup %11165  ;;  %10921 = vmatpush3.xpose.msk.msra.mxu0 %vm153_vm2, %v5597_v21  ;;  %10922 = vmatprep.mubr.msk.f32.mxu0 %vm11239_vm1, %v11238_v11 }
0x1d19   :  { %v5352_v25 = vmul.f32 %v11166_v43, %v11162_v5  ;;  %10930 = vmatprep.subr.mxu0 %v11238_v11 }
0x1d1b   :  { %10908 = vmatmul.mubr.msk.f32.vlgmr.msra.gmra.mxu1 %vm309_vm3, %v5352_v25  ;;  %10923 = vmatmul.mubr.msk.f32.vlgmr.msra.gmra.mxu0 %vm153_vm2, %v5595_v26 }
0x1d1c   :  { %10916 = vmatpush3.xpose.msk.msra.mxu1 %vm153_vm2, %v5519_v56  ;;  %10917 = vmatprep.mubr.msk.f32.mxu1 %vm11239_vm1, %v11238_v11 }
0x1d1d   :  { %10925 = vmatprep.subr.mxu1 %v11238_v11  ;;  %10932 = vmatprep.mubr.msk.f32.mxu0 %vm11239_vm1, %v11238_v11 }
0x1d1f   :  { %10918 = vmatmul.mubr.msk.f32.vlgmr.msra.gmra.mxu1 %vm153_vm2, %v5517_v27 }
0x1d20   :  { %10927 = vmatprep.mubr.msk.f32.mxu1 %vm11239_vm1, %v11238_v11 }
0x1dd7   :  { %v13006_v52 = vpop.f32.mrf.mxu0 }
0x1dd9   :  { %v10914_v28 = vpop.f32.mrf.mxu0 }
0x1ddb   :  { %v13008_v63 = vpop.f32.mrf.mxu1  ;;  %v5668_v29 = vpop.f32.mrf.mxu0 }
0x1ddc   :  { %v5673_v10 = vmul.f32 0.5, %v5668_v29 }
0x1ddd   :  { %v10909_v30 = vpop.f32.mrf.mxu1  ;;  %v10924_v33 = vpop.f32.mrf.mxu0 }
0x1dde   :  { %v5677_v34 = vsel %vm309_vm3, %v5673_v10, -inf }
0x1ddf   :  { %v5590_v37 = vpop.f32.mrf.mxu1  ;;  %5678 = vmax.xlane.f32.xlu1 %v5677_v34 }
0x1de0   :  { %v5672_v36 = vmul.f32 0.5, %v5590_v37 }
0x1de1   :  { %v10919_v4 = vpop.f32.mrf.mxu1 }
0x1de2   :  { %v5674_v38 = vsel %vm309_vm3, %v5672_v36, -inf }
0x1de3   :  { %5675 = vmax.xlane.f32.xlu0 %v5674_v38 }
0x1df0   :  { %5696 = vrot.lane.b32.xlu1 %v12934_v39, %s11247_s10 }
0x1df4   :  { %5860 = vrot.lane.b32.xlu1 %v12907_v53, %s11248_s11 }
0x1df8   :  { %5938 = vrot.lane.b32.xlu1 %v12905_v51, %s11248_s11  ;;  %s14466_s11 = smov 68  }
0x1dfc   :  { %5936 = vrot.lane.b32.xlu1 %v12915_v55, %s11249_s12 }
0x1e68   :  { %v5679_v42 = vpop.xlane.xlu1 %5678 }
0x1e69   :  { %v5681_v40 = vsub.f32 %v5673_v10, %v5679_v42 }
0x1e6b   :  { %v5684_v45 = vmul.f32 1.442695, %v5681_v40 }
0x1e6c   :  { %v5676_v46 = vpop.xlane.xlu0 %5675  ;;  %v5697_v49 = vpop.permute.xlu1 %5696 }
0x1e6d   :  { %11167 = vpow2.f32 %v5684_v45  ;;  %v5680_v54 = vsub.f32 %v5672_v36, %v5676_v46  ;;  %10926 = vmatpush3.msra.mxu1 %v5697_v49 }
0x1e6e   :  { %10935 = vmatprep.subr.mxu1 %v11238_v11 }
0x1e6f   :  { %v5682_v59 = vmul.f32 1.442695, %v5680_v54 }
0x1e70   :  { %v5861_v2 = vpop.permute.xlu1 %5860 }
0x1e71   :  { %11169 = vpow2.f32 %v5682_v59 }
0x1e74   :  { %v5939_v62 = vpop.permute.xlu1 %5938 }
0x1e78   :  { %v5937_v23 = vpop.permute.xlu1 %5936 }
0x1e7a   :  { %v11168_v14 = vpop.eup %11167 }
0x1e7b   :  { %v5689_v13 = vsel %vm309_vm3, %v11168_v14, 0.0 }
0x1e7c   :  { %5690 = vadd.xlane.f32.xlu0 %v5689_v13 }
0x1e7e   :  { %v11170_v16 = vpop.eup %11169 }
0x1e7f   :  { %v5686_v35 = vsel %vm309_vm3, %v11170_v16, 0.0 }
0x1e80   :  { %5687 = vadd.xlane.f32.xlu0 %v5686_v35 }
0x1e96   :  { %5772 = vrot.lane.b32.xlu0 %v12936_v41, %s11247_s10  ;;  %s14465_s10 = smov 40  }
0x1e9a   :  { %5858 = vrot.lane.b32.xlu0 %v12919_v20, %s11249_s12  ;;  %s14467_s12 = smov 100  }
0x1f05   :  { %v5691_v50 = vpop.xlane.xlu0 %5690 }
0x1f06   :  { %11171 = vrcp.f32 %v5691_v50 }
0x1f09   :  { %v5688_v61 = vpop.xlane.xlu0 %5687 }
0x1f0a   :  { %11173 = vrcp.f32 %v5688_v61 }
0x1f0d   :  { %v5773_v6 = vpop.permute.xlu0 %5772 }
0x1f0e   :  { %10931 = vmatpush3.msra.mxu0 %v5773_v6 }
0x1f0f   :  { %10940 = vmatprep.subr.mxu0 %v11238_v11 }
0x1f11   :  { %v5859_v44 = vpop.permute.xlu0 %5858 }
0x1f13   :  { %v11172_v60 = vpop.eup %11171 }
0x1f14   :  { %v5695_v0 = vmul.f32 %v11172_v60, %v11168_v14 }
0x1f16   :  { %10933 = vmatmul.mubr.msk.f32.vlgmr.msra.gmra.mxu0 %vm309_vm3, %v5695_v0 }
0x1f17   :  { %v11174_v1 = vpop.eup %11173  ;;  %10941 = vmatpush3.xpose.msk.msra.mxu0 %vm153_vm2, %v5939_v62  ;;  %10942 = vmatprep.mubr.msk.f32.mxu0 %vm11239_vm1, %v11238_v11 }
0x1f18   :  { %v5694_v18 = vmul.f32 %v11174_v1, %v11170_v16  ;;  %10950 = vmatprep.subr.mxu0 %v11238_v11 }
0x1f1a   :  { %10928 = vmatmul.mubr.msk.f32.vlgmr.msra.gmra.mxu1 %vm309_vm3, %v5694_v18  ;;  %10943 = vmatmul.mubr.msk.f32.vlgmr.msra.gmra.mxu0 %vm153_vm2, %v5937_v23 }
0x1f1b   :  { %10936 = vmatpush3.xpose.msk.msra.mxu1 %vm153_vm2, %v5861_v2  ;;  %10937 = vmatprep.mubr.msk.f32.mxu1 %vm11239_vm1, %v11238_v11 }
0x1f1c   :  { %10945 = vmatprep.subr.mxu1 %v11238_v11  ;;  %10952 = vmatprep.mubr.msk.f32.mxu0 %vm11239_vm1, %v11238_v11 }
0x1f1e   :  { %10938 = vmatmul.mubr.msk.f32.vlgmr.msra.gmra.mxu1 %vm153_vm2, %v5859_v44 }
0x1f1f   :  { %10947 = vmatprep.mubr.msk.f32.mxu1 %vm11239_vm1, %v11238_v11 }
0x1fd6   :  { %v13044_v5 = vpop.f32.mrf.mxu0 }
0x1fd8   :  { %v10934_v8 = vpop.f32.mrf.mxu0 }
0x1fda   :  { %v13046_v9 = vpop.f32.mrf.mxu1  ;;  %v6010_v12 = vpop.f32.mrf.mxu0 }
0x1fdb   :  { %v6015_v56 = vmul.f32 0.5, %v6010_v12 }
0x1fdc   :  { %v10929_v15 = vpop.f32.mrf.mxu1  ;;  %v10944_v19 = vpop.f32.mrf.mxu0 }
0x1fdd   :  { %v6019_v21 = vsel %vm309_vm3, %v6015_v56, -inf }
0x1fde   :  { %v5932_v58 = vpop.f32.mrf.mxu1  ;;  %6020 = vmax.xlane.f32.xlu1 %v6019_v21 }
0x1fdf   :  { %v6014_v43 = vmul.f32 0.5, %v5932_v58 }
0x1fe0   :  { %v10939_v25 = vpop.f32.mrf.mxu1 }
0x1fe1   :  { %v6016_v26 = vsel %vm309_vm3, %v6014_v43, -inf }
0x1fe2   :  { %6017 = vmax.xlane.f32.xlu0 %v6016_v26 }
0x1fef   :  { %6038 = vrot.lane.b32.xlu1 %v12934_v39, %s11250_s13 }
0x1ff3   :  { %6202 = vrot.lane.b32.xlu1 %v12907_v53, %s14457_s23 }
0x1ff7   :  { %6280 = vrot.lane.b32.xlu1 %v12905_v51, %s14457_s23 }
0x1ffb   :  { %6278 = vrot.lane.b32.xlu1 %v12915_v55, %s14458_s24 }
0x2067   :  { %v6021_v27 = vpop.xlane.xlu1 %6020 }
0x2068   :  { %v6023_v28 = vsub.f32 %v6015_v56, %v6021_v27 }
0x206a   :  { %v6026_v29 = vmul.f32 1.442695, %v6023_v28 }
0x206b   :  { %v6018_v10 = vpop.xlane.xlu0 %6017  ;;  %v6039_v30 = vpop.permute.xlu1 %6038 }
0x206c   :  { %11175 = vpow2.f32 %v6026_v29  ;;  %v6022_v33 = vsub.f32 %v6014_v43, %v6018_v10  ;;  %10946 = vmatpush3.msra.mxu1 %v6039_v30 }
0x206d   :  { %10955 = vmatprep.subr.mxu1 %v11238_v11 }
0x206e   :  { %v6024_v34 = vmul.f32 1.442695, %v6022_v33 }
0x206f   :  { %v6203_v45 = vpop.permute.xlu1 %6202 }
0x2070   :  { %11177 = vpow2.f32 %v6024_v34 }
0x2073   :  { %v6281_v54 = vpop.permute.xlu1 %6280 }
0x2077   :  { %v6279_v16 = vpop.permute.xlu1 %6278 }
0x2079   :  { %v11176_v37 = vpop.eup %11175 }
0x207a   :  { %v6031_v36 = vsel %vm309_vm3, %v11176_v37, 0.0 }
0x207b   :  { %6032 = vadd.xlane.f32.xlu0 %v6031_v36 }
0x207d   :  { %v11178_v4 = vpop.eup %11177 }
0x207e   :  { %v6028_v38 = vsel %vm309_vm3, %v11178_v4, 0.0 }
0x207f   :  { %6029 = vadd.xlane.f32.xlu0 %v6028_v38 }
0x2095   :  { %6114 = vrot.lane.b32.xlu0 %v12936_v41, %s11250_s13  ;;  %s14468_s13 = smov 36  }
0x2099   :  { %6200 = vrot.lane.b32.xlu0 %v12919_v20, %s14458_s24 }
0x2104   :  { %v6033_v42 = vpop.xlane.xlu0 %6032 }
0x2105   :  { %11179 = vrcp.f32 %v6033_v42 }
0x2108   :  { %v6030_v40 = vpop.xlane.xlu0 %6029 }
0x2109   :  { %11181 = vrcp.f32 %v6030_v40 }
0x210c   :  { %v6115_v46 = vpop.permute.xlu0 %6114 }
0x210d   :  { %10951 = vmatpush3.msra.mxu0 %v6115_v46 }
0x210e   :  { %10960 = vmatprep.subr.mxu0 %v11238_v11 }
0x2110   :  { %v6201_v35 = vpop.permute.xlu0 %6200 }
0x2112   :  { %v11180_v49 = vpop.eup %11179 }
0x2113   :  { %v6037_v59 = vmul.f32 %v11180_v49, %v11176_v37 }
0x2115   :  { %10953 = vmatmul.mubr.msk.f32.vlgmr.msra.gmra.mxu0 %vm309_vm3, %v6037_v59 }
0x2116   :  { %v11182_v14 = vpop.eup %11181  ;;  %10961 = vmatpush3.xpose.msk.msra.mxu0 %vm153_vm2, %v6281_v54  ;;  %10962 = vmatprep.mubr.msk.f32.mxu0 %vm11239_vm1, %v11238_v11 }
0x2117   :  { %v6036_v13 = vmul.f32 %v11182_v14, %v11178_v4  ;;  %10970 = vmatprep.subr.mxu0 %v11238_v11 }
0x2119   :  { %10948 = vmatmul.mubr.msk.f32.vlgmr.msra.gmra.mxu1 %vm309_vm3, %v6036_v13  ;;  %10963 = vmatmul.mubr.msk.f32.vlgmr.msra.gmra.mxu0 %vm153_vm2, %v6279_v16 }
0x211a   :  { %10956 = vmatpush3.xpose.msk.msra.mxu1 %vm153_vm2, %v6203_v45  ;;  %10957 = vmatprep.mubr.msk.f32.mxu1 %vm11239_vm1, %v11238_v11 }
0x211b   :  { %10965 = vmatprep.subr.mxu1 %v11238_v11  ;;  %10972 = vmatprep.mubr.msk.f32.mxu0 %vm11239_vm1, %v11238_v11 }
0x211d   :  { %10958 = vmatmul.mubr.msk.f32.vlgmr.msra.gmra.mxu1 %vm153_vm2, %v6201_v35 }
0x211e   :  { %10967 = vmatprep.mubr.msk.f32.mxu1 %vm11239_vm1, %v11238_v11 }
0x21d5   :  { %v13082_v50 = vpop.f32.mrf.mxu0 }
0x21d7   :  { %v10954_v61 = vpop.f32.mrf.mxu0 }
0x21d9   :  { %v13084_v2 = vpop.f32.mrf.mxu1  ;;  %v6352_v6 = vpop.f32.mrf.mxu0 }
0x21da   :  { %v6357_v60 = vmul.f32 0.5, %v6352_v6 }
0x21db   :  { %v10949_v62 = vpop.f32.mrf.mxu1  ;;  %v10964_v0 = vpop.f32.mrf.mxu0 }
0x21dc   :  { %v6361_v1 = vsel %vm309_vm3, %v6357_v60, -inf }
0x21dd   :  { %v6274_v18 = vpop.f32.mrf.mxu1  ;;  %6362 = vmax.xlane.f32.xlu1 %v6361_v1 }
0x21de   :  { %v6356_v23 = vmul.f32 0.5, %v6274_v18 }
0x21df   :  { %v10959_v44 = vpop.f32.mrf.mxu1 }
0x21e0   :  { %v6358_v8 = vsel %vm309_vm3, %v6356_v23, -inf }
0x21e1   :  { %6359 = vmax.xlane.f32.xlu0 %v6358_v8 }
0x21ee   :  { %6380 = vrot.lane.b32.xlu1 %v12934_v39, %s14459_s25 }
0x21f2   :  { %6544 = vrot.lane.b32.xlu1 %v12907_v53, %s14460_s26 }
0x21f6   :  { %6622 = vrot.lane.b32.xlu1 %v12905_v51, %s14460_s26  ;;  %s14475_s26 = smov 28  }
0x21fa   :  { %6620 = vrot.lane.b32.xlu1 %v12915_v55, %s14461_s27 }
0x2266   :  { %v6363_v12 = vpop.xlane.xlu1 %6362 }
0x2267   :  { %v6365_v56 = vsub.f32 %v6357_v60, %v6363_v12 }
0x2269   :  { %v6368_v15 = vmul.f32 1.442695, %v6365_v56 }
0x226a   :  { %v6360_v19 = vpop.xlane.xlu0 %6359  ;;  %v6381_v21 = vpop.permute.xlu1 %6380 }
0x226b   :  { %11183 = vpow2.f32 %v6368_v15  ;;  %v6364_v58 = vsub.f32 %v6356_v23, %v6360_v19  ;;  %10966 = vmatpush3.msra.mxu1 %v6381_v21 }
0x226c   :  { %10975 = vmatprep.subr.mxu1 %v11238_v11 }
0x226d   :  { %v6366_v43 = vmul.f32 1.442695, %v6364_v58 }
0x226e   :  { %v6545_v30 = vpop.permute.xlu1 %6544 }
0x226f   :  { %11185 = vpow2.f32 %v6366_v43 }
0x2272   :  { %v6623_v37 = vpop.permute.xlu1 %6622 }
0x2276   :  { %v6621_v42 = vpop.permute.xlu1 %6620 }
0x2278   :  { %v11184_v25 = vpop.eup %11183 }
0x2279   :  { %v6373_v26 = vsel %vm309_vm3, %v11184_v25, 0.0 }
0x227a   :  { %6374 = vadd.xlane.f32.xlu0 %v6373_v26 }
0x227c   :  { %v11186_v27 = vpop.eup %11185 }
0x227d   :  { %v6370_v28 = vsel %vm309_vm3, %v11186_v27, 0.0 }
0x227e   :  { %6371 = vadd.xlane.f32.xlu0 %v6370_v28 }
0x2294   :  { %6456 = vrot.lane.b32.xlu0 %v12936_v41, %s14459_s25 }
0x2298   :  { %6542 = vrot.lane.b32.xlu0 %v12919_v20, %s14461_s27 }
0x2303   :  { %v6375_v29 = vpop.xlane.xlu0 %6374 }
0x2304   :  { %11187 = vrcp.f32 %v6375_v29 }
0x2307   :  { %v6372_v10 = vpop.xlane.xlu0 %6371 }
0x2308   :  { %11189 = vrcp.f32 %v6372_v10 }
0x230b   :  { %v6457_v33 = vpop.permute.xlu0 %6456 }
0x230c   :  { %10971 = vmatpush3.msra.mxu0 %v6457_v33 }
0x230d   :  { %10980 = vmatprep.subr.mxu0 %v11238_v11 }
0x230f   :  { %v6543_v40 = vpop.permute.xlu0 %6542 }
0x2311   :  { %v11188_v34 = vpop.eup %11187 }
0x2312   :  { %v6379_v36 = vmul.f32 %v11188_v34, %v11184_v25 }
0x2314   :  { %10973 = vmatmul.mubr.msk.f32.vlgmr.msra.gmra.mxu0 %vm309_vm3, %v6379_v36 }
0x2315   :  { %v11190_v4 = vpop.eup %11189  ;;  %10981 = vmatpush3.xpose.msk.msra.mxu0 %vm153_vm2, %v6623_v37  ;;  %10982 = vmatprep.mubr.msk.f32.mxu0 %vm11239_vm1, %v11238_v11 }
0x2316   :  { %v6378_v38 = vmul.f32 %v11190_v4, %v11186_v27  ;;  %10990 = vmatprep.subr.mxu0 %v11238_v11 }
0x2318   :  { %10968 = vmatmul.mubr.msk.f32.vlgmr.msra.gmra.mxu1 %vm309_vm3, %v6378_v38  ;;  %10983 = vmatmul.mubr.msk.f32.vlgmr.msra.gmra.mxu0 %vm153_vm2, %v6621_v42 }
0x2319   :  { %10976 = vmatpush3.xpose.msk.msra.mxu1 %vm153_vm2, %v6545_v30  ;;  %10977 = vmatprep.mubr.msk.f32.mxu1 %vm11239_vm1, %v11238_v11 }
0x231a   :  { %10985 = vmatprep.subr.mxu1 %v11238_v11  ;;  %10992 = vmatprep.mubr.msk.f32.mxu0 %vm11239_vm1, %v11238_v11 }
0x231c   :  { %10978 = vmatmul.mubr.msk.f32.vlgmr.msra.gmra.mxu1 %vm153_vm2, %v6543_v40 }
0x231d   :  { %10987 = vmatprep.mubr.msk.f32.mxu1 %vm11239_vm1, %v11238_v11 }
0x23d4   :  { %v13120_v45 = vpop.f32.mrf.mxu0 }
0x23d6   :  { %v10974_v46 = vpop.f32.mrf.mxu0 }
0x23d8   :  { %v13122_v49 = vpop.f32.mrf.mxu1  ;;  %v6694_v54 = vpop.f32.mrf.mxu0 }
0x23d9   :  { %v6699_v59 = vmul.f32 0.5, %v6694_v54 }
0x23da   :  { %v10969_v14 = vpop.f32.mrf.mxu1  ;;  %v10984_v13 = vpop.f32.mrf.mxu0 }
0x23db   :  { %v6703_v16 = vsel %vm309_vm3, %v6699_v59, -inf }
0x23dc   :  { %v6616_v35 = vpop.f32.mrf.mxu1  ;;  %6704 = vmax.xlane.f32.xlu1 %v6703_v16 }
0x23dd   :  { %v6698_v61 = vmul.f32 0.5, %v6616_v35 }
0x23de   :  { %v10979_v6 = vpop.f32.mrf.mxu1 }
0x23df   :  { %v6700_v60 = vsel %vm309_vm3, %v6698_v61, -inf }
0x23e0   :  { %6701 = vmax.xlane.f32.xlu0 %v6700_v60 }
0x23ed   :  { %6722 = vrot.lane.b32.xlu1 %v12934_v39, %s14462_s28 }
0x23f1   :  { %6886 = vrot.lane.b32.xlu1 %v12907_v53, %s14463_s29 }
0x23f5   :  { %6964 = vrot.lane.b32.xlu1 %v12905_v51, %s14463_s29 }
0x23f9   :  { %6962 = vrot.lane.b32.xlu1 %v12915_v55, %s14464_s30 }
0x2465   :  { %v6705_v62 = vpop.xlane.xlu1 %6704 }
0x2466   :  { %v6707_v0 = vsub.f32 %v6699_v59, %v6705_v62 }
0x2468   :  { %v6710_v1 = vmul.f32 1.442695, %v6707_v0 }
0x2469   :  { %v6702_v18 = vpop.xlane.xlu0 %6701  ;;  %v6723_v23 = vpop.permute.xlu1 %6722 }
0x246a   :  { %11191 = vpow2.f32 %v6710_v1  ;;  %v6706_v44 = vsub.f32 %v6698_v61, %v6702_v18  ;;  %10986 = vmatpush3.msra.mxu1 %v6723_v23 }
0x246b   :  { %10995 = vmatprep.subr.mxu1 %v11238_v11 }
0x246c   :  { %v6708_v8 = vmul.f32 1.442695, %v6706_v44 }
0x246d   :  { %v6887_v43 = vpop.permute.xlu1 %6886 }
0x246e   :  { %11193 = vpow2.f32 %v6708_v8 }
0x2471   :  { %v6965_v27 = vpop.permute.xlu1 %6964 }
0x2475   :  { %v6963_v30 = vpop.permute.xlu1 %6962 }
0x2477   :  { %v11192_v12 = vpop.eup %11191 }
0x2478   :  { %v6715_v56 = vsel %vm309_vm3, %v11192_v12, 0.0 }
0x2479   :  { %6716 = vadd.xlane.f32.xlu0 %v6715_v56 }
0x247b   :  { %v11194_v15 = vpop.eup %11193 }
0x247c   :  { %v6712_v19 = vsel %vm309_vm3, %v11194_v15, 0.0 }
0x247d   :  { %6713 = vadd.xlane.f32.xlu0 %v6712_v19 }
0x2493   :  { %6798 = vrot.lane.b32.xlu0 %v12936_v41, %s14462_s28 }
0x2497   :  { %6884 = vrot.lane.b32.xlu0 %v12919_v20, %s14464_s30 }
0x2502   :  { %v6717_v21 = vpop.xlane.xlu0 %6716 }
0x2503   :  { %11195 = vrcp.f32 %v6717_v21 }
0x2506   :  { %v6714_v58 = vpop.xlane.xlu0 %6713 }
0x2507   :  { %11197 = vrcp.f32 %v6714_v58 }
0x250a   :  { %v6799_v25 = vpop.permute.xlu0 %6798 }
0x250b   :  { %10991 = vmatpush3.msra.mxu0 %v6799_v25 }
0x250c   :  { %11000 = vmatprep.subr.mxu0 %v11238_v11 }
0x250e   :  { %v6885_v33 = vpop.permute.xlu0 %6884 }
0x2510   :  { %v11196_v26 = vpop.eup %11195 }
0x2511   :  { %v6721_v28 = vmul.f32 %v11196_v26, %v11192_v12 }
0x2513   :  { %10993 = vmatmul.mubr.msk.f32.vlgmr.msra.gmra.mxu0 %vm309_vm3, %v6721_v28 }
0x2514   :  { %v11198_v29 = vpop.eup %11197  ;;  %11001 = vmatpush3.xpose.msk.msra.mxu0 %vm153_vm2, %v6965_v27  ;;  %11002 = vmatprep.mubr.msk.f32.mxu0 %vm11239_vm1, %v11238_v11 }
0x2515   :  { %v6720_v10 = vmul.f32 %v11198_v29, %v11194_v15  ;;  %11010 = vmatprep.subr.mxu0 %v11238_v11 }
0x2517   :  { %10988 = vmatmul.mubr.msk.f32.vlgmr.msra.gmra.mxu1 %vm309_vm3, %v6720_v10  ;;  %11003 = vmatmul.mubr.msk.f32.vlgmr.msra.gmra.mxu0 %vm153_vm2, %v6963_v30 }
0x2518   :  { %10996 = vmatpush3.xpose.msk.msra.mxu1 %vm153_vm2, %v6887_v43  ;;  %10997 = vmatprep.mubr.msk.f32.mxu1 %vm11239_vm1, %v11238_v11 }
0x2519   :  { %11005 = vmatprep.subr.mxu1 %v11238_v11  ;;  %11012 = vmatprep.mubr.msk.f32.mxu0 %vm11239_vm1, %v11238_v11 }
0x251b   :  { %10998 = vmatmul.mubr.msk.f32.vlgmr.msra.gmra.mxu1 %vm153_vm2, %v6885_v33 }
0x251c   :  { %11007 = vmatprep.mubr.msk.f32.mxu1 %vm11239_vm1, %v11238_v11 }
0x25d3   :  { %v13158_v34 = vpop.f32.mrf.mxu0 }
0x25d5   :  { %v10994_v37 = vpop.f32.mrf.mxu0 }
0x25d7   :  { %v13160_v36 = vpop.f32.mrf.mxu1  ;;  %v7036_v4 = vpop.f32.mrf.mxu0 }
0x25d8   :  { %v7041_v38 = vmul.f32 0.5, %v7036_v4 }
0x25d9   :  { %v10989_v42 = vpop.f32.mrf.mxu1  ;;  %v11004_v40 = vpop.f32.mrf.mxu0 }
0x25da   :  { %v7045_v46 = vsel %vm309_vm3, %v7041_v38, -inf }
0x25db   :  { %v6958_v54 = vpop.f32.mrf.mxu1  ;;  %7046 = vmax.xlane.f32.xlu1 %v7045_v46 }
0x25dc   :  { %v7040_v59 = vmul.f32 0.5, %v6958_v54 }
0x25dd   :  { %v10999_v14 = vpop.f32.mrf.mxu1 }
0x25de   :  { %v7042_v13 = vsel %vm309_vm3, %v7040_v59, -inf }
0x25df   :  { %7043 = vmax.xlane.f32.xlu0 %v7042_v13 }
0x25ec   :  { %7064 = vrot.lane.b32.xlu1 %v12934_v39, %s14465_s10 }
0x25f0   :  { %7228 = vrot.lane.b32.xlu1 %v12907_v53, %s14466_s11 }
0x25f4   :  { %7306 = vrot.lane.b32.xlu1 %v12905_v51, %s14466_s11 }
0x25f8   :  { %7304 = vrot.lane.b32.xlu1 %v12915_v55, %s14467_s12 }
0x2664   :  { %v7047_v16 = vpop.xlane.xlu1 %7046 }
0x2665   :  { %v7049_v35 = vsub.f32 %v7041_v38, %v7047_v16 }
0x2667   :  { %v7052_v61 = vmul.f32 1.442695, %v7049_v35 }
0x2668   :  { %v7044_v6 = vpop.xlane.xlu0 %7043  ;;  %v7065_v60 = vpop.permute.xlu1 %7064 }
0x2669   :  { %11199 = vpow2.f32 %v7052_v61  ;;  %v7048_v62 = vsub.f32 %v7040_v59, %v7044_v6  ;;  %11006 = vmatpush3.msra.mxu1 %v7065_v60 }
0x266a   :  { %11015 = vmatprep.subr.mxu1 %v11238_v11 }
0x266b   :  { %v7050_v0 = vmul.f32 1.442695, %v7048_v62 }
0x266c   :  { %v7229_v44 = vpop.permute.xlu1 %7228 }
0x266d   :  { %11201 = vpow2.f32 %v7050_v0 }
0x2670   :  { %v7307_v56 = vpop.permute.xlu1 %7306 }
0x2674   :  { %v7305_v21 = vpop.permute.xlu1 %7304 }
0x2676   :  { %v11200_v1 = vpop.eup %11199 }
0x2677   :  { %v7057_v53 = vsel %vm309_vm3, %v11200_v1, 0.0 }
0x2678   :  { %7058 = vadd.xlane.f32.xlu0 %v7057_v53 }
0x267a   :  { %v11202_v51 = vpop.eup %11201 }
0x267b   :  { %v7054_v18 = vsel %vm309_vm3, %v11202_v51, 0.0 }
0x267c   :  { %7055 = vadd.xlane.f32.xlu0 %v7054_v18 }
0x2692   :  { %7140 = vrot.lane.b32.xlu0 %v12936_v41, %s14465_s10 }
0x2696   :  { %7226 = vrot.lane.b32.xlu0 %v12919_v20, %s14467_s12 }
0x2701   :  { %v7059_v55 = vpop.xlane.xlu0 %7058 }
0x2702   :  { %11203 = vrcp.f32 %v7059_v55  ;;  %v9576_v55 = vld [vmem:[%s14412_s2 + $0x38] sm:$0xff] }
0x2705   :  { %v7056_v23 = vpop.xlane.xlu0 %7055 }
0x2706   :  { %11205 = vrcp.f32 %v7056_v23  ;;  %v9575_v23 = vld [vmem:[%s14412_s2 + $0x30] sm:$0xff] }
0x2709   :  { %v7141_v8 = vpop.permute.xlu0 %7140 }
0x270a   :  { %11011 = vmatpush3.msra.mxu0 %v7141_v8  ;;  %v9573_v8 = vld [vmem:[%s14412_s2 + $0x20] sm:$0xff] }
0x270b   :  { %11020 = vmatprep.subr.mxu0 %v11238_v11 }
0x270d   :  { %v7227_v58 = vpop.permute.xlu0 %7226 }
0x270f   :  { %v11204_v12 = vpop.eup %11203 }
0x2710   :  { %v7063_v15 = vmul.f32 %v11204_v12, %v11200_v1 }
0x2712   :  { %11013 = vmatmul.mubr.msk.f32.vlgmr.msra.gmra.mxu0 %vm309_vm3, %v7063_v15 }
0x2713   :  { %v11206_v19 = vpop.eup %11205  ;;  %11021 = vmatpush3.xpose.msk.msra.mxu0 %vm153_vm2, %v7307_v56  ;;  %11022 = vmatprep.mubr.msk.f32.mxu0 %vm11239_vm1, %v11238_v11 }
0x2714   :  { %v7062_v20 = vmul.f32 %v11206_v19, %v11202_v51  ;;  %11030 = vmatprep.subr.mxu0 %v11238_v11 }
0x2716   :  { %11008 = vmatmul.mubr.msk.f32.vlgmr.msra.gmra.mxu1 %vm309_vm3, %v7062_v20  ;;  %11023 = vmatmul.mubr.msk.f32.vlgmr.msra.gmra.mxu0 %vm153_vm2, %v7305_v21 }
0x2717   :  { %11016 = vmatpush3.xpose.msk.msra.mxu1 %vm153_vm2, %v7229_v44  ;;  %11017 = vmatprep.mubr.msk.f32.mxu1 %vm11239_vm1, %v11238_v11  ;;  %v9574_v44 = vld [vmem:[%s14412_s2 + $0x28] sm:$0xff] }
0x2718   :  { %11025 = vmatprep.subr.mxu1 %v11238_v11  ;;  %11032 = vmatprep.mubr.msk.f32.mxu0 %vm11239_vm1, %v11238_v11 }
0x271a   :  { %11018 = vmatmul.mubr.msk.f32.vlgmr.msra.gmra.mxu1 %vm153_vm2, %v7227_v58 }
0x271b   :  { %11027 = vmatprep.mubr.msk.f32.mxu1 %vm11239_vm1, %v11238_v11 }
0x27d2   :  { %v7212_v43 = vpop.f32.mrf.mxu0 }
0x27d4   :  { %v11014_v25 = vpop.f32.mrf.mxu0 }
0x27d5   :  { %v13263_v25 = vld [vmem:[%s14411_s6 + $0x10] sm:$0xff] }
0x27d6   :  { %v7136_v26 = vpop.f32.mrf.mxu1  ;;  %v7378_v27 = vpop.f32.mrf.mxu0 }
0x27d7   :  { %v7383_v28 = vmul.f32 0.5, %v7378_v27 }
0x27d8   :  { %v11009_v29 = vpop.f32.mrf.mxu1  ;;  %v11024_v10 = vpop.f32.mrf.mxu0 }
0x27d9   :  { %v7387_v30 = vsel %vm309_vm3, %v7383_v28, -inf }
0x27da   :  { %v7300_v33 = vpop.f32.mrf.mxu1  ;;  %7388 = vmax.xlane.f32.xlu1 %v7387_v30 }
0x27db   :  { %v7382_v37 = vmul.f32 0.5, %v7300_v33 }
0x27dc   :  { %v11019_v4 = vpop.f32.mrf.mxu1 }
0x27dd   :  { %v7384_v38 = vsel %vm309_vm3, %v7382_v37, -inf }
0x27de   :  { %7385 = vmax.xlane.f32.xlu0 %v7384_v38 }
0x27eb   :  { %7406 = vrot.lane.b32.xlu1 %v12934_v39, %s14468_s13 }
0x27ef   :  { %5508 = vrot.lane.b32.xlu1 %v13008_v63, %s14469_s21 }
0x27f3   :  { %5510 = vrot.lane.b32.xlu1 %v13006_v52, %s14469_s21 }
0x27f7   :  { %5852 = vrot.lane.b32.xlu1 %v13044_v5, %s14470_s14 }
0x27fb   :  { %6194 = vrot.lane.b32.xlu1 %v13082_v50, %s14471_s16 }
0x27ff   :  { %6536 = vrot.lane.b32.xlu1 %v13120_v45, %s14472_s0 }
0x2803   :  { %6878 = vrot.lane.b32.xlu1 %v13158_v34, %s14473_s22 }
0x2807   :  { %7220 = vrot.lane.b32.xlu1 %v7212_v43, %s14474_s15 }
0x2863   :  { %v7389_v39 = vpop.xlane.xlu1 %7388 }
0x2864   :  { %v7391_v42 = vsub.f32 %v7383_v28, %v7389_v39 }
0x2866   :  { %v7394_v63 = vmul.f32 1.442695, %v7391_v42 }
0x2867   :  { %v7386_v40 = vpop.xlane.xlu0 %7385  ;;  %v7407_v46 = vpop.permute.xlu1 %7406 }
0x2868   :  { %11207 = vpow2.f32 %v7394_v63  ;;  %v7390_v52 = vsub.f32 %v7382_v37, %v7386_v40  ;;  %11026 = vmatpush3.msra.mxu1 %v7407_v46 }
0x2869   :  { %11035 = vmatprep.subr.mxu1 %v9576_v55 }
0x286a   :  { %v7392_v5 = vmul.f32 1.442695, %v7390_v52 }
0x286b   :  { %v5509_v54 = vpop.permute.xlu1 %5508 }
0x286c   :  { %11209 = vpow2.f32 %v7392_v5  ;;  %5514 = vst.msk [vmem:[#allocation2] sm:$0xff] %vm828_vm4, %v5509_v54 }
0x286f   :  { %v5511_v50 = vpop.permute.xlu1 %5510 }
0x2870   :  { %5515 = vst.msk [vmem:[#allocation2 + $0x8] sm:$0xff] %vm828_vm4, %v5511_v50  ;;  %v9630_v50 = vld [vmem:[%s14413_s3 + $0x398] sm:$0xff] }
0x2873   :  { %v5853_v45 = vpop.permute.xlu1 %5852 }
0x2874   :  { %5857 = vst.msk [vmem:[#allocation2 + $0x8] sm:$0xff] %vm1171_vm5, %v5853_v45  ;;  %v9627_v45 = vld [vmem:[%s14413_s3 + $0x380] sm:$0xff] }
0x2875   :  { %v11208_v34 = vpop.eup %11207 }
0x2876   :  { %v7399_v59 = vsel %vm309_vm3, %v11208_v34, 0.0 }
0x2877   :  { %7400 = vadd.xlane.f32.xlu0 %v7399_v59  ;;  %v6195_v14 = vpop.permute.xlu1 %6194  ;;  %v9612_v59 = vld [vmem:[%s14413_s3 + $0x308] sm:$0xff] }
0x2878   :  { %6199 = vst.msk [vmem:[#allocation2 + $0x8] sm:$0xff] %vm1514_vm6, %v6195_v14  ;;  %v9614_v14 = vld [vmem:[%s14413_s3 + $0x318] sm:$0xff] }
0x2879   :  { %v11210_v13 = vpop.eup %11209 }
0x287a   :  { %v7396_v16 = vsel %vm309_vm3, %v11210_v13, 0.0 }
0x287b   :  { %7397 = vadd.xlane.f32.xlu0 %v7396_v16  ;;  %v6537_v35 = vpop.permute.xlu1 %6536  ;;  %v9613_v16 = vld [vmem:[%s14413_s3 + $0x310] sm:$0xff] }
0x287c   :  { %6541 = vst.msk [vmem:[#allocation2 + $0x8] sm:$0xff] %vm1857_vm7, %v6537_v35  ;;  %v9596_v35 = vld [vmem:[%s14413_s3 + $0x288] sm:$0xff] }
0x287f   :  { %v6879_v61 = vpop.permute.xlu1 %6878 }
0x2880   :  { %6883 = vst.msk [vmem:[#allocation2 + $0x8] sm:$0xff] %vm2200_vm8, %v6879_v61  ;;  %v9598_v61 = vld [vmem:[%s14413_s3 + $0x298] sm:$0xff] }
0x2883   :  { %v7221_v6 = vpop.permute.xlu1 %7220 }
0x2884   :  { %7225 = vst.msk [vmem:[#allocation2 + $0x8] sm:$0xff] %vm2543_vm9, %v7221_v6  ;;  %v9595_v6 = vld [vmem:[%s14413_s3 + $0x280] sm:$0xff] }
0x2891   :  { %7482 = vrot.lane.b32.xlu0 %v12936_v41, %s14468_s13 }
0x2895   :  { %5850 = vrot.lane.b32.xlu0 %v13046_v9, %s14470_s14 }
0x2899   :  { %6192 = vrot.lane.b32.xlu0 %v13084_v2, %s14471_s16 }
0x289d   :  { %6534 = vrot.lane.b32.xlu0 %v13122_v49, %s14472_s0 }
0x28a1   :  { %6876 = vrot.lane.b32.xlu0 %v13160_v36, %s14473_s22 }
0x28a5   :  { %7218 = vrot.lane.b32.xlu0 %v7136_v26, %s14474_s15  ;;  %v7578_v26 = vrot.slane %v13263_v25, %v11721_v57 }
0x2900   :  { %v7401_v60 = vpop.xlane.xlu0 %7400 }
0x2901   :  { %11211 = vrcp.f32 %v7401_v60  ;;  %v9597_v60 = vld [vmem:[%s14413_s3 + $0x290] sm:$0xff] }
0x2904   :  { %v7398_v62 = vpop.xlane.xlu0 %7397 }
0x2905   :  { %11213 = vrcp.f32 %v7398_v62  ;;  %v9580_v62 = vld [vmem:[%s14413_s3 + $0x208] sm:$0xff] }
0x2908   :  { %v7483_v0 = vpop.permute.xlu0 %7482 }
0x2909   :  { %11031 = vmatpush3.msra.mxu0 %v7483_v0  ;;  %v9582_v0 = vld [vmem:[%s14413_s3 + $0x218] sm:$0xff] }
0x290c   :  { %v5851_v41 = vpop.permute.xlu0 %5850 }
0x290d   :  { %5856 = vst.msk [vmem:[#allocation2] sm:$0xff] %vm1171_vm5, %v5851_v41  ;;  %v9579_v41 = vld [vmem:[%s14413_s3 + $0x200] sm:$0xff] }
0x290e   :  { %v11212_v9 = vpop.eup %11211 }
0x290f   :  { %v7405_v1 = vmul.f32 %v11212_v9, %v11208_v34  ;;  %v9629_v34 = vld [vmem:[%s14413_s3 + $0x390] sm:$0xff] }
0x2910   :  { %v6193_v2 = vpop.permute.xlu0 %6192  ;;  %v9581_v9 = vld [vmem:[%s14413_s3 + $0x210] sm:$0xff] }
0x2911   :  { %6198 = vst.msk [vmem:[#allocation2] sm:$0xff] %vm1514_vm6, %v6193_v2  ;;  %11033 = vmatmul.mubr.msk.f32.vlgmr.msra.gmra.mxu0 %vm309_vm3, %v7405_v1  ;;  %v9632_v1 = vld [vmem:[%s14413_s3 + $0x3a8] sm:$0xff]  ;;  %v9634_v2 = vld [vmem:[%s14413_s3 + $0x3b8] sm:$0xff] }
0x2912   :  { %v11214_v49 = vpop.eup %11213  ;;  %7920 = vmatprep.mubr.f32.mxu0 %v11238_v11 }
0x2913   :  { %v7404_v36 = vmul.f32 %v11214_v49, %v11210_v13  ;;  %v9611_v13 = vld [vmem:[%s14413_s3 + $0x300] sm:$0xff] }
0x2914   :  { %v6535_v53 = vpop.permute.xlu0 %6534 }
0x2915   :  { %6540 = vst.msk [vmem:[#allocation2] sm:$0xff] %vm1857_vm7, %v6535_v53  ;;  %11028 = vmatmul.mubr.msk.f32.vlgmr.msra.gmra.mxu1 %vm309_vm3, %v7404_v36 }
0x2916   :  { %11036 = vmatpush3.msra.mxu1 %v9576_v55 }
0x2917   :  { %11037 = vmatprep.subr.mxu1 %v9575_v23 }
0x2918   :  { %v6877_v51 = vpop.permute.xlu0 %6876  ;;  %11038 = vmatpush3.msra.mxu1 %v9575_v23  ;;  %v7691_v23 = vrot.slane %v13263_v25, %v11795_v47 }
0x2919   :  { %6882 = vst.msk [vmem:[#allocation2] sm:$0xff] %vm2200_vm8, %v6877_v51  ;;  %11039 = vmatprep.subr.mxu1 %v9574_v44 }
0x291a   :  { %11040 = vmatpush3.msra.mxu1 %v9574_v44 }
0x291b   :  { %11041 = vmatprep.subr.mxu1 %v9573_v8 }
0x291c   :  { %v7219_v18 = vpop.permute.xlu0 %7218  ;;  %11042 = vmatpush3.msra.mxu1 %v9573_v8  ;;  %v7697_v8 = vrot.slane %v13263_v25, %v11798_v48  ;;  %v9618_v25 = vld [vmem:[%s14413_s3 + $0x338] sm:$0xff] }
0x291d   :  { %7224 = vst.msk [vmem:[#allocation2] sm:$0xff] %vm2543_vm9, %v7219_v18  ;;  %7957 = vmatprep.subr.mxu1 %v9630_v50  ;;  %v9604_v50 = vld [vmem:[%s14413_s3 + $0x2c8] sm:$0xff] }
0x29d1   :  { %v7554_v12 = vpop.f32.mrf.mxu0 }
0x29d2   :  { %7562 = vrot.lane.b32.xlu1 %v7554_v12, %s14475_s26 }
0x29d3   :  { %v11034_v56 = vpop.f32.mrf.mxu0 }
0x29d5   :  { %v7478_v15 = vpop.f32.mrf.mxu1 }
0x29d6   :  { %7560 = vrot.lane.b32.xlu0 %v7478_v15, %s14475_s26 }
0x29d7   :  { %v11029_v19 = vpop.f32.mrf.mxu1 }
0x2a44   :  { %v7563_v20 = vpop.permute.xlu1 %7562 }
0x2a45   :  { %7567 = vst.msk [vmem:[#allocation2 + $0x8] sm:$0xff] %vm2886_vm10, %v7563_v20 }
0x2a48   :  { %v7561_v21 = vpop.permute.xlu0 %7560 }
0x2a49   :  { %7566 = vst.msk [vmem:[#allocation2] sm:$0xff] %vm2886_vm10, %v7561_v21  ;;  %v9631_v21 = vld [vmem:[%s14413_s3 + $0x3a0] sm:$0xff] }
0x2a4c   :  { %v7569_v43 = vld [vmem:[#allocation2 + $0x8] sm:$0xff] }
0x2a50   :  { %v7568_v58 = vld [vmem:[#allocation2] sm:$0xff] }
0x2a51   :  { %11043 = vmatprep.mubr.msk.f32.mxu1 %vm42_vm0, %v7568_v58  ;;  %v9633_v58 = vld [vmem:[%s14413_s3 + $0x3b0] sm:$0xff] }
0x2a52   :  { %11044 = vmatmul.mubr.msk.f32.vlgmr.msra.gmra.mxu1 %vm42_vm0, %v7569_v43  ;;  %v9616_v43 = vld [vmem:[%s14413_s3 + $0x328] sm:$0xff] }
0x2a53   :  { %7997 = vmatprep.mubr.f32.mxu1 %v11238_v11  ;;  %7958 = vmatpush1.msra.mxu1 %v9629_v34  ;;  %v9603_v34 = vld [vmem:[%s14413_s3 + $0x2c0] sm:$0xff] }
0x2a54   :  { %7959 = vmatprep.subr.mxu1 %v9614_v14  ;;  %v9588_v14 = vld [vmem:[%s14413_s3 + $0x248] sm:$0xff] }
0x2a55   :  { %7960 = vmatpush1.msra.mxu1 %v9613_v16  ;;  %v9587_v16 = vld [vmem:[%s14413_s3 + $0x240] sm:$0xff] }
0x2a56   :  { %7961 = vmatprep.subr.mxu1 %v9598_v61  ;;  %v9640_v61 = vld [vmem:[%s14413_s3 + $0x3e8] sm:$0xff] }
0x2a57   :  { %7962 = vmatpush1.msra.mxu1 %v9597_v60  ;;  %v9639_v60 = vld [vmem:[%s14413_s3 + $0x3e0] sm:$0xff] }
0x2a58   :  { %7963 = vmatprep.subr.mxu1 %v9582_v0  ;;  %v9624_v0 = vld [vmem:[%s14413_s3 + $0x368] sm:$0xff] }
0x2a59   :  { %7964 = vmatpush1.msra.mxu1 %v9581_v9  ;;  %v9623_v9 = vld [vmem:[%s14413_s3 + $0x360] sm:$0xff] }
0x2a5a   :  { %8111 = vmatprep.subr.mxu1 %v9634_v2  ;;  %v9608_v2 = vld [vmem:[%s14413_s3 + $0x2e8] sm:$0xff] }
0x2b12   :  { %v11045_v27 = vpop.f32.mrf.mxu1 }
0x2b13   :  { %v7657_v28 = vadd.f32 %v11045_v27, %v7578_v26  ;;  %v9615_v27 = vld [vmem:[%s14413_s3 + $0x320] sm:$0xff] }
0x2b14   :  { %v7651_v29 = vpop.f32.mrf.mxu1 }
0x2b15   :  { %v7661_v10 = vadd.f32 %v7657_v28, %v12899_v22  ;;  %v7652_v30 = vadd.f32 %v7651_v29, %v7578_v26  ;;  %v9617_v28 = vld [vmem:[%s14413_s3 + $0x330] sm:$0xff] }
0x2b17   :  { %v7660_v33 = vadd.f32 %v7652_v30, %v12895_v3  ;;  %v7665_v37 = vsel %vm42_vm0, %v7661_v10, 0.0  ;;  %v9628_v3 = vld [vmem:[%s14413_s3 + $0x388] sm:$0xff]  ;;  %v9602_v30 = vld [vmem:[%s14413_s3 + $0x2b8] sm:$0xff] }
0x2b18   :  { %7666 = vadd.xlane.f32.xlu1 %v7665_v37  ;;  %7880 = vmatprep.subr.mxu0 %v9628_v3  ;;  %v9601_v37 = vld [vmem:[%s14413_s3 + $0x2b0] sm:$0xff] }
0x2b19   :  { %v7662_v4 = vsel %vm42_vm0, %v7660_v33, 0.0  ;;  %7881 = vmatpush1.msra.mxu0 %v9627_v45  ;;  %v9621_v3 = vld [vmem:[%s14413_s3 + $0x350] sm:$0xff]  ;;  %v9606_v45 = vld [vmem:[%s14413_s3 + $0x2d8] sm:$0xff] }
0x2b1a   :  { %7663 = vadd.xlane.f32.xlu0 %v7662_v4  ;;  %7882 = vmatprep.subr.mxu0 %v9612_v59  ;;  %v9584_v4 = vld [vmem:[%s14413_s3 + $0x228] sm:$0xff]  ;;  %v9605_v59 = vld [vmem:[%s14413_s3 + $0x2d0] sm:$0xff] }
0x2b1b   :  { %7883 = vmatpush1.msra.mxu0 %v9611_v13  ;;  %v9590_v13 = vld [vmem:[%s14413_s3 + $0x258] sm:$0xff] }
0x2b1c   :  { %7884 = vmatprep.subr.mxu0 %v9596_v35  ;;  %v9589_v35 = vld [vmem:[%s14413_s3 + $0x250] sm:$0xff] }
0x2b1d   :  { %7885 = vmatpush1.msra.mxu0 %v9595_v6  ;;  %v9642_v6 = vld [vmem:[%s14413_s3 + $0x3f8] sm:$0xff] }
0x2b1e   :  { %7886 = vmatprep.subr.mxu0 %v9580_v62  ;;  %v9641_v62 = vld [vmem:[%s14413_s3 + $0x3f0] sm:$0xff] }
0x2b1f   :  { %7887 = vmatpush1.msra.mxu0 %v9579_v41  ;;  %v9626_v41 = vld [vmem:[%s14413_s3 + $0x378] sm:$0xff] }
0x2b20   :  { %8034 = vmatprep.subr.mxu0 %v9632_v1  ;;  %v9625_v1 = vld [vmem:[%s14413_s3 + $0x370] sm:$0xff] }
0x2ba1   :  { %v7667_v38 = vpop.xlane.xlu1 %7666 }
0x2ba2   :  { %v7669_v39 = vmul.f32 0.03125, %v7667_v38  ;;  %v9586_v38 = vld [vmem:[%s14413_s3 + $0x238] sm:$0xff] }
0x2ba3   :  { %v7664_v42 = vpop.xlane.xlu0 %7663 }
0x2ba4   :  { %v7668_v63 = vmul.f32 0.03125, %v7664_v42  ;;  %v7671_v40 = vsub.f32 %v7661_v10, %v7669_v39  ;;  %v9600_v10 = vld [vmem:[%s14413_s3 + $0x2a8] sm:$0xff]  ;;  %v9583_v39 = vld [vmem:[%s14413_s3 + $0x220] sm:$0xff]  ;;  %v9585_v42 = vld [vmem:[%s14413_s3 + $0x230] sm:$0xff] }
0x2ba6   :  { %v7670_v46 = vsub.f32 %v7660_v33, %v7668_v63  ;;  %v7673_v54 = vmul.f32 %v7671_v40, %v7671_v40  ;;  %v9599_v33 = vld [vmem:[%s14413_s3 + $0x2a0] sm:$0xff]  ;;  %v9636_v63 = vld [vmem:[%s14413_s3 + $0x3c8] sm:$0xff] }
0x2ba8   :  { %v7672_v52 = vmul.f32 %v7670_v46, %v7670_v46  ;;  %v7677_v22 = vsel %vm42_vm0, %v7673_v54, 0.0  ;;  %v9622_v54 = vld [vmem:[%s14413_s3 + $0x358] sm:$0xff] }
0x2baa   :  { %v7674_v5 = vsel %vm42_vm0, %v7672_v52, 0.0  ;;  %v9637_v52 = vld [vmem:[%s14413_s3 + $0x3d0] sm:$0xff] }
0x2bab   :  { %7675 = vadd.xlane.f32.xlu0 %v7674_v5  ;;  %v9620_v5 = vld [vmem:[%s14413_s3 + $0x348] sm:$0xff] }
0x2baf   :  { %7678 = vadd.xlane.f32.xlu0 %v7677_v22  ;;  %v9619_v22 = vld [vmem:[%s14413_s3 + $0x340] sm:$0xff] }
0x2c34   :  { %v7676_v49 = vpop.xlane.xlu0 %7675 }
0x2c35   :  { %v7680_v36 = vmul.f32 0.03125, %v7676_v49  ;;  %v9610_v49 = vld [vmem:[%s14413_s3 + $0x2f8] sm:$0xff] }
0x2c37   :  { %v7682_v53 = vadd.f32 1e-05, %v7680_v36  ;;  %v9607_v36 = vld [vmem:[%s14413_s3 + $0x2e0] sm:$0xff] }
0x2c38   :  { %v7679_v51 = vpop.xlane.xlu0 %7678 }
0x2c39   :  { %11215 = vrsqrt.f32 %v7682_v53  ;;  %v7681_v18 = vmul.f32 0.03125, %v7679_v51  ;;  %v9609_v53 = vld [vmem:[%s14413_s3 + $0x2f0] sm:$0xff]  ;;  %v9592_v51 = vld [vmem:[%s14413_s3 + $0x268] sm:$0xff] }
0x2c3b   :  { %v7683_v55 = vadd.f32 1e-05, %v7681_v18  ;;  %v9594_v18 = vld [vmem:[%s14413_s3 + $0x278] sm:$0xff] }
0x2c3d   :  { %11217 = vrsqrt.f32 %v7683_v55  ;;  %v9591_v55 = vld [vmem:[%s14413_s3 + $0x260] sm:$0xff] }
0x2c46   :  { %v11216_v44 = vpop.eup %11215 }
0x2c47   :  { %v7686_v12 = vmul.f32 %v11216_v44, %v7670_v46  ;;  %v9635_v46 = vld [vmem:[%s14413_s3 + $0x3c0] sm:$0xff]  ;;  %v9692_v44 = vld [vmem:[%s14414_s5 + $0x8f8] sm:$0xff] }
0x2c49   :  { %v7692_v56 = vmul.f32 %v7691_v23, %v7686_v12  ;;  %v9676_v12 = vld [vmem:[%s14414_s5 + $0x878] sm:$0xff] }
0x2c4a   :  { %v11218_v15 = vpop.eup %11217 }
0x2c4b   :  { %v13331_v19 = vadd.f32 %v7697_v8, %v7692_v56  ;;  %v7687_v20 = vmul.f32 %v11218_v15, %v7671_v40  ;;  %v9638_v40 = vld [vmem:[%s14413_s3 + $0x3d8] sm:$0xff]  ;;  %v9691_v15 = vld [vmem:[%s14414_s5 + $0x8f0] sm:$0xff] }
0x2c4c   :  { %v9708_v56 = vld [vmem:[%s14414_s5 + $0x978] sm:$0xff] }
0x2c4d   :  { %v7693_v26 = vmul.f32 %v7691_v23, %v7687_v20  ;;  %9645 = vmatmul.mubr.msk.f32.vlgmr.msra.gmra.mxu0 %vm42_vm0, %v13331_v19  ;;  %9647 = vmatmul.mubr.msk.f32.vlgmr.msra.gmra.mxu1 %vm42_vm0, %v13331_v19  ;;  %v9593_v23 = vld [vmem:[%s14413_s3 + $0x270] sm:$0xff] }
0x2c4e   :  { %8035 = vmatpush1.msra.mxu0 %v9631_v21  ;;  %8112 = vmatpush1.msra.mxu1 %v9633_v58  ;;  %v9723_v20 = vld [vmem:[%s14414_s5 + $0x9f0] sm:$0xff]  ;;  %v9690_v58 = vld [vmem:[%s14414_s5 + $0x8e8] sm:$0xff] }
0x2c4f   :  { %v13355_v29 = vadd.f32 %v7697_v8, %v7693_v26  ;;  %8036 = vmatprep.subr.mxu0 %v9616_v43  ;;  %8113 = vmatprep.subr.mxu1 %v9618_v25  ;;  %v9724_v8 = vld [vmem:[%s14414_s5 + $0x9f8] sm:$0xff]  ;;  %v9675_v21 = vld [vmem:[%s14414_s5 + $0x870] sm:$0xff]  ;;  %v9722_v43 = vld [vmem:[%s14414_s5 + $0x9e8] sm:$0xff] }
0x2c50   :  { %7926 = vmatprep.mubr.f32.mxu0 %v11238_v11  ;;  %8003 = vmatprep.mubr.f32.mxu1 %v11238_v11  ;;  %v9674_v25 = vld [vmem:[%s14414_s5 + $0x868] sm:$0xff] }
0x2c51   :  { %8037 = vmatpush1.msra.mxu0 %v9615_v27  ;;  %8114 = vmatpush1.msra.mxu1 %v9617_v28  ;;  %v9706_v26 = vld [vmem:[%s14414_s5 + $0x968] sm:$0xff]  ;;  %v9689_v27 = vld [vmem:[%s14414_s5 + $0x8e0] sm:$0xff] }
0x2c52   :  { %9646 = vmatmul.mubr.msk.f32.gmra.mxu0 %vm42_vm0, %v13355_v29  ;;  %9648 = vmatmul.mubr.msk.f32.gmra.mxu1 %vm42_vm0, %v13355_v29  ;;  %v9721_v28 = vld [vmem:[%s14414_s5 + $0x9e0] sm:$0xff] }
0x2c53   :  { %8038 = vmatprep.subr.mxu0 %v9600_v10  ;;  %8115 = vmatprep.subr.mxu1 %v9602_v30  ;;  %v9673_v10 = vld [vmem:[%s14414_s5 + $0x860] sm:$0xff] }
0x2c54   :  { %8039 = vmatpush1.msra.mxu0 %v9599_v33  ;;  %8116 = vmatpush1.msra.mxu1 %v9601_v37  ;;  %v9705_v30 = vld [vmem:[%s14414_s5 + $0x960] sm:$0xff]  ;;  %v9688_v33 = vld [vmem:[%s14414_s5 + $0x8d8] sm:$0xff] }
0x2c55   :  { %8040 = vmatprep.subr.mxu0 %v9584_v4  ;;  %8117 = vmatprep.subr.mxu1 %v9586_v38  ;;  %v9720_v37 = vld [vmem:[%s14414_s5 + $0x9d8] sm:$0xff] }
0x2c56   :  { %8041 = vmatpush1.msra.mxu0 %v9583_v39  ;;  %8074 = vmatprep.mubr.f32.mxu0 %v11238_v11  ;;  %v9672_v4 = vld [vmem:[%s14414_s5 + $0x858] sm:$0xff]  ;;  %v9687_v39 = vld [vmem:[%s14414_s5 + $0x8d0] sm:$0xff] }
0x2c57   :  { %8118 = vmatpush1.msra.mxu1 %v9585_v42  ;;  %8151 = vmatprep.mubr.f32.mxu1 %v11238_v11  ;;  %v9704_v38 = vld [vmem:[%s14414_s5 + $0x958] sm:$0xff]  ;;  %v9719_v42 = vld [vmem:[%s14414_s5 + $0x9d0] sm:$0xff] }
0x2c58   :  { %9649 = vmatmul.mubr.msk.f32.vlgmr.msra.gmra.mxu0 %vm42_vm0, %v13331_v19  ;;  %9651 = vmatmul.mubr.msk.f32.vlgmr.msra.gmra.mxu1 %vm42_vm0, %v13331_v19 }
0x2c59   :  { %8188 = vmatprep.subr.mxu0 %v9636_v63  ;;  %8265 = vmatprep.subr.mxu1 %v9638_v40  ;;  %v9671_v63 = vld [vmem:[%s14414_s5 + $0x850] sm:$0xff] }
0x2c5a   :  { %8189 = vmatpush1.msra.mxu0 %v9635_v46  ;;  %8266 = vmatpush1.msra.mxu1 %v9637_v52  ;;  %v9703_v40 = vld [vmem:[%s14414_s5 + $0x950] sm:$0xff]  ;;  %v9686_v46 = vld [vmem:[%s14414_s5 + $0x8c8] sm:$0xff] }
0x2c5b   :  { %8190 = vmatprep.subr.mxu0 %v9620_v5  ;;  %8267 = vmatprep.subr.mxu1 %v9622_v54  ;;  %v9718_v52 = vld [vmem:[%s14414_s5 + $0x9c8] sm:$0xff] }
0x2c5c   :  { %8080 = vmatprep.mubr.f32.mxu0 %v11238_v11  ;;  %8157 = vmatprep.mubr.f32.mxu1 %v11238_v11  ;;  %v9670_v5 = vld [vmem:[%s14414_s5 + $0x848] sm:$0xff] }
0x2c5d   :  { %8191 = vmatpush1.msra.mxu0 %v9619_v22  ;;  %8268 = vmatpush1.msra.mxu1 %v9621_v3  ;;  %v9702_v54 = vld [vmem:[%s14414_s5 + $0x948] sm:$0xff]  ;;  %v9685_v22 = vld [vmem:[%s14414_s5 + $0x8c0] sm:$0xff] }
0x2c5e   :  { %9650 = vmatmul.mubr.msk.f32.gmra.mxu0 %vm42_vm0, %v13355_v29  ;;  %9652 = vmatmul.mubr.msk.f32.gmra.mxu1 %vm42_vm0, %v13355_v29  ;;  %v9717_v3 = vld [vmem:[%s14414_s5 + $0x9c0] sm:$0xff] }
0x2c5f   :  { %8192 = vmatprep.subr.mxu0 %v9604_v50  ;;  %8269 = vmatprep.subr.mxu1 %v9606_v45  ;;  %v9669_v50 = vld [vmem:[%s14414_s5 + $0x840] sm:$0xff] }
0x2c60   :  { %8193 = vmatpush1.msra.mxu0 %v9603_v34  ;;  %8270 = vmatpush1.msra.mxu1 %v9605_v59  ;;  %v9701_v45 = vld [vmem:[%s14414_s5 + $0x940] sm:$0xff]  ;;  %v9684_v34 = vld [vmem:[%s14414_s5 + $0x8b8] sm:$0xff] }
0x2c61   :  { %8194 = vmatprep.subr.mxu0 %v9588_v14  ;;  %8271 = vmatprep.subr.mxu1 %v9590_v13  ;;  %v9716_v59 = vld [vmem:[%s14414_s5 + $0x9b8] sm:$0xff] }
0x2c62   :  { %8195 = vmatpush1.msra.mxu0 %v9587_v16  ;;  %8228 = vmatprep.mubr.f32.mxu0 %v11238_v11  ;;  %v9668_v14 = vld [vmem:[%s14414_s5 + $0x838] sm:$0xff]  ;;  %v9683_v16 = vld [vmem:[%s14414_s5 + $0x8b0] sm:$0xff] }
0x2c63   :  { %8272 = vmatpush1.msra.mxu1 %v9589_v35  ;;  %8305 = vmatprep.mubr.f32.mxu1 %v11238_v11  ;;  %v9700_v13 = vld [vmem:[%s14414_s5 + $0x938] sm:$0xff]  ;;  %v9715_v35 = vld [vmem:[%s14414_s5 + $0x9b0] sm:$0xff] }
0x2c64   :  { %9653 = vmatmul.mubr.msk.f32.vlgmr.msra.gmra.mxu0 %vm42_vm0, %v13331_v19  ;;  %9655 = vmatmul.mubr.msk.f32.vlgmr.msra.gmra.mxu1 %vm42_vm0, %v13331_v19 }
0x2c65   :  { %8342 = vmatprep.subr.mxu0 %v9640_v61  ;;  %8419 = vmatprep.subr.mxu1 %v9642_v6  ;;  %v9667_v61 = vld [vmem:[%s14414_s5 + $0x830] sm:$0xff] }
0x2c66   :  { %8343 = vmatpush1.msra.mxu0 %v9639_v60  ;;  %8420 = vmatpush1.msra.mxu1 %v9641_v62  ;;  %v9699_v6 = vld [vmem:[%s14414_s5 + $0x930] sm:$0xff]  ;;  %v9682_v60 = vld [vmem:[%s14414_s5 + $0x8a8] sm:$0xff] }
0x2c67   :  { %8344 = vmatprep.subr.mxu0 %v9624_v0  ;;  %8421 = vmatprep.subr.mxu1 %v9626_v41  ;;  %v9714_v62 = vld [vmem:[%s14414_s5 + $0x9a8] sm:$0xff] }
0x2c68   :  { %8234 = vmatprep.mubr.f32.mxu0 %v11238_v11  ;;  %8311 = vmatprep.mubr.f32.mxu1 %v11238_v11  ;;  %v9666_v0 = vld [vmem:[%s14414_s5 + $0x828] sm:$0xff] }
0x2c69   :  { %8345 = vmatpush1.msra.mxu0 %v9623_v9  ;;  %8422 = vmatpush1.msra.mxu1 %v9625_v1  ;;  %v9698_v41 = vld [vmem:[%s14414_s5 + $0x928] sm:$0xff]  ;;  %v9681_v9 = vld [vmem:[%s14414_s5 + $0x8a0] sm:$0xff] }
0x2c6a   :  { %9654 = vmatmul.mubr.msk.f32.gmra.mxu0 %vm42_vm0, %v13355_v29  ;;  %9656 = vmatmul.mubr.msk.f32.gmra.mxu1 %vm42_vm0, %v13355_v29  ;;  %v9713_v1 = vld [vmem:[%s14414_s5 + $0x9a0] sm:$0xff] }
0x2c6b   :  { %8346 = vmatprep.subr.mxu0 %v9608_v2  ;;  %8423 = vmatprep.subr.mxu1 %v9610_v49  ;;  %v9665_v2 = vld [vmem:[%s14414_s5 + $0x820] sm:$0xff] }
0x2c6c   :  { %8347 = vmatpush1.msra.mxu0 %v9607_v36  ;;  %8424 = vmatpush1.msra.mxu1 %v9609_v53  ;;  %v9697_v49 = vld [vmem:[%s14414_s5 + $0x920] sm:$0xff]  ;;  %v9680_v36 = vld [vmem:[%s14414_s5 + $0x898] sm:$0xff] }
0x2c6d   :  { %8348 = vmatprep.subr.mxu0 %v9592_v51  ;;  %8425 = vmatprep.subr.mxu1 %v9594_v18  ;;  %v9712_v53 = vld [vmem:[%s14414_s5 + $0x998] sm:$0xff] }
0x2c6e   :  { %8349 = vmatpush1.msra.mxu0 %v9591_v55  ;;  %8382 = vmatprep.mubr.f32.mxu0 %v11238_v11  ;;  %v9664_v51 = vld [vmem:[%s14414_s5 + $0x818] sm:$0xff]  ;;  %v9679_v55 = vld [vmem:[%s14414_s5 + $0x890] sm:$0xff] }
0x2c6f   :  { %8426 = vmatpush1.msra.mxu1 %v9593_v23  ;;  %8459 = vmatprep.mubr.f32.mxu1 %v11238_v11  ;;  %v9696_v18 = vld [vmem:[%s14414_s5 + $0x918] sm:$0xff]  ;;  %v9711_v23 = vld [vmem:[%s14414_s5 + $0x990] sm:$0xff] }
0x2c70   :  { %9657 = vmatmul.mubr.msk.f32.vlgmr.msra.gmra.mxu0 %vm42_vm0, %v13331_v19  ;;  %9659 = vmatmul.mubr.msk.f32.vlgmr.msra.gmra.mxu1 %vm42_vm0, %v13331_v19 }
0x2c71   :  { %8388 = vmatprep.mubr.f32.mxu0 %v11238_v11  ;;  %8465 = vmatprep.mubr.f32.mxu1 %v11238_v11  ;;  %v9707_v11 = vld [vmem:[%s14414_s5 + $0x970] sm:$0xff] }
0x2c72   :  { %10378 = vmatprep.subr.mxu0 %v9692_v44  ;;  %10416 = vmatprep.subr.mxu1 %v9724_v8  ;;  %v9663_v44 = vld [vmem:[%s14414_s5 + $0x810] sm:$0xff] }
0x2c73   :  { %10379 = vmatpush3.msra.mxu0 %v9676_v12  ;;  %10417 = vmatpush3.msra.mxu1 %v9708_v56  ;;  %v9695_v8 = vld [vmem:[%s14414_s5 + $0x910] sm:$0xff]  ;;  %v9678_v12 = vld [vmem:[%s14414_s5 + $0x888] sm:$0xff] }
0x2c74   :  { %9658 = vmatmul.mubr.msk.f32.gmra.mxu0 %vm42_vm0, %v13355_v29  ;;  %9660 = vmatmul.mubr.msk.f32.gmra.mxu1 %vm42_vm0, %v13355_v29  ;;  %v9710_v56 = vld [vmem:[%s14414_s5 + $0x988] sm:$0xff] }
0x2c75   :  { %10380 = vmatprep.subr.mxu0 %v9691_v15  ;;  %10418 = vmatprep.subr.mxu1 %v9723_v20  ;;  %v9662_v15 = vld [vmem:[%s14414_s5 + $0x808] sm:$0xff] }
0x2c76   :  { %10381 = vmatpush3.msra.mxu0 %v9675_v21  ;;  %10419 = vmatpush3.msra.mxu1 %v9707_v11  ;;  %v9694_v20 = vld [vmem:[%s14414_s5 + $0x908] sm:$0xff]  ;;  %v9677_v21 = vld [vmem:[%s14414_s5 + $0x880] sm:$0xff] }
0x2c77   :  { %10382 = vmatprep.subr.mxu0 %v9690_v58  ;;  %10420 = vmatprep.subr.mxu1 %v9722_v43  ;;  %v9709_v11 = vld [vmem:[%s14414_s5 + $0x980] sm:$0xff] }
0x2c78   :  { %10383 = vmatpush3.msra.mxu0 %v9674_v25  ;;  %10421 = vmatpush3.msra.mxu1 %v9706_v26  ;;  %v9661_v58 = vld [vmem:[%s14414_s5 + $0x800] sm:$0xff]  ;;  %v9756_v25 = vld [vmem:[%s14414_s5 + $0xaf8] sm:$0xff] }
0x2c79   :  { %10384 = vmatprep.subr.mxu0 %v9689_v27  ;;  %10422 = vmatprep.subr.mxu1 %v9721_v28  ;;  %v9693_v43 = vld [vmem:[%s14414_s5 + $0x900] sm:$0xff]  ;;  %v9788_v26 = vld [vmem:[%s14414_s5 + $0xbf8] sm:$0xff]  ;;  %v13720_v27 = vld [vmem:[%s14415_s4 + $0x10] sm:$0xff] }
0x2c7a   :  { %10385 = vmatpush3.msra.mxu0 %v9673_v10  ;;  %10423 = vmatpush3.msra.mxu1 %v9705_v30  ;;  %v7773_v28 = vrot.slane %v13720_v27, %v11365_v17  ;;  %v7781_v10 = vrot.slane %v13720_v27, %v11387_v31  ;;  %v7777_v30 = vrot.slane %v13720_v27, %v11339_v7 }
0x2c7b   :  { %10386 = vmatprep.subr.mxu0 %v9688_v33  ;;  %10424 = vmatprep.subr.mxu1 %v9720_v37  ;;  %v7785_v33 = vrot.slane %v13720_v27, %v11721_v57 }
0x2c7c   :  { %10387 = vmatpush3.msra.mxu0 %v9672_v4  ;;  %10425 = vmatpush3.msra.mxu1 %v9704_v38 }
0x2c7d   :  { %10388 = vmatprep.subr.mxu0 %v9687_v39  ;;  %10426 = vmatprep.subr.mxu1 %v9719_v42 }
0x2c7e   :  { %10389 = vmatpush3.msra.mxu0 %v9671_v63  ;;  %10427 = vmatpush3.msra.mxu1 %v9703_v40 }
0x2c7f   :  { %10390 = vmatprep.subr.mxu0 %v9686_v46  ;;  %10428 = vmatprep.subr.mxu1 %v9718_v52 }
0x2c80   :  { %10391 = vmatpush3.msra.mxu0 %v9670_v5  ;;  %10429 = vmatpush3.msra.mxu1 %v9702_v54 }
0x2c81   :  { %10392 = vmatprep.subr.mxu0 %v9685_v22  ;;  %10430 = vmatprep.subr.mxu1 %v9717_v3 }
0x2c82   :  { %10393 = vmatpush3.msra.mxu0 %v9669_v50  ;;  %10431 = vmatpush3.msra.mxu1 %v9701_v45  ;;  %v9740_v45 = vld [vmem:[%s14414_s5 + $0xa78] sm:$0xff] }
0x2c83   :  { %10394 = vmatprep.subr.mxu0 %v9684_v34  ;;  %10432 = vmatprep.subr.mxu1 %v9716_v59  ;;  %v9772_v34 = vld [vmem:[%s14414_s5 + $0xb78] sm:$0xff] }
0x2c84   :  { %10395 = vmatpush3.msra.mxu0 %v9668_v14  ;;  %10433 = vmatpush3.msra.mxu1 %v9700_v13 }
0x2c85   :  { %10396 = vmatprep.subr.mxu0 %v9683_v16  ;;  %10434 = vmatprep.subr.mxu1 %v9715_v35  ;;  %v9755_v16 = vld [vmem:[%s14414_s5 + $0xaf0] sm:$0xff] }
0x2c86   :  { %10397 = vmatpush3.msra.mxu0 %v9667_v61  ;;  %10435 = vmatpush3.msra.mxu1 %v9699_v6  ;;  %v9787_v35 = vld [vmem:[%s14414_s5 + $0xbf0] sm:$0xff] }
0x2c87   :  { %10398 = vmatprep.subr.mxu0 %v9682_v60  ;;  %10436 = vmatprep.subr.mxu1 %v9714_v62  ;;  %v9739_v62 = vld [vmem:[%s14414_s5 + $0xa70] sm:$0xff] }
0x2c88   :  { %10399 = vmatpush3.msra.mxu0 %v9666_v0  ;;  %10437 = vmatpush3.msra.mxu1 %v9698_v41  ;;  %v9771_v0 = vld [vmem:[%s14414_s5 + $0xb70] sm:$0xff] }
0x2c89   :  { %10400 = vmatprep.subr.mxu0 %v9681_v9  ;;  %10438 = vmatprep.subr.mxu1 %v9713_v1  ;;  %v13750_v1 = vrot.slane %v13720_v27, %v11795_v47 }
0x2c8a   :  { %10401 = vmatpush3.msra.mxu0 %v9665_v2  ;;  %10439 = vmatpush3.msra.mxu1 %v9697_v49  ;;  %v13754_v2 = vrot.slane %v13720_v27, %v12210_v24  ;;  %v9754_v49 = vld [vmem:[%s14414_s5 + $0xae8] sm:$0xff] }
0x2c8b   :  { %10402 = vmatprep.subr.mxu0 %v9680_v36  ;;  %10440 = vmatprep.subr.mxu1 %v9712_v53  ;;  %v9786_v36 = vld [vmem:[%s14414_s5 + $0xbe8] sm:$0xff] }
0x2c8c   :  { %10403 = vmatpush3.msra.mxu0 %v9664_v51  ;;  %10441 = vmatpush3.msra.mxu1 %v9696_v18 }
0x2c8d   :  { %10404 = vmatprep.subr.mxu0 %v9679_v55  ;;  %10442 = vmatprep.subr.mxu1 %v9711_v23  ;;  %v9738_v23 = vld [vmem:[%s14414_s5 + $0xa68] sm:$0xff] }
0x2c8e   :  { %10405 = vmatpush3.msra.mxu0 %v9663_v44  ;;  %10443 = vmatpush3.msra.mxu1 %v9695_v8  ;;  %v9770_v44 = vld [vmem:[%s14414_s5 + $0xb68] sm:$0xff] }
0x2c8f   :  { %10406 = vmatprep.subr.mxu0 %v9678_v12  ;;  %10444 = vmatprep.subr.mxu1 %v9710_v56  ;;  %v9753_v56 = vld [vmem:[%s14414_s5 + $0xae0] sm:$0xff] }
0x2c90   :  { %10407 = vmatpush3.msra.mxu0 %v9662_v15  ;;  %10445 = vmatpush3.msra.mxu1 %v9694_v20  ;;  %v9785_v15 = vld [vmem:[%s14414_s5 + $0xbe0] sm:$0xff] }
0x2c91   :  { %10408 = vmatprep.subr.mxu0 %v9677_v21  ;;  %10446 = vmatprep.subr.mxu1 %v9709_v11  ;;  %v9737_v11 = vld [vmem:[%s14414_s5 + $0xa60] sm:$0xff] }
0x2c92   :  { %10409 = vmatpush3.msra.mxu0 %v9661_v58  ;;  %10447 = vmatpush3.msra.mxu1 %v9693_v43  ;;  %v9769_v58 = vld [vmem:[%s14414_s5 + $0xb60] sm:$0xff]  ;;  %v9752_v43 = vld [vmem:[%s14414_s5 + $0xad8] sm:$0xff] }
0x2c93   :  { %10454 = vmatprep.subr.mxu0 %v9756_v25  ;;  %10492 = vmatprep.subr.mxu1 %v9788_v26 }
0x2d0d   :  { %v7922_v37 = vpop.f32.mrf.mxu0  ;;  %v7999_v4 = vpop.f32.mrf.mxu1 }
0x2d0e   :  { %v7923_v38 = vadd.f32 %v7922_v37, %v7773_v28  ;;  %v8000_v39 = vadd.f32 %v7999_v4, %v7781_v10  ;;  %v9783_v37 = vld [vmem:[%s14414_s5 + $0xbd0] sm:$0xff] }
0x2d0f   :  { %v7924_v42 = vpop.f32.mrf.mxu0  ;;  %v8001_v63 = vpop.f32.mrf.mxu1  ;;  %v9735_v4 = vld [vmem:[%s14414_s5 + $0xa50] sm:$0xff] }
0x2d10   :  { %v7925_v40 = vadd.f32 %v7924_v42, %v7777_v30  ;;  %v8002_v46 = vadd.f32 %v8001_v63, %v7785_v33  ;;  %v8472_v3 = vmax.f32 %v7923_v38, 0.0  ;;  %v8474_v50 = vmax.f32 %v8000_v39, 0.0  ;;  %v9767_v38 = vld [vmem:[%s14414_s5 + $0xb50] sm:$0xff]  ;;  %v9750_v39 = vld [vmem:[%s14414_s5 + $0xac8] sm:$0xff] }
0x2d11   :  { %v9782_v42 = vld [vmem:[%s14414_s5 + $0xbc8] sm:$0xff] }
0x2d12   :  { %v8473_v52 = vmax.f32 %v7925_v40, 0.0  ;;  %v8475_v5 = vmax.f32 %v8002_v46, 0.0  ;;  %v7928_v54 = vpop.f32.mrf.mxu0  ;;  %v8005_v22 = vpop.f32.mrf.mxu1  ;;  %v9734_v63 = vld [vmem:[%s14414_s5 + $0xa48] sm:$0xff]  ;;  %v9749_v46 = vld [vmem:[%s14414_s5 + $0xac0] sm:$0xff] }
0x2d13   :  { %v7929_v59 = vadd.f32 %v7928_v54, %v7773_v28  ;;  %v8006_v61 = vadd.f32 %v8005_v22, %v7781_v10  ;;  %v9784_v28 = vld [vmem:[%s14414_s5 + $0xbd8] sm:$0xff]  ;;  %v9766_v40 = vld [vmem:[%s14414_s5 + $0xb48] sm:$0xff]  ;;  %v9765_v54 = vld [vmem:[%s14414_s5 + $0xb40] sm:$0xff] }
0x2d14   :  { %v7930_v14 = vpop.f32.mrf.mxu0  ;;  %v8007_v13 = vpop.f32.mrf.mxu1  ;;  %8829 = vmatprep.mubr.f32.mxu0 %v8473_v52  ;;  %8904 = vmatprep.mubr.f32.mxu1 %v8475_v5  ;;  %v9736_v10 = vld [vmem:[%s14414_s5 + $0xa58] sm:$0xff]  ;;  %v9781_v52 = vld [vmem:[%s14414_s5 + $0xbc0] sm:$0xff] }
0x2d15   :  { %v7931_v6 = vadd.f32 %v7930_v14, %v7777_v30  ;;  %v8008_v60 = vadd.f32 %v8007_v13, %v7785_v33  ;;  %8830 = vmatmul.mubr.f32.vlgmr.msra.gmra.mxu0 %v8472_v3  ;;  %8905 = vmatmul.mubr.f32.vlgmr.msra.gmra.mxu1 %v8474_v50  ;;  %v8488_v18 = vmax.f32 %v7929_v59, 0.0  ;;  %v8490_v55 = vmax.f32 %v8006_v61, 0.0  ;;  %v9768_v30 = vld [vmem:[%s14414_s5 + $0xb58] sm:$0xff]  ;;  %v9751_v33 = vld [vmem:[%s14414_s5 + $0xad0] sm:$0xff]  ;;  %v9733_v5 = vld [vmem:[%s14414_s5 + $0xa40] sm:$0xff] }
0x2d16   :  { %10455 = vmatpush3.msra.mxu0 %v9740_v45  ;;  %10493 = vmatpush3.msra.mxu1 %v9772_v34  ;;  %v9748_v22 = vld [vmem:[%s14414_s5 + $0xab8] sm:$0xff]  ;;  %v9747_v34 = vld [vmem:[%s14414_s5 + $0xab0] sm:$0xff]  ;;  %v9730_v61 = vld [vmem:[%s14414_s5 + $0xa28] sm:$0xff] }
0x2d17   :  { %v8489_v41 = vmax.f32 %v7931_v6, 0.0  ;;  %v8491_v9 = vmax.f32 %v8008_v60, 0.0  ;;  %10456 = vmatprep.subr.mxu0 %v9755_v16  ;;  %10494 = vmatprep.subr.mxu1 %v9787_v35  ;;  %v9780_v3 = vld [vmem:[%s14414_s5 + $0xbb8] sm:$0xff]  ;;  %v9779_v59 = vld [vmem:[%s14414_s5 + $0xbb0] sm:$0xff]  ;;  %v9746_v16 = vld [vmem:[%s14414_s5 + $0xaa8] sm:$0xff] }
0x2d18   :  { %v13762_v53 = vpop.f32.mrf.mxu0  ;;  %v13764_v51 = vpop.f32.mrf.mxu1  ;;  %10457 = vmatpush3.msra.mxu0 %v9739_v62  ;;  %10495 = vmatpush3.msra.mxu1 %v9771_v0  ;;  %v9732_v50 = vld [vmem:[%s14414_s5 + $0xa38] sm:$0xff]  ;;  %v9731_v14 = vld [vmem:[%s14414_s5 + $0xa30] sm:$0xff]  ;;  %v9778_v35 = vld [vmem:[%s14414_s5 + $0xba8] sm:$0xff] }
0x2d19   :  { %8834 = vmatprep.mubr.f32.mxu0 %v8489_v41  ;;  %8909 = vmatprep.mubr.f32.mxu1 %v8491_v9  ;;  %v9764_v45 = vld [vmem:[%s14414_s5 + $0xb38] sm:$0xff]  ;;  %v9763_v13 = vld [vmem:[%s14414_s5 + $0xb30] sm:$0xff]  ;;  %v9762_v6 = vld [vmem:[%s14414_s5 + $0xb28] sm:$0xff] }
0x2d1a   :  { %v8078_v8 = vpop.f32.mrf.mxu0  ;;  %v8155_v12 = vpop.f32.mrf.mxu1  ;;  %10458 = vmatprep.subr.mxu0 %v9754_v49  ;;  %10496 = vmatprep.subr.mxu1 %v9786_v36  ;;  %v9745_v62 = vld [vmem:[%s14414_s5 + $0xaa0] sm:$0xff]  ;;  %v9744_v36 = vld [vmem:[%s14414_s5 + $0xa98] sm:$0xff] }
0x2d1b   :  { %v8079_v20 = vadd.f32 %v8078_v8, %v13750_v1  ;;  %v8156_v21 = vadd.f32 %v8155_v12, %v13754_v2  ;;  %8835 = vmatmul.mubr.f32.gmra.mxu0 %v8488_v18  ;;  %8910 = vmatmul.mubr.f32.gmra.mxu1 %v8490_v55  ;;  %v9777_v0 = vld [vmem:[%s14414_s5 + $0xba0] sm:$0xff]  ;;  %v9776_v18 = vld [vmem:[%s14414_s5 + $0xb98] sm:$0xff]  ;;  %v7789_v55 = vrot.slane %v13720_v27, %v12341_v32 }
0x2d1c   :  { %10459 = vmatpush3.msra.mxu0 %v9738_v23  ;;  %10497 = vmatpush3.msra.mxu1 %v9770_v44  ;;  %v9729_v9 = vld [vmem:[%s14414_s5 + $0xa20] sm:$0xff]  ;;  %v7797_v23 = vrot.slane %v13720_v27, %v11798_v48  ;;  %v9728_v44 = vld [vmem:[%s14414_s5 + $0xa18] sm:$0xff]  ;;  %v9775_v27 = vld [vmem:[%s14414_s5 + $0xb90] sm:$0xff] }
0x2d1d   :  { %v8477_v25 = vmax.f32 %v8079_v20, 0.0  ;;  %v8479_v26 = vmax.f32 %v8156_v21, 0.0  ;;  %10460 = vmatprep.subr.mxu0 %v9753_v56  ;;  %10498 = vmatprep.subr.mxu1 %v9785_v15  ;;  %v9761_v49 = vld [vmem:[%s14414_s5 + $0xb20] sm:$0xff]  ;;  %v9760_v8 = vld [vmem:[%s14414_s5 + $0xb18] sm:$0xff]  ;;  %v9743_v56 = vld [vmem:[%s14414_s5 + $0xa90] sm:$0xff] }
0x2d1e   :  { %10461 = vmatpush3.msra.mxu0 %v9737_v11  ;;  %10499 = vmatpush3.msra.mxu1 %v9769_v58  ;;  %v13870_v60 = vpop.f32.mrf.mxu0  ;;  %v8159_v41 = vpop.f32.mrf.mxu1  ;;  %v9727_v20 = vld [vmem:[%s14414_s5 + $0xa10] sm:$0xff]  ;;  %v9742_v11 = vld [vmem:[%s14414_s5 + $0xa88] sm:$0xff] }
0x2d1f   :  { %10462 = vmatprep.subr.mxu0 %v9752_v43  ;;  %8979 = vmatprep.mubr.f32.mxu0 %v8477_v25  ;;  %v9759_v21 = vld [vmem:[%s14414_s5 + $0xb10] sm:$0xff]  ;;  %v9774_v58 = vld [vmem:[%s14414_s5 + $0xb88] sm:$0xff]  ;;  %v8077_v43 = vadd.f32 %v13762_v53, %v7789_v55  ;;  %v8154_v25 = vadd.f32 %v13764_v51, %v7797_v23  ;;  %v9741_v53 = vld [vmem:[%s14414_s5 + $0xa80] sm:$0xff] }
0x2d20   :  { %10500 = vmatprep.subr.mxu1 %v9784_v28  ;;  %9054 = vmatprep.mubr.f32.mxu1 %v8479_v26  ;;  %v8084_v12 = vpop.f32.mrf.mxu0  ;;  %v8161_v15 = vpop.f32.mrf.mxu1  ;;  %v9726_v26 = vld [vmem:[%s14414_s5 + $0xa08] sm:$0xff]  ;;  %v9773_v51 = vld [vmem:[%s14414_s5 + $0xb80] sm:$0xff] }
0x2d21   :  { %10463 = vmatpush3.msra.mxu0 %v9736_v10  ;;  %10501 = vmatpush3.msra.mxu1 %v9768_v30  ;;  %v9758_v28 = vld [vmem:[%s14414_s5 + $0xb08] sm:$0xff]  ;;  %v8085_v30 = vadd.f32 %v8084_v12, %v13750_v1  ;;  %v8476_v1 = vmax.f32 %v8077_v43, 0.0  ;;  %v9832_v12 = vld [vmem:[%s14414_s5 + $0xd58] sm:$0xff] }
0x2d22   :  { %10464 = vmatprep.subr.mxu0 %v9751_v33  ;;  %10502 = vmatprep.subr.mxu1 %v9783_v37  ;;  %v8162_v33 = vadd.f32 %v8161_v15, %v13754_v2  ;;  %v8478_v2 = vmax.f32 %v8154_v25, 0.0  ;;  %v9799_v15 = vld [vmem:[%s14414_s5 + $0xc50] sm:$0xff]  ;;  %v9830_v43 = vld [vmem:[%s14414_s5 + $0xd48] sm:$0xff]  ;;  %v9813_v25 = vld [vmem:[%s14414_s5 + $0xcc0] sm:$0xff] }
0x2d23   :  { %10465 = vmatpush3.msra.mxu0 %v9735_v4  ;;  %10503 = vmatpush3.msra.mxu1 %v9767_v38  ;;  %v9725_v4 = vld [vmem:[%s14414_s5 + $0xa00] sm:$0xff] }
0x2d24   :  { %10466 = vmatprep.subr.mxu0 %v9750_v39  ;;  %10504 = vmatprep.subr.mxu1 %v9782_v42  ;;  %v13926_v10 = vpop.f32.mrf.mxu0  ;;  %v13936_v37 = vpop.f32.mrf.mxu1  ;;  %v9757_v38 = vld [vmem:[%s14414_s5 + $0xb00] sm:$0xff]  ;;  %v13947_v39 = vld [vmem:[%s14415_s4 + $0x18] sm:$0xff] }
0x2d25   :  { %10467 = vmatpush3.msra.mxu0 %v9734_v63  ;;  %10505 = vmatpush3.msra.mxu1 %v9766_v40  ;;  %v13951_v42 = vrot.slane %v13947_v39, %v11339_v7  ;;  %v9820_v63 = vld [vmem:[%s14414_s5 + $0xcf8] sm:$0xff]  ;;  %v8083_v7 = vadd.f32 %v13870_v60, %v7789_v55  ;;  %v9850_v60 = vld [vmem:[%s14414_s5 + $0xde8] sm:$0xff]  ;;  %v9833_v55 = vld [vmem:[%s14414_s5 + $0xd60] sm:$0xff] }
0x2d26   :  { %10468 = vmatprep.subr.mxu0 %v9749_v46  ;;  %10506 = vmatprep.subr.mxu1 %v9781_v52  ;;  %v9852_v40 = vld [vmem:[%s14414_s5 + $0xdf8] sm:$0xff]  ;;  %v8232_v46 = vpop.f32.mrf.mxu0  ;;  %v13961_v52 = vrot.slane %v13947_v39, %v11721_v57  ;;  %v9819_v57 = vld [vmem:[%s14414_s5 + $0xcf0] sm:$0xff] }
0x2d27   :  { %10469 = vmatpush3.msra.mxu0 %v9733_v5  ;;  %10507 = vmatpush3.msra.mxu1 %v9765_v54  ;;  %v8160_v5 = vadd.f32 %v8159_v41, %v7797_v23  ;;  %v8493_v54 = vmax.f32 %v8085_v30, 0.0  ;;  %v9834_v41 = vld [vmem:[%s14414_s5 + $0xd68] sm:$0xff]  ;;  %v9816_v23 = vld [vmem:[%s14414_s5 + $0xcd8] sm:$0xff] }
0x2d28   :  { %10470 = vmatprep.subr.mxu0 %v9748_v22  ;;  %10508 = vmatprep.subr.mxu1 %v9780_v3  ;;  %v8495_v22 = vmax.f32 %v8162_v33, 0.0  ;;  %v8309_v3 = vpop.f32.mrf.mxu1  ;;  %v9844_v30 = vld [vmem:[%s14414_s5 + $0xdb8] sm:$0xff] }
0x2d29   :  { %10471 = vmatpush3.msra.mxu0 %v9732_v50  ;;  %10509 = vmatpush3.msra.mxu1 %v9764_v45  ;;  %v9804_v50 = vld [vmem:[%s14414_s5 + $0xc78] sm:$0xff] }
0x2d2a   :  { %10472 = vmatprep.subr.mxu0 %v9747_v34  ;;  %10510 = vmatprep.subr.mxu1 %v9779_v59  ;;  %v9836_v45 = vld [vmem:[%s14414_s5 + $0xd78] sm:$0xff]  ;;  %v9851_v34 = vld [vmem:[%s14414_s5 + $0xdf0] sm:$0xff]  ;;  %v8233_v59 = vadd.f32 %v8232_v46, %v13951_v42  ;;  %v9842_v46 = vld [vmem:[%s14414_s5 + $0xda8] sm:$0xff] }
0x2d2b   :  { %10473 = vmatpush3.msra.mxu0 %v9731_v14  ;;  %10511 = vmatpush3.msra.mxu1 %v9763_v13  ;;  %v9803_v14 = vld [vmem:[%s14414_s5 + $0xc70] sm:$0xff]  ;;  %v9796_v33 = vld [vmem:[%s14414_s5 + $0xc38] sm:$0xff] }
0x2d2c   :  { %10474 = vmatprep.subr.mxu0 %v9746_v16  ;;  %10512 = vmatprep.subr.mxu1 %v9778_v35  ;;  %v9835_v13 = vld [vmem:[%s14414_s5 + $0xd70] sm:$0xff]  ;;  %v8310_v16 = vadd.f32 %v8309_v3, %v13961_v52  ;;  %v8492_v35 = vmax.f32 %v8083_v7, 0.0  ;;  %v9794_v7 = vld [vmem:[%s14414_s5 + $0xc28] sm:$0xff]  ;;  %v9841_v3 = vld [vmem:[%s14414_s5 + $0xda0] sm:$0xff] }
0x2d2d   :  { %10475 = vmatpush3.msra.mxu0 %v9730_v61  ;;  %10513 = vmatpush3.msra.mxu1 %v9762_v6  ;;  %v8494_v61 = vmax.f32 %v8160_v5, 0.0  ;;  %v9818_v6 = vld [vmem:[%s14414_s5 + $0xce8] sm:$0xff] }
0x2d2e   :  { %10476 = vmatprep.subr.mxu0 %v9745_v62  ;;  %10514 = vmatprep.subr.mxu1 %v9777_v0  ;;  %v9802_v62 = vld [vmem:[%s14414_s5 + $0xc68] sm:$0xff]  ;;  %v8481_v0 = vmax.f32 %v8233_v59, 0.0  ;;  %v9840_v59 = vld [vmem:[%s14414_s5 + $0xd98] sm:$0xff] }
0x2d2f   :  { %10477 = vmatpush3.msra.mxu0 %v9729_v9  ;;  %10515 = vmatpush3.msra.mxu1 %v9761_v49  ;;  %v8483_v9 = vmax.f32 %v8310_v16, 0.0  ;;  %v9817_v49 = vld [vmem:[%s14414_s5 + $0xce0] sm:$0xff]  ;;  %v9826_v5 = vld [vmem:[%s14414_s5 + $0xd28] sm:$0xff]  ;;  %v9792_v16 = vld [vmem:[%s14414_s5 + $0xc18] sm:$0xff] }
0x2d30   :  { %10478 = vmatprep.subr.mxu0 %v9744_v36  ;;  %10516 = vmatprep.subr.mxu1 %v9776_v18  ;;  %v9849_v36 = vld [vmem:[%s14414_s5 + $0xde0] sm:$0xff] }
0x2d31   :  { %10479 = vmatpush3.msra.mxu0 %v9728_v44  ;;  %10517 = vmatpush3.msra.mxu1 %v9760_v8  ;;  %v9801_v18 = vld [vmem:[%s14414_s5 + $0xc60] sm:$0xff]  ;;  %v9848_v44 = vld [vmem:[%s14414_s5 + $0xdd8] sm:$0xff] }
0x2d32   :  { %10480 = vmatprep.subr.mxu0 %v9743_v56  ;;  %10518 = vmatprep.subr.mxu1 %v9775_v27  ;;  %v9800_v8 = vld [vmem:[%s14414_s5 + $0xc58] sm:$0xff]  ;;  %v9815_v56 = vld [vmem:[%s14414_s5 + $0xcd0] sm:$0xff] }
0x2d33   :  { %10481 = vmatpush3.msra.mxu0 %v9727_v20  ;;  %10519 = vmatpush3.msra.mxu1 %v9759_v21  ;;  %v9847_v27 = vld [vmem:[%s14414_s5 + $0xdd0] sm:$0xff]  ;;  %v9814_v21 = vld [vmem:[%s14414_s5 + $0xcc8] sm:$0xff] }
0x2d34   :  { %10482 = vmatprep.subr.mxu0 %v9742_v11  ;;  %10520 = vmatprep.subr.mxu1 %v9774_v58  ;;  %v9831_v20 = vld [vmem:[%s14414_s5 + $0xd50] sm:$0xff]  ;;  %v9846_v11 = vld [vmem:[%s14414_s5 + $0xdc8] sm:$0xff] }
0x2d35   :  { %10483 = vmatpush3.msra.mxu0 %v9726_v26  ;;  %10521 = vmatpush3.msra.mxu1 %v9758_v28  ;;  %v9798_v58 = vld [vmem:[%s14414_s5 + $0xc48] sm:$0xff]  ;;  %v9845_v26 = vld [vmem:[%s14414_s5 + $0xdc0] sm:$0xff] }
0x2d36   :  { %10484 = vmatprep.subr.mxu0 %v9741_v53  ;;  %10522 = vmatprep.subr.mxu1 %v9773_v51  ;;  %v9797_v28 = vld [vmem:[%s14414_s5 + $0xc40] sm:$0xff]  ;;  %v9812_v51 = vld [vmem:[%s14414_s5 + $0xcb8] sm:$0xff] }
0x2d37   :  { %10485 = vmatpush3.msra.mxu0 %v9725_v4  ;;  %10523 = vmatpush3.msra.mxu1 %v9757_v38  ;;  %v9829_v53 = vld [vmem:[%s14414_s5 + $0xd40] sm:$0xff]  ;;  %v9828_v4 = vld [vmem:[%s14414_s5 + $0xd38] sm:$0xff]  ;;  %v9811_v38 = vld [vmem:[%s14414_s5 + $0xcb0] sm:$0xff] }
0x2d38   :  { %8980 = vmatmul.mubr.f32.vlgmr.msra.gmra.mxu0 %v8476_v1  ;;  %9055 = vmatmul.mubr.f32.vlgmr.msra.gmra.mxu1 %v8478_v2  ;;  %v9843_v1 = vld [vmem:[%s14414_s5 + $0xdb0] sm:$0xff] }
0x2d39   :  { %10530 = vmatprep.subr.mxu0 %v9820_v63  ;;  %10568 = vmatprep.subr.mxu1 %v9852_v40  ;;  %v9795_v2 = vld [vmem:[%s14414_s5 + $0xc30] sm:$0xff]  ;;  %v9810_v40 = vld [vmem:[%s14414_s5 + $0xca8] sm:$0xff] }
0x2d3a   :  { %8984 = vmatprep.mubr.f32.mxu0 %v8493_v54  ;;  %9059 = vmatprep.mubr.f32.mxu1 %v8495_v22  ;;  %v9827_v63 = vld [vmem:[%s14414_s5 + $0xd30] sm:$0xff]  ;;  %v14092_v54 = vpop.f32.mrf.mxu0  ;;  %v9809_v22 = vld [vmem:[%s14414_s5 + $0xca0] sm:$0xff] }
0x2d3b   :  { %10531 = vmatpush3.msra.mxu0 %v9804_v50  ;;  %10569 = vmatpush3.msra.mxu1 %v9836_v45  ;;  %v8313_v50 = vpop.f32.mrf.mxu1  ;;  %v9793_v45 = vld [vmem:[%s14414_s5 + $0xc20] sm:$0xff] }
0x2d3c   :  { %10532 = vmatprep.subr.mxu0 %v9819_v57  ;;  %10570 = vmatprep.subr.mxu1 %v9851_v34  ;;  %v9825_v57 = vld [vmem:[%s14414_s5 + $0xd20] sm:$0xff]  ;;  %v9808_v34 = vld [vmem:[%s14414_s5 + $0xc98] sm:$0xff] }
0x2d3d   :  { %10533 = vmatpush3.msra.mxu0 %v9803_v14  ;;  %10571 = vmatpush3.msra.mxu1 %v9835_v13  ;;  %v7805_v14 = vrot.slane %v13947_v39, %v11365_v17  ;;  %v7813_v13 = vrot.slane %v13947_v39, %v11387_v31  ;;  %v9807_v17 = vld [vmem:[%s14414_s5 + $0xc90] sm:$0xff] }
0x2d3e   :  { %8985 = vmatmul.mubr.f32.gmra.mxu0 %v8492_v35  ;;  %9060 = vmatmul.mubr.f32.gmra.mxu1 %v8494_v61  ;;  %v9824_v35 = vld [vmem:[%s14414_s5 + $0xd18] sm:$0xff]  ;;  %v8238_v61 = vpop.f32.mrf.mxu0  ;;  %v9839_v31 = vld [vmem:[%s14414_s5 + $0xd90] sm:$0xff] }
0x2d3f   :  { %10534 = vmatprep.subr.mxu0 %v9818_v6  ;;  %10572 = vmatprep.subr.mxu1 %v9850_v60  ;;  %v8315_v6 = vpop.f32.mrf.mxu1  ;;  %v9791_v60 = vld [vmem:[%s14414_s5 + $0xc10] sm:$0xff] }
0x2d40   :  { %10535 = vmatpush3.msra.mxu0 %v9802_v62  ;;  %9129 = vmatprep.mubr.f32.mxu0 %v8481_v0  ;;  %v9823_v62 = vld [vmem:[%s14414_s5 + $0xd10] sm:$0xff]  ;;  %v9806_v0 = vld [vmem:[%s14414_s5 + $0xc88] sm:$0xff] }
0x2d41   :  { %10573 = vmatpush3.msra.mxu1 %v9834_v41  ;;  %9204 = vmatprep.mubr.f32.mxu1 %v8483_v9  ;;  %v9838_v41 = vld [vmem:[%s14414_s5 + $0xd88] sm:$0xff]  ;;  %v8231_v9 = vadd.f32 %v13926_v10, %v7805_v14  ;;  %v9805_v10 = vld [vmem:[%s14414_s5 + $0xc80] sm:$0xff] }
0x2d42   :  { %10536 = vmatprep.subr.mxu0 %v9817_v49  ;;  %10574 = vmatprep.subr.mxu1 %v9849_v36  ;;  %v8308_v49 = vadd.f32 %v13936_v37, %v7813_v13  ;;  %v9790_v36 = vld [vmem:[%s14414_s5 + $0xc08] sm:$0xff]  ;;  %v9837_v37 = vld [vmem:[%s14414_s5 + $0xd80] sm:$0xff] }
0x2d43   :  { %10537 = vmatpush3.msra.mxu0 %v9801_v18  ;;  %10575 = vmatpush3.msra.mxu1 %v9833_v55  ;;  %v9822_v18 = vld [vmem:[%s14414_s5 + $0xd08] sm:$0xff]  ;;  %v14148_v55 = vpop.f32.mrf.mxu0 }
0x2d44   :  { %10538 = vmatprep.subr.mxu0 %v9816_v23  ;;  %10576 = vmatprep.subr.mxu1 %v9848_v44  ;;  %v8239_v23 = vadd.f32 %v8238_v61, %v13951_v42  ;;  %v8316_v44 = vadd.f32 %v8315_v6, %v13961_v52  ;;  %v14168_v42 = vrot.slane %v13947_v39, %v11795_v47  ;;  %v9884_v52 = vld [vmem:[%s14414_s5 + $0xef8] sm:$0xff]  ;;  %v9863_v61 = vld [vmem:[%s14414_s5 + $0xe50] sm:$0xff]  ;;  %v9910_v6 = vld [vmem:[%s14414_s5 + $0xfc8] sm:$0xff] }
0x2d45   :  { %10539 = vmatpush3.msra.mxu0 %v9800_v8  ;;  %10577 = vmatpush3.msra.mxu1 %v9832_v12  ;;  %v14158_v8 = vpop.f32.mrf.mxu1  ;;  %v9789_v12 = vld [vmem:[%s14414_s5 + $0xc00] sm:$0xff]  ;;  %v8237_v47 = vadd.f32 %v14092_v54, %v7805_v14  ;;  %v9898_v54 = vld [vmem:[%s14414_s5 + $0xf68] sm:$0xff]  ;;  %v9864_v14 = vld [vmem:[%s14414_s5 + $0xe58] sm:$0xff] }
0x2d46   :  { %10540 = vmatprep.subr.mxu0 %v9815_v56  ;;  %10578 = vmatprep.subr.mxu1 %v9847_v27  ;;  %v9821_v56 = vld [vmem:[%s14414_s5 + $0xd00] sm:$0xff]  ;;  %v8480_v27 = vmax.f32 %v8231_v9, 0.0 }
0x2d47   :  { %10541 = vmatpush3.msra.mxu0 %v9799_v15  ;;  %10579 = vmatpush3.msra.mxu1 %v9831_v20  ;;  %v8482_v15 = vmax.f32 %v8308_v49, 0.0  ;;  %v9916_v20 = vld [vmem:[%s14414_s5 + $0xff8] sm:$0xff]  ;;  %v9861_v9 = vld [vmem:[%s14414_s5 + $0xe40] sm:$0xff] }
0x2d48   :  { %10542 = vmatprep.subr.mxu0 %v9814_v21  ;;  %10580 = vmatprep.subr.mxu1 %v9846_v11  ;;  %v8386_v21 = vpop.f32.mrf.mxu0  ;;  %v14178_v11 = vrot.slane %v13947_v39, %v12210_v24  ;;  %v9893_v49 = vld [vmem:[%s14414_s5 + $0xf40] sm:$0xff] }
0x2d49   :  { %10543 = vmatpush3.msra.mxu0 %v9798_v58  ;;  %10581 = vmatpush3.msra.mxu1 %v9830_v43  ;;  %v8314_v58 = vadd.f32 %v8313_v50, %v7813_v13  ;;  %v8497_v43 = vmax.f32 %v8239_v23, 0.0  ;;  %v9913_v50 = vld [vmem:[%s14414_s5 + $0xfe0] sm:$0xff]  ;;  %v9896_v13 = vld [vmem:[%s14414_s5 + $0xf58] sm:$0xff]  ;;  %v9875_v23 = vld [vmem:[%s14414_s5 + $0xeb0] sm:$0xff] }
0x2d4a   :  { %10544 = vmatprep.subr.mxu0 %v9813_v25  ;;  %10582 = vmatprep.subr.mxu1 %v9845_v26  ;;  %v8499_v25 = vmax.f32 %v8316_v44, 0.0  ;;  %v8463_v26 = vpop.f32.mrf.mxu1  ;;  %v9907_v44 = vld [vmem:[%s14414_s5 + $0xfb0] sm:$0xff] }
0x2d4b   :  { %10545 = vmatpush3.msra.mxu0 %v9797_v28  ;;  %10583 = vmatpush3.msra.mxu1 %v9829_v53  ;;  %v9868_v28 = vld [vmem:[%s14414_s5 + $0xe78] sm:$0xff] }
0x2d4c   :  { %10546 = vmatprep.subr.mxu0 %v9812_v51  ;;  %10584 = vmatprep.subr.mxu1 %v9844_v30  ;;  %v9900_v53 = vld [vmem:[%s14414_s5 + $0xf78] sm:$0xff]  ;;  %v9883_v51 = vld [vmem:[%s14414_s5 + $0xef0] sm:$0xff] }
0x2d4d   :  { %10547 = vmatpush3.msra.mxu0 %v9796_v33  ;;  %10585 = vmatpush3.msra.mxu1 %v9828_v4  ;;  %v9915_v30 = vld [vmem:[%s14414_s5 + $0xff0] sm:$0xff]  ;;  %v8387_v33 = vadd.f32 %v8386_v21, %v14168_v42  ;;  %v9873_v21 = vld [vmem:[%s14414_s5 + $0xea0] sm:$0xff] }
0x2d4e   :  { %10548 = vmatprep.subr.mxu0 %v9811_v38  ;;  %10586 = vmatprep.subr.mxu1 %v9843_v1  ;;  %v9867_v4 = vld [vmem:[%s14414_s5 + $0xe70] sm:$0xff]  ;;  %v8464_v1 = vadd.f32 %v8463_v26, %v14178_v11  ;;  %v9889_v26 = vld [vmem:[%s14414_s5 + $0xf20] sm:$0xff] }
0x2d4f   :  { %10549 = vmatpush3.msra.mxu0 %v9795_v2  ;;  %10587 = vmatpush3.msra.mxu1 %v9827_v63  ;;  %v9899_v38 = vld [vmem:[%s14414_s5 + $0xf70] sm:$0xff]  ;;  %v8496_v2 = vmax.f32 %v8237_v47, 0.0  ;;  %v8498_v63 = vmax.f32 %v8314_v58, 0.0  ;;  %v9905_v47 = vld [vmem:[%s14414_s5 + $0xfa0] sm:$0xff]  ;;  %v8390_v58 = vpop.f32.mrf.mxu0 }
0x2d50   :  { %10550 = vmatprep.subr.mxu0 %v9810_v40  ;;  %10588 = vmatprep.subr.mxu1 %v9842_v46  ;;  %v9882_v40 = vld [vmem:[%s14414_s5 + $0xee8] sm:$0xff] }
0x2d51   :  { %10551 = vmatpush3.msra.mxu0 %v9794_v7  ;;  %10589 = vmatpush3.msra.mxu1 %v9826_v5  ;;  %v9914_v46 = vld [vmem:[%s14414_s5 + $0xfe8] sm:$0xff]  ;;  %v8485_v5 = vmax.f32 %v8387_v33, 0.0  ;;  %v9856_v33 = vld [vmem:[%s14414_s5 + $0xe18] sm:$0xff] }
0x2d52   :  { %10552 = vmatprep.subr.mxu0 %v9809_v22  ;;  %10590 = vmatprep.subr.mxu1 %v9841_v3  ;;  %v9866_v7 = vld [vmem:[%s14414_s5 + $0xe68] sm:$0xff]  ;;  %v8487_v22 = vmax.f32 %v8464_v1, 0.0  ;;  %v9881_v3 = vld [vmem:[%s14414_s5 + $0xee0] sm:$0xff] }
0x2d53   :  { %10553 = vmatpush3.msra.mxu0 %v9793_v45  ;;  %10591 = vmatpush3.msra.mxu1 %v9825_v57  ;;  %v9865_v45 = vld [vmem:[%s14414_s5 + $0xe60] sm:$0xff] }
0x2d54   :  { %10554 = vmatprep.subr.mxu0 %v9808_v34  ;;  %10592 = vmatprep.subr.mxu1 %v9840_v59  ;;  %v9897_v57 = vld [vmem:[%s14414_s5 + $0xf60] sm:$0xff]  ;;  %v9880_v34 = vld [vmem:[%s14414_s5 + $0xed8] sm:$0xff] }
0x2d55   :  { %10555 = vmatpush3.msra.mxu0 %v9792_v16  ;;  %10593 = vmatpush3.msra.mxu1 %v9824_v35  ;;  %v9912_v59 = vld [vmem:[%s14414_s5 + $0xfd8] sm:$0xff]  ;;  %v9879_v16 = vld [vmem:[%s14414_s5 + $0xed0] sm:$0xff] }
0x2d56   :  { %10556 = vmatprep.subr.mxu0 %v9807_v17  ;;  %10594 = vmatprep.subr.mxu1 %v9839_v31  ;;  %v9911_v35 = vld [vmem:[%s14414_s5 + $0xfd0] sm:$0xff]  ;;  %v9878_v31 = vld [vmem:[%s14414_s5 + $0xec8] sm:$0xff] }
0x2d57   :  { %10557 = vmatpush3.msra.mxu0 %v9791_v60  ;;  %10595 = vmatpush3.msra.mxu1 %v9823_v62  ;;  %v9895_v17 = vld [vmem:[%s14414_s5 + $0xf50] sm:$0xff]  ;;  %v9862_v60 = vld [vmem:[%s14414_s5 + $0xe48] sm:$0xff] }
0x2d58   :  { %10558 = vmatprep.subr.mxu0 %v9806_v0  ;;  %10596 = vmatprep.subr.mxu1 %v9838_v41  ;;  %v9894_v62 = vld [vmem:[%s14414_s5 + $0xf48] sm:$0xff]  ;;  %v9877_v0 = vld [vmem:[%s14414_s5 + $0xec0] sm:$0xff] }
0x2d59   :  { %10559 = vmatpush3.msra.mxu0 %v9790_v36  ;;  %10597 = vmatpush3.msra.mxu1 %v9822_v18  ;;  %v9909_v41 = vld [vmem:[%s14414_s5 + $0xfc0] sm:$0xff]  ;;  %v9876_v36 = vld [vmem:[%s14414_s5 + $0xeb8] sm:$0xff] }
0x2d5a   :  { %10560 = vmatprep.subr.mxu0 %v9805_v10  ;;  %10598 = vmatprep.subr.mxu1 %v9837_v37  ;;  %v9908_v18 = vld [vmem:[%s14414_s5 + $0xfb8] sm:$0xff] }
0x2d5b   :  { %10561 = vmatpush3.msra.mxu0 %v9789_v12  ;;  %10599 = vmatpush3.msra.mxu1 %v9821_v56  ;;  %v9860_v10 = vld [vmem:[%s14414_s5 + $0xe38] sm:$0xff]  ;;  %v9859_v12 = vld [vmem:[%s14414_s5 + $0xe30] sm:$0xff] }
0x2d5c   :  { %9130 = vmatmul.mubr.f32.vlgmr.msra.gmra.mxu0 %v8480_v27  ;;  %9205 = vmatmul.mubr.f32.vlgmr.msra.gmra.mxu1 %v8482_v15  ;;  %v9892_v37 = vld [vmem:[%s14414_s5 + $0xf38] sm:$0xff]  ;;  %v9891_v56 = vld [vmem:[%s14414_s5 + $0xf30] sm:$0xff]  ;;  %v9874_v27 = vld [vmem:[%s14414_s5 + $0xea8] sm:$0xff] }
0x2d5d   :  { %10606 = vmatprep.subr.mxu0 %v9884_v52  ;;  %10644 = vmatprep.subr.mxu1 %v9916_v20  ;;  %v9906_v15 = vld [vmem:[%s14414_s5 + $0xfa8] sm:$0xff] }
0x2d5e   :  { %9134 = vmatprep.mubr.f32.mxu0 %v8497_v43  ;;  %9209 = vmatprep.mubr.f32.mxu1 %v8499_v25  ;;  %v9858_v52 = vld [vmem:[%s14414_s5 + $0xe28] sm:$0xff]  ;;  %v8467_v43 = vpop.f32.mrf.mxu1  ;;  %v9857_v25 = vld [vmem:[%s14414_s5 + $0xe20] sm:$0xff] }
0x2d5f   :  { %10607 = vmatpush3.msra.mxu0 %v9868_v28  ;;  %10645 = vmatpush3.msra.mxu1 %v9900_v53  ;;  %v9890_v20 = vld [vmem:[%s14414_s5 + $0xf28] sm:$0xff]  ;;  %v9872_v28 = vld [vmem:[%s14414_s5 + $0xe98] sm:$0xff] }
0x2d60   :  { %10608 = vmatprep.subr.mxu0 %v9883_v51  ;;  %10646 = vmatprep.subr.mxu1 %v9915_v30  ;;  %v9904_v53 = vld [vmem:[%s14414_s5 + $0xf98] sm:$0xff]  ;;  %v7821_v51 = vrot.slane %v13947_v39, %v12341_v32  ;;  %v7829_v30 = vrot.slane %v13947_v39, %v11798_v48  ;;  %v9903_v48 = vld [vmem:[%s14414_s5 + $0xf90] sm:$0xff]  ;;  %v8392_v39 = vpop.f32.mrf.mxu0  ;;  %v8469_v1 = vpop.f32.mrf.mxu1 }
0x2d61   :  { %10609 = vmatpush3.msra.mxu0 %v9867_v4  ;;  %10647 = vmatpush3.msra.mxu1 %v9899_v38  ;;  %v9888_v4 = vld [vmem:[%s14414_s5 + $0xf18] sm:$0xff]  ;;  %v9871_v38 = vld [vmem:[%s14414_s5 + $0xe90] sm:$0xff] }
0x2d62   :  { %9135 = vmatmul.mubr.f32.gmra.mxu0 %v8496_v2  ;;  %9210 = vmatmul.mubr.f32.gmra.mxu1 %v8498_v63  ;;  %v9855_v2 = vld [vmem:[%s14414_s5 + $0xe10] sm:$0xff] }
0x2d63   :  { %10610 = vmatprep.subr.mxu0 %v9882_v40  ;;  %10648 = vmatprep.subr.mxu1 %v9914_v46  ;;  %v9887_v63 = vld [vmem:[%s14414_s5 + $0xf10] sm:$0xff]  ;;  %v9870_v40 = vld [vmem:[%s14414_s5 + $0xe88] sm:$0xff] }
0x2d64   :  { %10611 = vmatpush3.msra.mxu0 %v9866_v7  ;;  %9279 = vmatprep.mubr.f32.mxu0 %v8485_v5  ;;  %v9902_v46 = vld [vmem:[%s14414_s5 + $0xf88] sm:$0xff]  ;;  %v8385_v7 = vadd.f32 %v14148_v55, %v7821_v51  ;;  %v8462_v5 = vadd.f32 %v14158_v8, %v7829_v30  ;;  %v9869_v55 = vld [vmem:[%s14414_s5 + $0xe80] sm:$0xff] }
0x2d65   :  { %10649 = vmatpush3.msra.mxu1 %v9898_v54  ;;  %9354 = vmatprep.mubr.f32.mxu1 %v8487_v22  ;;  %v9854_v54 = vld [vmem:[%s14414_s5 + $0xe08] sm:$0xff]  ;;  %v9901_v8 = vld [vmem:[%s14414_s5 + $0xf80] sm:$0xff] }
0x2d66   :  { %10612 = vmatprep.subr.mxu0 %v9881_v3  ;;  %10650 = vmatprep.subr.mxu1 %v9913_v50  ;;  %v9886_v22 = vld [vmem:[%s14414_s5 + $0xf08] sm:$0xff]  ;;  %v8393_v3 = vadd.f32 %v8392_v39, %v14168_v42  ;;  %v8470_v50 = vadd.f32 %v8469_v1, %v14178_v11  ;;  %v9885_v42 = vld [vmem:[%s14414_s5 + $0xf00] sm:$0xff]  ;;  %v8484_v11 = vmax.f32 %v8385_v7, 0.0 }
0x2d67   :  { %10613 = vmatpush3.msra.mxu0 %v9865_v45  ;;  %10651 = vmatpush3.msra.mxu1 %v9897_v57  ;;  %v9853_v45 = vld [vmem:[%s14414_s5 + $0xe00] sm:$0xff]  ;;  %v8486_v57 = vmax.f32 %v8462_v5, 0.0 }
0x2d68   :  { %10614 = vmatprep.subr.mxu0 %v9880_v34  ;;  %10652 = vmatprep.subr.mxu1 %v9912_v59  ;;  %v8391_v34 = vadd.f32 %v8390_v58, %v7821_v51  ;;  %v8468_v59 = vadd.f32 %v8467_v43, %v7829_v30 }
0x2d69   :  { %10615 = vmatpush3.msra.mxu0 %v9864_v14  ;;  %10653 = vmatpush3.msra.mxu1 %v9896_v13  ;;  %v8501_v14 = vmax.f32 %v8393_v3, 0.0  ;;  %v8503_v13 = vmax.f32 %v8470_v50, 0.0 }
0x2d6a   :  { %10616 = vmatprep.subr.mxu0 %v9879_v16  ;;  %10654 = vmatprep.subr.mxu1 %v9911_v35  ;;  %v8500_v16 = vmax.f32 %v8391_v34, 0.0  ;;  %v8502_v35 = vmax.f32 %v8468_v59, 0.0 }
0x2d6b   :  { %10617 = vmatpush3.msra.mxu0 %v9863_v61  ;;  %10655 = vmatpush3.msra.mxu1 %v9895_v17 }
0x2d6c   :  { %10618 = vmatprep.subr.mxu0 %v9878_v31  ;;  %10656 = vmatprep.subr.mxu1 %v9910_v6 }
0x2d6d   :  { %10619 = vmatpush3.msra.mxu0 %v9862_v60  ;;  %10657 = vmatpush3.msra.mxu1 %v9894_v62 }
0x2d6e   :  { %10620 = vmatprep.subr.mxu0 %v9877_v0  ;;  %10658 = vmatprep.subr.mxu1 %v9909_v41 }
0x2d6f   :  { %10621 = vmatpush3.msra.mxu0 %v9861_v9  ;;  %10659 = vmatpush3.msra.mxu1 %v9893_v49 }
0x2d70   :  { %10622 = vmatprep.subr.mxu0 %v9876_v36  ;;  %10660 = vmatprep.subr.mxu1 %v9908_v18 }
0x2d71   :  { %10623 = vmatpush3.msra.mxu0 %v9860_v10  ;;  %10661 = vmatpush3.msra.mxu1 %v9892_v37 }
0x2d72   :  { %10624 = vmatprep.subr.mxu0 %v9875_v23  ;;  %10662 = vmatprep.subr.mxu1 %v9907_v44  ;;  %v14380_v44 = vld [vmem:[%s14411_s6 + $0x10] sm:$0xff] }
0x2d73   :  { %10625 = vmatpush3.msra.mxu0 %v9859_v12  ;;  %10663 = vmatpush3.msra.mxu1 %v9891_v56  ;;  %v8764_v12 = vrot.slane %v14380_v44, %v12341_v32 }
0x2d74   :  { %10626 = vmatprep.subr.mxu0 %v9874_v27  ;;  %10664 = vmatprep.subr.mxu1 %v9906_v15 }
0x2d75   :  { %10627 = vmatpush3.msra.mxu0 %v9858_v52  ;;  %10665 = vmatpush3.msra.mxu1 %v9890_v20 }
0x2d76   :  { %10628 = vmatprep.subr.mxu0 %v9873_v21  ;;  %10666 = vmatprep.subr.mxu1 %v9905_v47 }
0x2d77   :  { %10629 = vmatpush3.msra.mxu0 %v9857_v25  ;;  %10667 = vmatpush3.msra.mxu1 %v9889_v26 }
0x2d78   :  { %10630 = vmatprep.subr.mxu0 %v9872_v28  ;;  %10668 = vmatprep.subr.mxu1 %v9904_v53 }
0x2d79   :  { %10631 = vmatpush3.msra.mxu0 %v9856_v33  ;;  %10669 = vmatpush3.msra.mxu1 %v9888_v4 }
0x2d7a   :  { %10632 = vmatprep.subr.mxu0 %v9871_v38  ;;  %10670 = vmatprep.subr.mxu1 %v9903_v48 }
0x2d7b   :  { %10633 = vmatpush3.msra.mxu0 %v9855_v2  ;;  %10671 = vmatpush3.msra.mxu1 %v9887_v63 }
0x2d7c   :  { %10634 = vmatprep.subr.mxu0 %v9870_v40  ;;  %10672 = vmatprep.subr.mxu1 %v9902_v46 }
0x2d7d   :  { %10635 = vmatpush3.msra.mxu0 %v9854_v54  ;;  %10673 = vmatpush3.msra.mxu1 %v9886_v22 }
0x2d7e   :  { %10636 = vmatprep.subr.mxu0 %v9869_v55  ;;  %10674 = vmatprep.subr.mxu1 %v9901_v8 }
0x2d7f   :  { %10637 = vmatpush3.msra.mxu0 %v9853_v45  ;;  %10675 = vmatpush3.msra.mxu1 %v9885_v42 }
0x2d80   :  { %9280 = vmatmul.mubr.f32.vlgmr.msra.gmra.mxu0 %v8484_v11  ;;  %9355 = vmatmul.mubr.f32.vlgmr.msra.gmra.mxu1 %v8486_v57 }
0x2d81   :  { %9284 = vmatprep.mubr.f32.mxu0 %v8501_v14  ;;  %9359 = vmatprep.mubr.f32.mxu1 %v8503_v13 }
0x2d84   :  { %9285 = vmatmul.mubr.f32.gmra.mxu0 %v8500_v16  ;;  %9360 = vmatmul.mubr.f32.gmra.mxu1 %v8502_v35 }
0x2dd5   :  { %v10410_v61 = vpop.f32.mrf.mxu0  ;;  %v10448_v17 = vpop.f32.mrf.mxu1 }
0x2dd7   :  { %v10411_v31 = vpop.f32.mrf.mxu0  ;;  %v10449_v6 = vpop.f32.mrf.mxu1 }
0x2dd8   :  { %v10412_v56 = vadd.f32 %v10411_v31, %v10410_v61  ;;  %v10450_v58 = vadd.f32 %v10449_v6, %v10448_v17 }
0x2dda   :  { %v8832_v20 = vadd.f32 %v10412_v56, %v8764_v12 }
0x2ddb   :  { %v10413_v60 = vpop.f32.mrf.mxu0  ;;  %v10451_v62 = vpop.f32.mrf.mxu1 }
0x2ddc   :  { %v8907_v26 = vadd.f32 %v10450_v58, %v8832_v20 }
0x2ddd   :  { %v10414_v0 = vpop.f32.mrf.mxu0  ;;  %v10452_v41 = vpop.f32.mrf.mxu1 }
0x2dde   :  { %v10415_v21 = vadd.f32 %v10414_v0, %v10413_v60  ;;  %v10453_v51 = vadd.f32 %v10452_v41, %v10451_v62 }
0x2de0   :  { %v8837_v28 = vadd.f32 %v10415_v21, %v8764_v12 }
0x2de2   :  { %v8912_v38 = vadd.f32 %v10453_v51, %v8837_v28  ;;  %v9917_v28 = vld [vmem:[%s14411_s6 + $0x18] ss:$0 sm:$0xff] }
0x2df8   :  { %v10486_v9 = vpop.f32.mrf.mxu0  ;;  %v10524_v49 = vpop.f32.mrf.mxu1 }
0x2dfa   :  { %v10487_v36 = vpop.f32.mrf.mxu0  ;;  %v10525_v18 = vpop.f32.mrf.mxu1 }
0x2dfb   :  { %v10488_v43 = vadd.f32 %v10487_v36, %v10486_v9  ;;  %v10526_v48 = vadd.f32 %v10525_v18, %v10524_v49 }
0x2dfd   :  { %v8982_v30 = vadd.f32 %v10488_v43, %v8907_v26  ;;  %v9396_v43 = vrot.slane %v14380_v44, %v12210_v24 }
0x2dfe   :  { %v10489_v10 = vpop.f32.mrf.mxu0  ;;  %v10527_v37 = vpop.f32.mrf.mxu1 }
0x2dff   :  { %v9057_v1 = vadd.f32 %v10526_v48, %v8982_v30  ;;  %v9918_v30 = vld [vmem:[%s14417_s7] ss:$0 sm:$0xff] }
0x2e00   :  { %v10490_v23 = vpop.f32.mrf.mxu0  ;;  %v10528_v27 = vpop.f32.mrf.mxu1 }
0x2e01   :  { %v10491_v33 = vadd.f32 %v10490_v23, %v10489_v10  ;;  %v10529_v40 = vadd.f32 %v10528_v27, %v10527_v37 }
0x2e03   :  { %v8987_v2 = vadd.f32 %v10491_v33, %v8912_v38 }
0x2e05   :  { %v9062_v22 = vadd.f32 %v10529_v40, %v8987_v2 }
0x2e1c   :  { %v10562_v15 = vpop.f32.mrf.mxu0  ;;  %v10600_v52 = vpop.f32.mrf.mxu1 }
0x2e1e   :  { %v10563_v47 = vpop.f32.mrf.mxu0  ;;  %v10601_v25 = vpop.f32.mrf.mxu1 }
0x2e1f   :  { %v10564_v32 = vadd.f32 %v10563_v47, %v10562_v15  ;;  %v10602_v3 = vadd.f32 %v10601_v25, %v10600_v52 }
0x2e21   :  { %v9132_v46 = vadd.f32 %v10564_v32, %v9057_v1 }
0x2e22   :  { %v10565_v53 = vpop.f32.mrf.mxu0  ;;  %v10603_v4 = vpop.f32.mrf.mxu1 }
0x2e23   :  { %v9207_v8 = vadd.f32 %v10602_v3, %v9132_v46 }
0x2e24   :  { %v10566_v39 = vpop.f32.mrf.mxu0  ;;  %v10604_v63 = vpop.f32.mrf.mxu1 }
0x2e25   :  { %v10567_v7 = vadd.f32 %v10566_v39, %v10565_v53  ;;  %v10605_v34 = vadd.f32 %v10604_v63, %v10603_v4 }
0x2e27   :  { %v9137_v45 = vadd.f32 %v10567_v7, %v9062_v22 }
0x2e29   :  { %v9212_v35 = vadd.f32 %v10605_v34, %v9137_v45 }
0x2e40   :  { %v10638_v5 = vpop.f32.mrf.mxu0  ;;  %v10676_v54 = vpop.f32.mrf.mxu1 }
0x2e42   :  { %v10639_v50 = vpop.f32.mrf.mxu0  ;;  %v10677_v55 = vpop.f32.mrf.mxu1 }
0x2e43   :  { %v10640_v42 = vadd.f32 %v10639_v50, %v10638_v5  ;;  %v10678_v14 = vadd.f32 %v10677_v55, %v10676_v54 }
0x2e44   :  { %v10641_v11 = vpop.f32.mrf.mxu0  ;;  %v10679_v57 = vpop.f32.mrf.mxu1 }
0x2e45   :  { %v9282_v59 = vadd.f32 %v10640_v42, %v9207_v8 }
0x2e46   :  { %v10642_v13 = vpop.f32.mrf.mxu0  ;;  %v10680_v16 = vpop.f32.mrf.mxu1 }
0x2e47   :  { %v9357_v61 = vadd.f32 %v10678_v14, %v9282_v59  ;;  %v10643_v17 = vadd.f32 %v10642_v13, %v10641_v11  ;;  %v10681_v6 = vadd.f32 %v10680_v16, %v10679_v57 }
0x2e49   :  { %v9287_v31 = vadd.f32 %v10643_v17, %v9212_v35  ;;  %v9365_v60 = vadd.f32 %v9357_v61, %v13331_v19 }
0x2e4b   :  { %v9362_v62 = vadd.f32 %v10681_v6, %v9287_v31  ;;  %v9367_v0 = vsel %vm42_vm0, %v9365_v60, 0.0 }
0x2e4c   :  { %9368 = vadd.xlane.f32.xlu1 %v9367_v0 }
0x2e4d   :  { %v9366_v41 = vadd.f32 %v9362_v62, %v13355_v29  ;;  %v14_v29 = vstv %s14416_s8 }
0x2e4e   :  { %15 = vst [vmem:[#allocation3] sm:$0x1] %v14_v29 }
0x2e4f   :  { %v9370_v9 = vsel %vm42_vm0, %v9366_v41, 0.0 }
0x2e50   :  { %9371 = vadd.xlane.f32.xlu0 %v9370_v9 }
0x2e55   :  { %v9919_v1 = vld [vmem:[#allocation3] ss:$0 sm:$0xff] }
0x2ed5   :  { %v9369_v49 = vpop.xlane.xlu1 %9368 }
0x2ed6   :  { %v9373_v36 = vmul.f32 0.03125, %v9369_v49 }
0x2ed8   :  { %v9375_v18 = vsub.f32 %v9365_v60, %v9373_v36 }
0x2ed9   :  { %v9372_v10 = vpop.xlane.xlu0 %9371 }
0x2eda   :  { %v9374_v37 = vmul.f32 0.03125, %v9372_v10  ;;  %v9377_v23 = vmul.f32 %v9375_v18, %v9375_v18 }
0x2edc   :  { %v9376_v12 = vsub.f32 %v9366_v41, %v9374_v37  ;;  %v9379_v56 = vsel %vm42_vm0, %v9377_v23, 0.0 }
0x2edd   :  { %9380 = vadd.xlane.f32.xlu1 %v9379_v56 }
0x2ede   :  { %v9378_v19 = vmul.f32 %v9376_v12, %v9376_v12 }
0x2ee0   :  { %v9382_v27 = vsel %vm42_vm0, %v9378_v19, 0.0 }
0x2ee1   :  { %9383 = vadd.xlane.f32.xlu0 %v9382_v27 }
0x2f66   :  { %v9381_v15 = vpop.xlane.xlu1 %9380 }
0x2f67   :  { %v9385_v52 = vmul.f32 0.03125, %v9381_v15 }
0x2f69   :  { %v9387_v20 = vadd.f32 1e-05, %v9385_v52 }
0x2f6a   :  { %v9384_v21 = vpop.xlane.xlu0 %9383 }
0x2f6b   :  { %11219 = vrsqrt.f32 %v9387_v20  ;;  %v9386_v47 = vmul.f32 0.03125, %v9384_v21 }
0x2f6d   :  { %v9388_v58 = vadd.f32 1e-05, %v9386_v47 }
0x2f6f   :  { %11221 = vrsqrt.f32 %v9388_v58 }
0x2f78   :  { %v11220_v25 = vpop.eup %11219 }
0x2f79   :  { %v9391_v26 = vmul.f32 %v11220_v25, %v9375_v18 }
0x2f7b   :  { %v9397_v53 = vmul.f32 %v9396_v43, %v9391_v26 }
0x2f7c   :  { %v11222_v51 = vpop.eup %11221 }
0x2f7d   :  { %v9403_v33 = vadd.f32 %v9917_v28, %v9397_v53  ;;  %v9392_v4 = vmul.f32 %v11222_v51, %v9376_v12 }
0x2f7f   :  { %v9412_v38 = vmul.f32 %v9918_v30, %v9403_v33  ;;  %v9398_v48 = vmul.f32 %v9396_v43, %v9392_v4 }
0x2f81   :  { %v9414_v32 = vsel %vm42_vm0, %v9412_v38, 0.0  ;;  %v9404_v39 = vadd.f32 %v9917_v28, %v9398_v48 }
0x2f82   :  { %9415 = vadd.xlane.f32.xlu1 %v9414_v32 }
0x2f83   :  { %v9413_v24 = vmul.f32 %v9918_v30, %v9404_v39 }
0x2f85   :  { %v9417_v44 = vsel %vm42_vm0, %v9413_v24, 0.0 }
0x2f86   :  { %9418 = vadd.xlane.f32.xlu0 %v9417_v44 }
0x300b   :  { %v9416_v2 = vpop.xlane.xlu1 %9415 }
0x300c   :  { %v9427_v63 = vadd.f32 %v9919_v1, %v9416_v2 }
0x300e   :  { %v9920_v40 = vmul.f32 -1.442695, %v9427_v63 }
0x300f   :  { %v9419_v46 = vpop.xlane.xlu0 %9418 }
0x3010   :  { %11223 = vpow2.f32 %v9920_v40  ;;  %v9428_v7 = vadd.f32 %v9919_v1, %v9419_v46 }
0x3012   :  { %v9921_v5 = vmul.f32 -1.442695, %v9428_v7 }
0x3014   :  { %11225 = vpow2.f32 %v9921_v5 }
0x301d   :  { %v11224_v54 = vpop.eup %11223 }
0x301e   :  { %v9435_v22 = vadd.f32 1.0, %v11224_v54 }
0x3020   :  { %11227 = vrcp.f32 %v9435_v22 }
0x3021   :  { %v11226_v3 = vpop.eup %11225 }
0x3022   :  { %v9436_v50 = vadd.f32 1.0, %v11226_v3 }
0x3024   :  { %11229 = vrcp.f32 %v9436_v50 }
0x302d   :  { %v11228_v55 = vpop.eup %11227 }
0x302e   :  { %9442 = vst.msk [vmem:[%s14418_s9] sm:$0xff] %vm9441_vm11, %v11228_v55 }
0x3031   :  { %v11230_v8 = vpop.eup %11229 }
0x3032   :  { %9443 = vst.msk [vmem:[%s14418_s9 + $0x8] sm:$0xff] %vm9441_vm11, %v11230_v8 }

</bundles_post_ra>
